<compile_context>
chip_gen: v5e
topology: v5e:2x2
jax: 0.10.0
libtpu: 0.0.40
codegen_flags: <defaults>
</compile_context>

<pallas_src>
import functools
import math

import jax
import jax.numpy as jnp
from jax import lax
from jax.experimental import pallas as pl
from jax.experimental.pallas import tpu as pltpu

NUM_SPECIES = 5
EMBED_DIM = 32          # D
LATENT_DIM = 8
CUTOFF = 5.0
NUM_LAYERS = 2
OUT_W = 128             # fused decoder output: [0:8]=latent scalars, [8:11]=vector


def _round_up(x, m):
    return (x + m - 1) // m * m


# ----------------------------- fused kernel --------------------------------------
def _fused_kernel(TM, TN, n_cb,
                  x_rows_ref, x_cols_ref, frame_r_ref, frame_c_ref,
                  species_ref, t_ref,
                  wsp_ref, wt_ref, benc_ref,
                  wmsg_ref, bmsg_ref, w2_ref, b2_ref,
                  wd1_ref, bd1_ref, wdec_ref, bdec_ref,
                  out_ref,
                  h_ref, pg_ref, v_ref, stk_ref, acc_ref):
    D = EMBED_DIM
    l = pl.program_id(0)          # layer index (outer, sequential)
    rb = pl.program_id(1)         # node-row block (inner)
    r0 = pl.multiple_of(rb * TM, TM)

    # ---- encoder: runs once, before the first layer ----
    @pl.when(jnp.logical_and(l == 0, rb == 0))
    def _():
        h0 = jnp.dot(species_ref[...], wsp_ref[...], preferred_element_type=jnp.float32)
        h0 = h0 + t_ref[...] * wt_ref[...] + benc_ref[...]   # t projection = VPU broadcast
        h_ref[...] = jax.nn.silu(h0)
        v_ref[...] = jnp.zeros_like(v_ref)

    # ---- per-layer message features for ALL nodes (once per layer) ----
    # pg = [ silu(h@w1+b1) @ w2  |  h@wg+bg ]   (w2 folded into the message RHS)
    @pl.when(rb == 0)
    def _():
        pg = jnp.dot(h_ref[...].astype(jnp.bfloat16), wmsg_ref[...],
                     preferred_element_type=jnp.float32) + bmsg_ref[...]
        phi = jax.nn.silu(pg[:, :D])
        phi_w2 = jnp.dot(phi, w2_ref[...], preferred_element_type=jnp.float32)
        pg_ref[:, :D] = phi_w2.astype(jnp.bfloat16)
        pg_ref[:, D:] = pg[:, D:].astype(jnp.bfloat16)

    # ---- per row block: column-tiled neighbor aggregation (A never in HBM) ----
    xr = x_rows_ref[...]                                      # (TM, 3)
    fr = frame_r_ref[...]                                     # (TM, 1) int32
    ridx = lax.broadcasted_iota(jnp.int32, (TM, 1), 0) + r0   # global row ids

    acc_ref[...] = jnp.zeros_like(acc_ref)

    def col_step(cb, carry):
        c0 = pl.multiple_of(cb * TN, TN)
        xc = x_cols_ref[:, pl.ds(c0, TN)]                     # (3, TN)
        fc = frame_c_ref[:, pl.ds(c0, TN)]                    # (1, TN)
        cidx = lax.broadcasted_iota(jnp.int32, (1, TN), 1) + c0

        dx = xc[0:1, :] - xr[:, 0:1]                          # (TM, TN)
        dy = xc[1:2, :] - xr[:, 1:2]
        dz = xc[2:3, :] - xr[:, 2:3]
        d2 = dx * dx + dy * dy + dz * dz

        mask = jnp.logical_and(
            fc == fr,
            jnp.logical_and(ridx != cidx, d2 < CUTOFF * CUTOFF))
        dist = d2 * lax.rsqrt(d2 + 1e-12)
        w = 0.5 * (jnp.cos((jnp.pi / CUTOFF) * dist) + 1.0)   # smooth cosine cutoff
        a = jnp.where(mask, w, 0.0)

        # build the stacked bf16 MXU operand slab-by-slab in VMEM scratch
        stk_ref[0:TM, :] = a.astype(jnp.bfloat16)
        stk_ref[TM:2 * TM, :] = (a * dx).astype(jnp.bfloat16)
        stk_ref[2 * TM:3 * TM, :] = (a * dy).astype(jnp.bfloat16)
        stk_ref[3 * TM:4 * TM, :] = (a * dz).astype(jnp.bfloat16)

        pgc = pg_ref[pl.ds(c0, TN), :]                        # (TN, 2D) bf16
        acc_ref[...] += jnp.dot(stk_ref[...], pgc,
                                preferred_element_type=jnp.float32)
        return carry

    lax.fori_loop(0, n_cb, col_step, 0)

    acc = acc_ref[...]                                        # (4TM, 2D) f32
    h_rows = h_ref[pl.ds(r0, TM), :]
    h_new = h_rows + acc[0:TM, 0:D] + b2_ref[...]             # h + A@phi@w2 + b2
    h_ref[pl.ds(r0, TM), :] = h_new                           # in-place (pg already snapshotted)

    dv = jnp.concatenate([acc[TM:2 * TM, D:],                 # (A*dx) @ gate
                          acc[2 * TM:3 * TM, D:],             # (A*dy) @ gate
                          acc[3 * TM:4 * TM, D:]], axis=1)    # (A*dz) @ gate
    v_new = v_ref[pl.ds(r0, TM), :] + dv
    v_ref[pl.ds(r0, TM), :] = v_new

    # ---- decoder (last layer only): scalar + vector heads fused in one 128x128 matmul
    @pl.when(l == NUM_LAYERS - 1)
    def _():
        hidden = jax.nn.silu(jnp.dot(h_new, wd1_ref[...],
                                     preferred_element_type=jnp.float32) + bd1_ref[...])
        dec_in = jnp.concatenate([hidden, v_new], axis=1)     # (TM, 4D) = (TM, 128)
        out_ref[...] = (jnp.dot(dec_in, wdec_ref[...],
                                preferred_element_type=jnp.float32) + bdec_ref[...])


# ----------------------------- pallas_call wrapper --------------------------------
def _fused_call(x_rows, x_cols, frame_r, frame_c, species, t_nodes, pk, *, Mp, TM, TN):
    D = EMBED_DIM
    n_rb = Mp // TM
    n_cb = Mp // TN

    def full(shape):
        nd = len(shape)
        return pl.BlockSpec(shape, lambda l, rb: (0,) * nd)

    def row(shape):
        return pl.BlockSpec(shape, lambda l, rb: (rb, 0))

    def per_layer(tail):
        nt = len(tail)
        return pl.BlockSpec((None,) + tail, lambda l, rb: (l,) + (0,) * nt)

    kernel = functools.partial(_fused_kernel, TM, TN, n_cb)

    return pl.pallas_call(
        kernel,
        out_shape=jax.ShapeDtypeStruct((Mp, OUT_W), jnp.float32),
        grid=(NUM_LAYERS, n_rb),
        in_specs=[
            row((TM, 3)),                 # x_rows (row-tiled)
            full((3, Mp)),                # x_cols (resident, sliced per column chunk)
            row((TM, 1)),                 # frame_r (row-tiled)
            full((1, Mp)),                # frame_c
            full((Mp, NUM_SPECIES)),      # species one-hot
            full((Mp, 1)),                # t per node
            full((NUM_SPECIES, D)), full((1, D)), full((1, D)),       # encoder
            per_layer((D, 2 * D)), per_layer((1, 2 * D)),              # wmsg, bmsg
            per_layer((D, D)), per_layer((1, D)),                      # w2, b2
            full((D, D)), full((1, D)),                                # wd1, bd1
            full((4 * D, OUT_W)), full((1, OUT_W)),                    # wdec, bdec
        ],
        out_specs=row((TM, OUT_W)),       # row-tiled lane-dense output slab
        scratch_shapes=[
            pltpu.VMEM((Mp, D), jnp.float32),        # h (in-place across layers)
            pltpu.VMEM((Mp, 2 * D), jnp.bfloat16),   # pg = [phi@w2 | gate]
            pltpu.VMEM((Mp, 3 * D), jnp.float32),    # v packed as [vx | vy | vz]
            pltpu.VMEM((4 * TM, TN), jnp.bfloat16),  # stacked bf16 MXU operand
            pltpu.VMEM((4 * TM, 2 * D), jnp.float32),  # per-row-block accumulator
        ],
        compiler_params=pltpu.CompilerParams(
            dimension_semantics=("arbitrary", "arbitrary"),
            vmem_limit_bytes=64 * 1024 * 1024),
    )(x_rows, x_cols, frame_r, frame_c, species, t_nodes,
      pk["wsp"], pk["wt"], pk["benc"],
      pk["wmsg"], pk["bmsg"], pk["w2"], pk["b2"],
      pk["wd1"], pk["bd1"], pk["wdec"], pk["bdec"])


# ----------------------------- parameters ----------------------------------------
def _lin(key, fan_in, fan_out):
    return jax.random.normal(key, (fan_in, fan_out), jnp.float32) / jnp.sqrt(fan_in)


def init_params(key):
    ks = jax.random.split(key, 4 + 6 * NUM_LAYERS + 5)
    it = iter(ks)
    params = {
        "encoder": {
            "w_sp": _lin(next(it), NUM_SPECIES, EMBED_DIM),
            "w_t": _lin(next(it), 1, EMBED_DIM),
            "b": jnp.zeros((1, EMBED_DIM), jnp.float32),
        },
        "processor": [],
        "decoder": {
            "wd1": _lin(next(it), EMBED_DIM, EMBED_DIM),
            "bd1": jnp.zeros((1, EMBED_DIM), jnp.float32),
            "wd2": _lin(next(it), EMBED_DIM, LATENT_DIM),
            "bd2": jnp.zeros((1, LATENT_DIM), jnp.float32),
            "wvec": _lin(next(it), EMBED_DIM, 1),
        },
    }
    for _ in range(NUM_LAYERS):
        params["processor"].append({
            "w1": _lin(next(it), EMBED_DIM, EMBED_DIM),
            "b1": jnp.zeros((1, EMBED_DIM), jnp.float32),
            "w2": _lin(next(it), EMBED_DIM, EMBED_DIM),
            "b2": jnp.zeros((1, EMBED_DIM), jnp.float32),
            "wg": _lin(next(it), EMBED_DIM, EMBED_DIM),
            "bg": jnp.zeros((1, EMBED_DIM), jnp.float32),
        })
    return params


def pack_params(params):
    D = EMBED_DIM
    enc, dec = params["encoder"], params["decoder"]
    wmsg = jnp.stack([jnp.concatenate([lp["w1"], lp["wg"]], axis=1)
                      for lp in params["processor"]], axis=0).astype(jnp.bfloat16)  # (L, D, 2D)
    bmsg = jnp.stack([jnp.concatenate([lp["b1"], lp["bg"]], axis=1)
                      for lp in params["processor"]], axis=0)                        # (L, 1, 2D)
    w2 = jnp.stack([lp["w2"] for lp in params["processor"]], axis=0)                 # (L, D, D)
    b2 = jnp.stack([lp["b2"] for lp in params["processor"]], axis=0)                 # (L, 1, D)
    # fused decoder weight: input = [hidden | vx | vy | vz] (4D wide), output = 128 lanes
    wdec = jnp.zeros((4 * D, OUT_W), jnp.float32)
    wdec = wdec.at[:D, :LATENT_DIM].set(dec["wd2"])
    for d in range(3):
        wdec = wdec.at[D + d * D:D + (d + 1) * D, LATENT_DIM + d].set(dec["wvec"][:, 0])
    bdec = jnp.zeros((1, OUT_W), jnp.float32).at[:, :LATENT_DIM].set(dec["bd2"])
    return dict(wsp=enc["w_sp"], wt=enc["w_t"], benc=enc["b"],
                wmsg=wmsg, bmsg=bmsg, w2=w2, b2=b2,
                wd1=dec["wd1"], bd1=dec["bd1"], wdec=wdec, bdec=bdec)


# ----------------------------- model forward --------------------------------------
def inference(params, x, t, cell=None, num_atoms=None, aatype=None,
              row_tile=None, col_tile=None):
    # TODO(synk): radius_graph_pbc / get_pbc_distances (periodic-image graph building with
    # neighbor-count thresholds) have no clean Pallas equivalent; a dense non-periodic
    # per-frame radius graph with a smooth cosine cutoff is built on the fly inside the
    # kernel instead (cell / num_atoms are unused).
    B, T, N, _ = x.shape
    assert t.shape == (B,)
    M = B * T * N

    if row_tile is None:
        row_tile = 128
    if col_tile is None:
        col_tile = 512
    TM = max(16, _round_up(row_tile, 16))                       # mult of 16 (bf16 sublane slabs)
    TN = max(128, _round_up(min(col_tile, _round_up(M, 128)), 128))
    Mp = _round_up(M, (TM * TN) // math.gcd(TM, TN))            # multiple of both tiles
    pad = Mp - M

    xf = jnp.pad(x.reshape(M, 3).astype(jnp.float32), ((0, pad), (0, 0)))
    x_rows = xf                      # (Mp, 3)
    x_cols = xf.T                    # (3, Mp)

    frame = jnp.repeat(jnp.arange(B * T, dtype=jnp.int32), N)
    frame = jnp.concatenate([frame, jnp.full((pad,), -1, jnp.int32)])
    frame_r = frame.reshape(Mp, 1)
    frame_c = frame.reshape(1, Mp)

    if aatype is None:
        aatype = jnp.zeros((B, T, N), jnp.int32)
    species = jax.nn.one_hot(aatype, NUM_SPECIES, dtype=jnp.float32).reshape(M, NUM_SPECIES)
    species = jnp.pad(species, ((0, pad), (0, 0)))

    # t: (B,) -> (B, T, N, 1) -> (M, 1)   (matches torch unsqueeze/expand chain)
    t_nodes = jnp.broadcast_to(t[:, None, None, None], (B, T, N, 1)).reshape(M, 1)
    t_nodes = jnp.pad(t_nodes.astype(jnp.float32), ((0, pad), (0, 0)))

    pk = pack_params(params)
    out_full = _fused_call(x_rows, x_cols, frame_r, frame_c, species, t_nodes, pk,
                           Mp=Mp, TM=TM, TN=TN)

    scaler_out = out_full[:M, :LATENT_DIM].reshape(B, T, N, LATENT_DIM)
    vector_out = out_full[:M, LATENT_DIM:LATENT_DIM + 3].reshape(B, T, N, 3)
    return scaler_out, vector_out


def forward(params, x, t, cell=None, num_atoms=None, conditions=None, aatype=None,
            x_latt=None, x1=None, v_mask=None, latt_feature=None,
            row_tile=None, col_tile=None):
    # default torch branch: design=False, potential_model=False, tps_condition=False,
    # pbc=True, conditions=None, abs_time_emb=False
    vm = v_mask.astype(x.dtype)
    x = x * vm + x1 * (1.0 - vm)
    _, vector_out = inference(params, x, t, cell, num_atoms, aatype,
                              row_tile=row_tile, col_tile=col_tile)
    return vector_out * vm


# ----------------------------- main -----------------------------------------------
if __name__ == "__main__":
    B, T, N = 2, 4, 16            # M = 128 nodes; TM=64, TN=128 -> grid (2, 2), 1 col chunk
    key = jax.random.PRNGKey(0)
    k_par, k_x, k_x1, k_t, k_m = jax.random.split(key, 5)

    params = init_params(k_par)

    x = jax.random.uniform(k_x, (B, T, N, 3), jnp.float32) * 3.0
    x1 = jax.random.uniform(k_x1, (B, T, N, 3), jnp.float32) * 3.0
    t = jax.random.uniform(k_t, (B,), jnp.float32)
    cell = jnp.broadcast_to(jnp.eye(3, dtype=jnp.float32) * 10.0, (B, T, 3, 3))
    num_atoms = jnp.full((B, T), N, jnp.int32)
    v_mask = jax.random.bernoulli(k_m, 0.7, (B, T, N, 1))

    out = forward(params, x, t, cell=cell, num_atoms=num_atoms, conditions=None,
                  aatype=None, x1=x1, v_mask=v_mask, row_tile=64, col_tile=512)
    jax.block_until_ready(out)
    assert out.shape == (B, T, N, 3)
    assert bool(jnp.all(jnp.isfinite(out)))
    print("KERNEL_OK")
</pallas_src>

<mosaic_0001>
module attributes {stable_mosaic.version = 11 : i64} {
  func.func @_fused_kernel(%arg0: i32, %arg1: i32, %arg2: memref<64x3xf32, #tpu.memory_space<vmem>>, %arg3: memref<3x128xf32, #tpu.memory_space<vmem>>, %arg4: memref<64x1xi32, #tpu.memory_space<vmem>>, %arg5: memref<1x128xi32, #tpu.memory_space<vmem>>, %arg6: memref<128x5xf32, #tpu.memory_space<vmem>>, %arg7: memref<128x1xf32, #tpu.memory_space<vmem>>, %arg8: memref<5x32xf32, #tpu.memory_space<vmem>>, %arg9: memref<1x32xf32, #tpu.memory_space<vmem>>, %arg10: memref<1x32xf32, #tpu.memory_space<vmem>>, %arg11: memref<1x32x64xbf16, #tpu.memory_space<vmem>>, %arg12: memref<1x1x64xf32, #tpu.memory_space<vmem>>, %arg13: memref<1x32x32xf32, #tpu.memory_space<vmem>>, %arg14: memref<1x1x32xf32, #tpu.memory_space<vmem>>, %arg15: memref<32x32xf32, #tpu.memory_space<vmem>>, %arg16: memref<1x32xf32, #tpu.memory_space<vmem>>, %arg17: memref<128x128xf32, #tpu.memory_space<vmem>>, %arg18: memref<1x128xf32, #tpu.memory_space<vmem>>, %arg19: memref<64x128xf32, #tpu.memory_space<vmem>>, %arg20: memref<128x32xf32, #tpu.memory_space<vmem>>, %arg21: memref<128x64xbf16, #tpu.memory_space<vmem>>, %arg22: memref<128x96xf32, #tpu.memory_space<vmem>>, %arg23: memref<256x128xbf16, #tpu.memory_space<vmem>>, %arg24: memref<256x64xf32, #tpu.memory_space<vmem>>) attributes {dimension_semantics = [#tpu.dimension_semantics<arbitrary>, #tpu.dimension_semantics<arbitrary>], iteration_bounds = array<i64: 2, 2>, scalar_prefetch = 0 : i64, scratch_operands = 5 : i64, tpu.core_type = #tpu.core_type<tc>, window_params = [{transform_indices = @transform_0, window_bounds = array<i64: 64, 3>}, {pipeline_mode = #tpu.pipeline_mode<synchronous>, transform_indices = @transform_1, window_bounds = array<i64: 3, 128>}, {transform_indices = @transform_2, window_bounds = array<i64: 64, 1>}, {pipeline_mode = #tpu.pipeline_mode<synchronous>, transform_indices = @transform_3, window_bounds = array<i64: 1, 128>}, {pipeline_mode = #tpu.pipeline_mode<synchronous>, transform_indices = @transform_4, window_bounds = array<i64: 128, 5>}, {pipeline_mode = #tpu.pipeline_mode<synchronous>, transform_indices = @transform_5, window_bounds = array<i64: 128, 1>}, {pipeline_mode = #tpu.pipeline_mode<synchronous>, transform_indices = @transform_6, window_bounds = array<i64: 5, 32>}, {pipeline_mode = #tpu.pipeline_mode<synchronous>, transform_indices = @transform_7, window_bounds = array<i64: 1, 32>}, {pipeline_mode = #tpu.pipeline_mode<synchronous>, transform_indices = @transform_8, window_bounds = array<i64: 1, 32>}, {transform_indices = @transform_9, window_bounds = array<i64: 1, 32, 64>}, {transform_indices = @transform_10, window_bounds = array<i64: 1, 1, 64>}, {transform_indices = @transform_11, window_bounds = array<i64: 1, 32, 32>}, {transform_indices = @transform_12, window_bounds = array<i64: 1, 1, 32>}, {pipeline_mode = #tpu.pipeline_mode<synchronous>, transform_indices = @transform_13, window_bounds = array<i64: 32, 32>}, {pipeline_mode = #tpu.pipeline_mode<synchronous>, transform_indices = @transform_14, window_bounds = array<i64: 1, 32>}, {pipeline_mode = #tpu.pipeline_mode<synchronous>, transform_indices = @transform_15, window_bounds = array<i64: 128, 128>}, {pipeline_mode = #tpu.pipeline_mode<synchronous>, transform_indices = @transform_16, window_bounds = array<i64: 1, 128>}, {transform_indices = @transform_17, window_bounds = array<i64: 64, 128>}]} {
    %c64_i32 = arith.constant 64 : i32
    %0 = arith.muli %arg1, %c64_i32 : i32
    %1 = tpu.assume_multiple %0, 64 : i32
    %c0_i32 = arith.constant 0 : i32
    %2 = arith.cmpi eq, %arg0, %c0_i32 : i32
    %c0_i32_0 = arith.constant 0 : i32
    %3 = arith.cmpi eq, %arg1, %c0_i32_0 : i32
    %4 = arith.andi %2, %3 : i1
    %5 = arith.extui %4 : i1 to i32
    %c0_i32_1 = arith.constant 0 : i32
    %6 = arith.cmpi ne, %5, %c0_i32_1 : i32
    scf.if %6 {
      %c0_42 = arith.constant 0 : index
      %c0_43 = arith.constant 0 : index
      %110 = vector.load %arg6[%c0_42, %c0_43] : memref<128x5xf32, #tpu.memory_space<vmem>>, vector<128x5xf32>
      %c0_44 = arith.constant 0 : index
      %c0_45 = arith.constant 0 : index
      %111 = vector.load %arg8[%c0_44, %c0_45] : memref<5x32xf32, #tpu.memory_space<vmem>>, vector<5x32xf32>
      %cst_46 = arith.constant dense<0.000000e+00> : vector<128x32xf32>
      %112 = tpu.matmul %110, %111, %cst_46 {dimension_numbers = #tpu.dot_dimension_numbers<[1], [0], [0], [1], [0, 0, 1, 1], [], []>} : vector<128x5xf32>, vector<5x32xf32>, vector<128x32xf32> -> vector<128x32xf32>
      %c0_47 = arith.constant 0 : index
      %c0_48 = arith.constant 0 : index
      %113 = vector.load %arg7[%c0_47, %c0_48] : memref<128x1xf32, #tpu.memory_space<vmem>>, vector<128x1xf32>
      %c0_49 = arith.constant 0 : index
      %c0_50 = arith.constant 0 : index
      %114 = vector.load %arg9[%c0_49, %c0_50] : memref<1x32xf32, #tpu.memory_space<vmem>>, vector<1x32xf32>
      %115 = vector.broadcast %113 : vector<128x1xf32> to vector<128x32xf32>
      %116 = vector.broadcast %114 : vector<1x32xf32> to vector<128x32xf32>
      %117 = arith.mulf %115, %116 : vector<128x32xf32>
      %118 = arith.addf %112, %117 : vector<128x32xf32>
      %c0_51 = arith.constant 0 : index
      %c0_52 = arith.constant 0 : index
      %119 = vector.load %arg10[%c0_51, %c0_52] : memref<1x32xf32, #tpu.memory_space<vmem>>, vector<1x32xf32>
      %120 = vector.broadcast %119 : vector<1x32xf32> to vector<128x32xf32>
      %121 = arith.addf %118, %120 : vector<128x32xf32>
      %122 = arith.negf %121 : vector<128x32xf32>
      %123 = math.exp %122 : vector<128x32xf32>
      %cst_53 = arith.constant 1.000000e+00 : f32
      %124 = vector.broadcast %cst_53 : f32 to vector<128x32xf32>
      %125 = arith.addf %124, %123 : vector<128x32xf32>
      %126 = arith.divf %124, %125 : vector<128x32xf32>
      %127 = arith.mulf %121, %126 : vector<128x32xf32>
      %c0_54 = arith.constant 0 : index
      %c0_55 = arith.constant 0 : index
      %128 = vector.load %arg20[%c0_54, %c0_55] : memref<128x32xf32, #tpu.memory_space<vmem>>, vector<128x32xf32>
      tpu.vector_store %arg20[%c0_54, %c0_55], %127 {strides = array<i32>} : memref<128x32xf32, #tpu.memory_space<vmem>>, vector<128x32xf32>,
      %cst_56 = arith.constant 0.000000e+00 : f32
      %129 = vector.broadcast %cst_56 : f32 to vector<128x96xf32>
      %c0_57 = arith.constant 0 : index
      %c0_58 = arith.constant 0 : index
      %130 = vector.load %arg22[%c0_57, %c0_58] : memref<128x96xf32, #tpu.memory_space<vmem>>, vector<128x96xf32>
      tpu.vector_store %arg22[%c0_57, %c0_58], %129 {strides = array<i32>} : memref<128x96xf32, #tpu.memory_space<vmem>>, vector<128x96xf32>,
    } else {
    }
    %c0_i32_2 = arith.constant 0 : i32
    %7 = arith.cmpi eq, %arg1, %c0_i32_2 : i32
    %8 = arith.extui %7 : i1 to i32
    %c0_i32_3 = arith.constant 0 : i32
    %9 = arith.cmpi ne, %8, %c0_i32_3 : i32
    scf.if %9 {
      %c0_42 = arith.constant 0 : index
      %c0_43 = arith.constant 0 : index
      %110 = vector.load %arg20[%c0_42, %c0_43] : memref<128x32xf32, #tpu.memory_space<vmem>>, vector<128x32xf32>
      %111 = arith.truncf %110 : vector<128x32xf32> to vector<128x32xbf16>
      %c0_44 = arith.constant 0 : index
      %c0_45 = arith.constant 0 : index
      %c0_46 = arith.constant 0 : index
      %112 = vector.load %arg11[%c0_44, %c0_45, %c0_46] : memref<1x32x64xbf16, #tpu.memory_space<vmem>>, vector<1x32x64xbf16>
      %113 = vector.shape_cast %112 : vector<1x32x64xbf16> to vector<32x64xbf16>
      %cst_47 = arith.constant dense<0.000000e+00> : vector<128x64xf32>
      %114 = tpu.matmul %111, %113, %cst_47 {dimension_numbers = #tpu.dot_dimension_numbers<[1], [0], [0], [1], [0, 0, 1, 1], [], []>} : vector<128x32xbf16>, vector<32x64xbf16>, vector<128x64xf32> -> vector<128x64xf32>
      %c0_48 = arith.constant 0 : index
      %c0_49 = arith.constant 0 : index
      %c0_50 = arith.constant 0 : index
      %115 = vector.load %arg12[%c0_48, %c0_49, %c0_50] : memref<1x1x64xf32, #tpu.memory_space<vmem>>, vector<1x1x64xf32>
      %116 = vector.shape_cast %115 : vector<1x1x64xf32> to vector<1x64xf32>
      %117 = vector.broadcast %116 : vector<1x64xf32> to vector<128x64xf32>
      %118 = arith.addf %114, %117 : vector<128x64xf32>
      %119 = vector.extract_strided_slice %118 {offsets = [0, 0], sizes = [128, 32], strides = [1, 1]} : vector<128x64xf32> to vector<128x32xf32>
      %120 = arith.negf %119 : vector<128x32xf32>
      %121 = math.exp %120 : vector<128x32xf32>
      %cst_51 = arith.constant 1.000000e+00 : f32
      %122 = vector.broadcast %cst_51 : f32 to vector<128x32xf32>
      %123 = arith.addf %122, %121 : vector<128x32xf32>
      %124 = arith.divf %122, %123 : vector<128x32xf32>
      %125 = arith.mulf %119, %124 : vector<128x32xf32>
      %c0_52 = arith.constant 0 : index
      %c0_53 = arith.constant 0 : index
      %c0_54 = arith.constant 0 : index
      %126 = vector.load %arg13[%c0_52, %c0_53, %c0_54] : memref<1x32x32xf32, #tpu.memory_space<vmem>>, vector<1x32x32xf32>
      %127 = vector.shape_cast %126 : vector<1x32x32xf32> to vector<32x32xf32>
      %cst_55 = arith.constant dense<0.000000e+00> : vector<128x32xf32>
      %128 = tpu.matmul %125, %127, %cst_55 {dimension_numbers = #tpu.dot_dimension_numbers<[1], [0], [0], [1], [0, 0, 1, 1], [], []>} : vector<128x32xf32>, vector<32x32xf32>, vector<128x32xf32> -> vector<128x32xf32>
      %129 = arith.truncf %128 : vector<128x32xf32> to vector<128x32xbf16>
      %c0_56 = arith.constant 0 : index
      %c0_57 = arith.constant 0 : index
      %130 = vector.load %arg21[%c0_56, %c0_57] : memref<128x64xbf16, #tpu.memory_space<vmem>>, vector<128x32xbf16>
      tpu.vector_store %arg21[%c0_56, %c0_57], %129 {strides = array<i32>} : memref<128x64xbf16, #tpu.memory_space<vmem>>, vector<128x32xbf16>,
      %131 = vector.extract_strided_slice %118 {offsets = [0, 32], sizes = [128, 32], strides = [1, 1]} : vector<128x64xf32> to vector<128x32xf32>
      %132 = arith.truncf %131 : vector<128x32xf32> to vector<128x32xbf16>
      %c0_58 = arith.constant 0 : index
      %c32 = arith.constant 32 : index
      %133 = vector.load %arg21[%c0_58, %c32] : memref<128x64xbf16, #tpu.memory_space<vmem>>, vector<128x32xbf16>
      tpu.vector_store %arg21[%c0_58, %c32], %132 {strides = array<i32>} : memref<128x64xbf16, #tpu.memory_space<vmem>>, vector<128x32xbf16>,
    } else {
    }
    %c0 = arith.constant 0 : index
    %c0_4 = arith.constant 0 : index
    %10 = vector.load %arg2[%c0, %c0_4] : memref<64x3xf32, #tpu.memory_space<vmem>>, vector<64x3xf32>
    %c0_5 = arith.constant 0 : index
    %c0_6 = arith.constant 0 : index
    %11 = vector.load %arg4[%c0_5, %c0_6] : memref<64x1xi32, #tpu.memory_space<vmem>>, vector<64x1xi32>
    %12 = tpu.iota {dimensions = array<i32: 0>} : vector<64x1xi32>
    %13 = vector.broadcast %1 : i32 to vector<64x1xi32>
    %14 = arith.addi %12, %13 : vector<64x1xi32>
    %cst = arith.constant 0.000000e+00 : f32
    %15 = vector.broadcast %cst : f32 to vector<256x64xf32>
    %c0_7 = arith.constant 0 : index
    %c0_8 = arith.constant 0 : index
    %16 = vector.load %arg24[%c0_7, %c0_8] : memref<256x64xf32, #tpu.memory_space<vmem>>, vector<256x64xf32>
    tpu.vector_store %arg24[%c0_7, %c0_8], %15 {strides = array<i32>} : memref<256x64xf32, #tpu.memory_space<vmem>>, vector<256x64xf32>,
    %c0_i32_9 = arith.constant 0 : i32
    %c128_i32 = arith.constant 128 : i32
    %17 = arith.muli %c0_i32_9, %c128_i32 : i32
    %18 = tpu.assume_multiple %17, 128 : i32
    %c0_10 = arith.constant 0 : index
    %19 = arith.index_cast %18 : i32 to index
    %20 = vector.load %arg3[%c0_10, %19] : memref<3x128xf32, #tpu.memory_space<vmem>>, vector<3x128xf32>
    %c0_11 = arith.constant 0 : index
    %21 = arith.index_cast %18 : i32 to index
    %22 = vector.load %arg5[%c0_11, %21] : memref<1x128xi32, #tpu.memory_space<vmem>>, vector<1x128xi32>
    %23 = tpu.iota {dimensions = array<i32: 1>} : vector<1x128xi32>
    %24 = vector.broadcast %18 : i32 to vector<1x128xi32>
    %25 = arith.addi %23, %24 : vector<1x128xi32>
    %26 = vector.extract_strided_slice %20 {offsets = [0, 0], sizes = [1, 128], strides = [1, 1]} : vector<3x128xf32> to vector<1x128xf32>
    %27 = vector.extract_strided_slice %10 {offsets = [0, 0], sizes = [64, 1], strides = [1, 1]} : vector<64x3xf32> to vector<64x1xf32>
    %28 = vector.broadcast %26 : vector<1x128xf32> to vector<64x128xf32>
    %29 = vector.broadcast %27 : vector<64x1xf32> to vector<64x128xf32>
    %30 = arith.subf %28, %29 : vector<64x128xf32>
    %31 = vector.extract_strided_slice %20 {offsets = [1, 0], sizes = [1, 128], strides = [1, 1]} : vector<3x128xf32> to vector<1x128xf32>
    %32 = vector.extract_strided_slice %10 {offsets = [0, 1], sizes = [64, 1], strides = [1, 1]} : vector<64x3xf32> to vector<64x1xf32>
    %33 = vector.broadcast %31 : vector<1x128xf32> to vector<64x128xf32>
    %34 = vector.broadcast %32 : vector<64x1xf32> to vector<64x128xf32>
    %35 = arith.subf %33, %34 : vector<64x128xf32>
    %36 = vector.extract_strided_slice %20 {offsets = [2, 0], sizes = [1, 128], strides = [1, 1]} : vector<3x128xf32> to vector<1x128xf32>
    %37 = vector.extract_strided_slice %10 {offsets = [0, 2], sizes = [64, 1], strides = [1, 1]} : vector<64x3xf32> to vector<64x1xf32>
    %38 = vector.broadcast %36 : vector<1x128xf32> to vector<64x128xf32>
    %39 = vector.broadcast %37 : vector<64x1xf32> to vector<64x128xf32>
    %40 = arith.subf %38, %39 : vector<64x128xf32>
    %41 = arith.mulf %30, %30 : vector<64x128xf32>
    %42 = arith.mulf %35, %35 : vector<64x128xf32>
    %43 = arith.addf %41, %42 : vector<64x128xf32>
    %44 = arith.mulf %40, %40 : vector<64x128xf32>
    %45 = arith.addf %43, %44 : vector<64x128xf32>
    %46 = vector.broadcast %22 : vector<1x128xi32> to vector<64x128xi32>
    %47 = vector.broadcast %11 : vector<64x1xi32> to vector<64x128xi32>
    %48 = arith.cmpi eq, %46, %47 : vector<64x128xi32>
    %49 = vector.broadcast %14 : vector<64x1xi32> to vector<64x128xi32>
    %50 = vector.broadcast %25 : vector<1x128xi32> to vector<64x128xi32>
    %51 = arith.cmpi ne, %49, %50 : vector<64x128xi32>
    %cst_12 = arith.constant 2.500000e+01 : f32
    %52 = vector.broadcast %cst_12 : f32 to vector<64x128xf32>
    %53 = arith.cmpf olt, %45, %52 : vector<64x128xf32>
    %54 = arith.andi %51, %53 : vector<64x128xi1>
    %55 = arith.andi %48, %54 : vector<64x128xi1>
    %cst_13 = arith.constant 9.99999996E-13 : f32
    %56 = vector.broadcast %cst_13 : f32 to vector<64x128xf32>
    %57 = arith.addf %45, %56 : vector<64x128xf32>
    %58 = math.rsqrt %57 : vector<64x128xf32>
    %59 = arith.mulf %45, %58 : vector<64x128xf32>
    %cst_14 = arith.constant 0.628318548 : f32
    %60 = vector.broadcast %cst_14 : f32 to vector<64x128xf32>
    %61 = arith.mulf %60, %59 : vector<64x128xf32>
    %62 = math.cos %61 : vector<64x128xf32>
    %cst_15 = arith.constant 1.000000e+00 : f32
    %63 = vector.broadcast %cst_15 : f32 to vector<64x128xf32>
    %64 = arith.addf %62, %63 : vector<64x128xf32>
    %cst_16 = arith.constant 5.000000e-01 : f32
    %65 = vector.broadcast %cst_16 : f32 to vector<64x128xf32>
    %66 = arith.mulf %65, %64 : vector<64x128xf32>
    %cst_17 = arith.constant 0.000000e+00 : f32
    %67 = vector.broadcast %cst_17 : f32 to vector<64x128xf32>
    %68 = arith.select %55, %66, %67 : vector<64x128xi1>, vector<64x128xf32>
    %69 = arith.truncf %68 : vector<64x128xf32> to vector<64x128xbf16>
    %c0_18 = arith.constant 0 : index
    %c0_19 = arith.constant 0 : index
    %70 = vector.load %arg23[%c0_18, %c0_19] : memref<256x128xbf16, #tpu.memory_space<vmem>>, vector<64x128xbf16>
    tpu.vector_store %arg23[%c0_18, %c0_19], %69 {strides = array<i32>} : memref<256x128xbf16, #tpu.memory_space<vmem>>, vector<64x128xbf16>,
    %71 = arith.mulf %68, %30 : vector<64x128xf32>
    %72 = arith.truncf %71 : vector<64x128xf32> to vector<64x128xbf16>
    %c64 = arith.constant 64 : index
    %c0_20 = arith.constant 0 : index
    %73 = vector.load %arg23[%c64, %c0_20] : memref<256x128xbf16, #tpu.memory_space<vmem>>, vector<64x128xbf16>
    tpu.vector_store %arg23[%c64, %c0_20], %72 {strides = array<i32>} : memref<256x128xbf16, #tpu.memory_space<vmem>>, vector<64x128xbf16>,
    %74 = arith.mulf %68, %35 : vector<64x128xf32>
    %75 = arith.truncf %74 : vector<64x128xf32> to vector<64x128xbf16>
    %c128 = arith.constant 128 : index
    %c0_21 = arith.constant 0 : index
    %76 = vector.load %arg23[%c128, %c0_21] : memref<256x128xbf16, #tpu.memory_space<vmem>>, vector<64x128xbf16>
    tpu.vector_store %arg23[%c128, %c0_21], %75 {strides = array<i32>} : memref<256x128xbf16, #tpu.memory_space<vmem>>, vector<64x128xbf16>,
    %77 = arith.mulf %68, %40 : vector<64x128xf32>
    %78 = arith.truncf %77 : vector<64x128xf32> to vector<64x128xbf16>
    %c192 = arith.constant 192 : index
    %c0_22 = arith.constant 0 : index
    %79 = vector.load %arg23[%c192, %c0_22] : memref<256x128xbf16, #tpu.memory_space<vmem>>, vector<64x128xbf16>
    tpu.vector_store %arg23[%c192, %c0_22], %78 {strides = array<i32>} : memref<256x128xbf16, #tpu.memory_space<vmem>>, vector<64x128xbf16>,
    %80 = arith.index_cast %18 : i32 to index
    %c0_23 = arith.constant 0 : index
    %81 = vector.load %arg21[%80, %c0_23] : memref<128x64xbf16, #tpu.memory_space<vmem>>, vector<128x64xbf16>
    %c0_24 = arith.constant 0 : index
    %c0_25 = arith.constant 0 : index
    %82 = vector.load %arg24[%c0_24, %c0_25] : memref<256x64xf32, #tpu.memory_space<vmem>>, vector<256x64xf32>
    %c0_26 = arith.constant 0 : index
    %c0_27 = arith.constant 0 : index
    %83 = vector.load %arg23[%c0_26, %c0_27] : memref<256x128xbf16, #tpu.memory_space<vmem>>, vector<256x128xbf16>
    %cst_28 = arith.constant dense<0.000000e+00> : vector<256x64xf32>
    %84 = tpu.matmul %83, %81, %cst_28 {dimension_numbers = #tpu.dot_dimension_numbers<[1], [0], [0], [1], [0, 0, 1, 1], [], []>} : vector<256x128xbf16>, vector<128x64xbf16>, vector<256x64xf32> -> vector<256x64xf32>
    %85 = arith.addf %82, %84 : vector<256x64xf32>
    %c0_29 = arith.constant 0 : index
    %c0_30 = arith.constant 0 : index
    %86 = vector.load %arg24[%c0_29, %c0_30] : memref<256x64xf32, #tpu.memory_space<vmem>>, vector<256x64xf32>
    tpu.vector_store %arg24[%c0_29, %c0_30], %85 {strides = array<i32>} : memref<256x64xf32, #tpu.memory_space<vmem>>, vector<256x64xf32>,
    %c1_i32 = arith.constant 1 : i32
    %c0_31 = arith.constant 0 : index
    %c0_32 = arith.constant 0 : index
    %87 = vector.load %arg24[%c0_31, %c0_32] : memref<256x64xf32, #tpu.memory_space<vmem>>, vector<256x64xf32>
    %88 = arith.index_cast %1 : i32 to index
    %c0_33 = arith.constant 0 : index
    %89 = vector.load %arg20[%88, %c0_33] : memref<128x32xf32, #tpu.memory_space<vmem>>, vector<64x32xf32>
    %90 = vector.extract_strided_slice %87 {offsets = [0, 0], sizes = [64, 32], strides = [1, 1]} : vector<256x64xf32> to vector<64x32xf32>
    %91 = arith.addf %89, %90 : vector<64x32xf32>
    %c0_34 = arith.constant 0 : index
    %c0_35 = arith.constant 0 : index
    %c0_36 = arith.constant 0 : index
    %92 = vector.load %arg14[%c0_34, %c0_35, %c0_36] : memref<1x1x32xf32, #tpu.memory_space<vmem>>, vector<1x1x32xf32>
    %93 = vector.shape_cast %92 : vector<1x1x32xf32> to vector<1x32xf32>
    %94 = vector.broadcast %93 : vector<1x32xf32> to vector<64x32xf32>
    %95 = arith.addf %91, %94 : vector<64x32xf32>
    %96 = arith.index_cast %1 : i32 to index
    %c0_37 = arith.constant 0 : index
    %97 = vector.load %arg20[%96, %c0_37] : memref<128x32xf32, #tpu.memory_space<vmem>>, vector<64x32xf32>
    tpu.vector_store %arg20[%96, %c0_37], %95 {strides = array<i32>} : memref<128x32xf32, #tpu.memory_space<vmem>>, vector<64x32xf32>,
    %98 = vector.extract_strided_slice %87 {offsets = [64, 32], sizes = [64, 32], strides = [1, 1]} : vector<256x64xf32> to vector<64x32xf32>
    %99 = vector.extract_strided_slice %87 {offsets = [128, 32], sizes = [64, 32], strides = [1, 1]} : vector<256x64xf32> to vector<64x32xf32>
    %100 = vector.extract_strided_slice %87 {offsets = [192, 32], sizes = [64, 32], strides = [1, 1]} : vector<256x64xf32> to vector<64x32xf32>
    %101 = tpu.concatenate %98, %99, %100 in 1 : vector<64x32xf32>, vector<64x32xf32>, vector<64x32xf32> -> vector<64x96xf32>
    %102 = arith.index_cast %1 : i32 to index
    %c0_38 = arith.constant 0 : index
    %103 = vector.load %arg22[%102, %c0_38] : memref<128x96xf32, #tpu.memory_space<vmem>>, vector<64x96xf32>
    %104 = arith.addf %103, %101 : vector<64x96xf32>
    %105 = arith.index_cast %1 : i32 to index
    %c0_39 = arith.constant 0 : index
    %106 = vector.load %arg22[%105, %c0_39] : memref<128x96xf32, #tpu.memory_space<vmem>>, vector<64x96xf32>
    tpu.vector_store %arg22[%105, %c0_39], %104 {strides = array<i32>} : memref<128x96xf32, #tpu.memory_space<vmem>>, vector<64x96xf32>,
    %c1_i32_40 = arith.constant 1 : i32
    %107 = arith.cmpi eq, %arg0, %c1_i32_40 : i32
    %108 = arith.extui %107 : i1 to i32
    %c0_i32_41 = arith.constant 0 : i32
    %109 = arith.cmpi ne, %108, %c0_i32_41 : i32
    scf.if %109 {
      %c0_42 = arith.constant 0 : index
      %c0_43 = arith.constant 0 : index
      %110 = vector.load %arg15[%c0_42, %c0_43] : memref<32x32xf32, #tpu.memory_space<vmem>>, vector<32x32xf32>
      %cst_44 = arith.constant dense<0.000000e+00> : vector<64x32xf32>
      %111 = tpu.matmul %95, %110, %cst_44 {dimension_numbers = #tpu.dot_dimension_numbers<[1], [0], [0], [1], [0, 0, 1, 1], [], []>} : vector<64x32xf32>, vector<32x32xf32>, vector<64x32xf32> -> vector<64x32xf32>
      %c0_45 = arith.constant 0 : index
      %c0_46 = arith.constant 0 : index
      %112 = vector.load %arg16[%c0_45, %c0_46] : memref<1x32xf32, #tpu.memory_space<vmem>>, vector<1x32xf32>
      %113 = vector.broadcast %112 : vector<1x32xf32> to vector<64x32xf32>
      %114 = arith.addf %111, %113 : vector<64x32xf32>
      %115 = arith.negf %114 : vector<64x32xf32>
      %116 = math.exp %115 : vector<64x32xf32>
      %cst_47 = arith.constant 1.000000e+00 : f32
      %117 = vector.broadcast %cst_47 : f32 to vector<64x32xf32>
      %118 = arith.addf %117, %116 : vector<64x32xf32>
      %119 = arith.divf %117, %118 : vector<64x32xf32>
      %120 = arith.mulf %114, %119 : vector<64x32xf32>
      %121 = tpu.concatenate %120, %104 in 1 : vector<64x32xf32>, vector<64x96xf32> -> vector<64x128xf32>
      %c0_48 = arith.constant 0 : index
      %c0_49 = arith.constant 0 : index
      %122 = vector.load %arg17[%c0_48, %c0_49] : memref<128x128xf32, #tpu.memory_space<vmem>>, vector<128x128xf32>
      %cst_50 = arith.constant dense<0.000000e+00> : vector<64x128xf32>
      %123 = tpu.matmul %121, %122, %cst_50 {dimension_numbers = #tpu.dot_dimension_numbers<[1], [0], [0], [1], [0, 0, 1, 1], [], []>} : vector<64x128xf32>, vector<128x128xf32>, vector<64x128xf32> -> vector<64x128xf32>
      %c0_51 = arith.constant 0 : index
      %c0_52 = arith.constant 0 : index
      %124 = vector.load %arg18[%c0_51, %c0_52] : memref<1x128xf32, #tpu.memory_space<vmem>>, vector<1x128xf32>
      %125 = vector.broadcast %124 : vector<1x128xf32> to vector<64x128xf32>
      %126 = arith.addf %123, %125 : vector<64x128xf32>
      %c0_53 = arith.constant 0 : index
      %c0_54 = arith.constant 0 : index
      %127 = vector.load %arg19[%c0_53, %c0_54] : memref<64x128xf32, #tpu.memory_space<vmem>>, vector<64x128xf32>
      tpu.vector_store %arg19[%c0_53, %c0_54], %126 {strides = array<i32>} : memref<64x128xf32, #tpu.memory_space<vmem>>, vector<64x128xf32>,
    } else {
    }
    return
  }
  func.func @transform_0(%arg0: i32, %arg1: i32) -> (i32, i32) {
    %c0_i32 = arith.constant 0 : i32
    %c0_i32_0 = arith.constant 0 : i32
    return %arg1, %c0_i32 : i32, i32
  }
  func.func @transform_1(%arg0: i32, %arg1: i32) -> (i32, i32) {
    %c0_i32 = arith.constant 0 : i32
    %c0_i32_0 = arith.constant 0 : i32
    %c0_i32_1 = arith.constant 0 : i32
    return %c0_i32, %c0_i32_0 : i32, i32
  }
  func.func @transform_2(%arg0: i32, %arg1: i32) -> (i32, i32) {
    %c0_i32 = arith.constant 0 : i32
    %c0_i32_0 = arith.constant 0 : i32
    return %arg1, %c0_i32 : i32, i32
  }
  func.func @transform_3(%arg0: i32, %arg1: i32) -> (i32, i32) {
    %c0_i32 = arith.constant 0 : i32
    %c0_i32_0 = arith.constant 0 : i32
    %c0_i32_1 = arith.constant 0 : i32
    return %c0_i32, %c0_i32_0 : i32, i32
  }
  func.func @transform_4(%arg0: i32, %arg1: i32) -> (i32, i32) {
    %c0_i32 = arith.constant 0 : i32
    %c0_i32_0 = arith.constant 0 : i32
    %c0_i32_1 = arith.constant 0 : i32
    return %c0_i32, %c0_i32_0 : i32, i32
  }
  func.func @transform_5(%arg0: i32, %arg1: i32) -> (i32, i32) {
    %c0_i32 = arith.constant 0 : i32
    %c0_i32_0 = arith.constant 0 : i32
    %c0_i32_1 = arith.constant 0 : i32
    return %c0_i32, %c0_i32_0 : i32, i32
  }
  func.func @transform_6(%arg0: i32, %arg1: i32) -> (i32, i32) {
    %c0_i32 = arith.constant 0 : i32
    %c0_i32_0 = arith.constant 0 : i32
    %c0_i32_1 = arith.constant 0 : i32
    return %c0_i32, %c0_i32_0 : i32, i32
  }
  func.func @transform_7(%arg0: i32, %arg1: i32) -> (i32, i32) {
    %c0_i32 = arith.constant 0 : i32
    %c0_i32_0 = arith.constant 0 : i32
    %c0_i32_1 = arith.constant 0 : i32
    return %c0_i32, %c0_i32_0 : i32, i32
  }
  func.func @transform_8(%arg0: i32, %arg1: i32) -> (i32, i32) {
    %c0_i32 = arith.constant 0 : i32
    %c0_i32_0 = arith.constant 0 : i32
    %c0_i32_1 = arith.constant 0 : i32
    return %c0_i32, %c0_i32_0 : i32, i32
  }
  func.func @transform_9(%arg0: i32, %arg1: i32) -> (i32, i32, i32) {
    %c0_i32 = arith.constant 0 : i32
    %c0_i32_0 = arith.constant 0 : i32
    %c0_i32_1 = arith.constant 0 : i32
    return %arg0, %c0_i32, %c0_i32_0 : i32, i32, i32
  }
  func.func @transform_10(%arg0: i32, %arg1: i32) -> (i32, i32, i32) {
    %c0_i32 = arith.constant 0 : i32
    %c0_i32_0 = arith.constant 0 : i32
    %c0_i32_1 = arith.constant 0 : i32
    return %arg0, %c0_i32, %c0_i32_0 : i32, i32, i32
  }
  func.func @transform_11(%arg0: i32, %arg1: i32) -> (i32, i32, i32) {
    %c0_i32 = arith.constant 0 : i32
    %c0_i32_0 = arith.constant 0 : i32
    %c0_i32_1 = arith.constant 0 : i32
    return %arg0, %c0_i32, %c0_i32_0 : i32, i32, i32
  }
  func.func @transform_12(%arg0: i32, %arg1: i32) -> (i32, i32, i32) {
    %c0_i32 = arith.constant 0 : i32
    %c0_i32_0 = arith.constant 0 : i32
    %c0_i32_1 = arith.constant 0 : i32
    return %arg0, %c0_i32, %c0_i32_0 : i32, i32, i32
  }
  func.func @transform_13(%arg0: i32, %arg1: i32) -> (i32, i32) {
    %c0_i32 = arith.constant 0 : i32
    %c0_i32_0 = arith.constant 0 : i32
    %c0_i32_1 = arith.constant 0 : i32
    return %c0_i32, %c0_i32_0 : i32, i32
  }
  func.func @transform_14(%arg0: i32, %arg1: i32) -> (i32, i32) {
    %c0_i32 = arith.constant 0 : i32
    %c0_i32_0 = arith.constant 0 : i32
    %c0_i32_1 = arith.constant 0 : i32
    return %c0_i32, %c0_i32_0 : i32, i32
  }
  func.func @transform_15(%arg0: i32, %arg1: i32) -> (i32, i32) {
    %c0_i32 = arith.constant 0 : i32
    %c0_i32_0 = arith.constant 0 : i32
    %c0_i32_1 = arith.constant 0 : i32
    return %c0_i32, %c0_i32_0 : i32, i32
  }
  func.func @transform_16(%arg0: i32, %arg1: i32) -> (i32, i32) {
    %c0_i32 = arith.constant 0 : i32
    %c0_i32_0 = arith.constant 0 : i32
    %c0_i32_1 = arith.constant 0 : i32
    return %c0_i32, %c0_i32_0 : i32, i32
  }
  func.func @transform_17(%arg0: i32, %arg1: i32) -> (i32, i32) {
    %c0_i32 = arith.constant 0 : i32
    %c0_i32_0 = arith.constant 0 : i32
    return %arg1, %c0_i32 : i32, i32
  }
}

</mosaic_0001>

<bundles_post_ra>
// kernel: tpu_custom_call.1
= control target key start
LH: loop header
LB: loop body
LE: loop exit
PB: predicated region body
PF: predicated region fallthrough
CT: control target
= control target key end

     0   :  { %s8791_s0 = inlined_call_operand.vmem [shape: f32[128,3], index: 0, kind: input, shape index: {}]   ;;  %s8792_s1 = inlined_call_operand.vmem [shape: f32[3,128], index: 1, kind: input, shape index: {}]   ;;  %s8793_s2 = inlined_call_operand.vmem [shape: s32[128,1], index: 2, kind: input, shape index: {}]   ;;  %s8794_s3 = inlined_call_operand.vmem [shape: s32[1,128], index: 3, kind: input, shape index: {}]   ;;  %s8795_s4 = inlined_call_operand.vmem [shape: f32[128,5], index: 4, kind: input, shape index: {}]   ;;  %s8796_s5 = inlined_call_operand.vmem [shape: f32[128,1], index: 5, kind: input, shape index: {}]   ;;  %s8797_s6 = inlined_call_operand.vmem [shape: f32[5,32], index: 6, kind: input, shape index: {}]   ;;  %s8798_s7 = inlined_call_operand.vmem [shape: f32[1,32], index: 7, kind: input, shape index: {}]   ;;  %s8799_s8 = inlined_call_operand.vmem [shape: f32[1,32], index: 8, kind: input, shape index: {}]   ;;  %s8800_s9 = inlined_call_operand.vmem [shape: bf16[2,32,64], index: 9, kind: input, shape index: {}]   ;;  %s8801_s10 = inlined_call_operand.vmem [shape: f32[2,1,64], index: 10, kind: input, shape index: {}]   ;;  %s8802_s11 = inlined_call_operand.vmem [shape: f32[2,32,32], index: 11, kind: input, shape index: {}]   ;;  %s8803_s12 = inlined_call_operand.vmem [shape: f32[2,1,32], index: 12, kind: input, shape index: {}]   ;;  %s8804_s13 = inlined_call_operand.vmem [shape: f32[32,32], index: 13, kind: input, shape index: {}]   ;;  %s8805_s14 = inlined_call_operand.vmem [shape: f32[1,32], index: 14, kind: input, shape index: {}]   ;;  %s8806_s15 = inlined_call_operand.vmem [shape: f32[128,128], index: 15, kind: input, shape index: {}]   ;;  %s8807_s16 = inlined_call_operand.vmem [shape: f32[1,128], index: 16, kind: input, shape index: {}]   ;;  %s8808_s17 = inlined_call_operand.hbm [shape: f32[128,128], index: 17, kind: output, shape index: {}]  }
   0x1   :  { %8901 = sst [smem:[#allocation58_spill]] %s8791_s0 }
   0x2   :  { %8902 = sst [smem:[#allocation59_spill]] %s8792_s1 }
   0x3   :  { %8903 = sst [smem:[#allocation60_spill]] %s8794_s3 }
   0x4   :  { %8904 = sst [smem:[#allocation61_spill]] %s8804_s13 }
   0x5   :  { %8905 = sst [smem:[#allocation62_spill]] %s8805_s14 }
   0x6   :  { %8906 = sst [smem:[#allocation63_spill]] %s8806_s15 }
   0x7   :  { %8907 = sst [smem:[#allocation64_spill]] %s8807_s16 }
   0x8   :  { %8908 = sst [smem:[#allocation65_spill]] %s8808_s17 }
   0x9   :  { %22 = vsyncpa [#allocation8], 0 }
   0xa   :  { %24 = vsyncpa [#allocation8 + $0x1], 0  ;;  %s5658_s24 = smov 0   ;;  %s5660_s25 = smov 0  }
   0xb   :  { %s5662_s26 = smov 0   ;;  %s5664_s27 = smov 0  }
   0xc   :  { %s5666_s28 = smov 0   ;;  %s5668_s29 = smov 0  }
   0xd   :  { %s5670_s0 = smov 0   ;;  %s5672_s30 = smov 0  }
   0xe LB: > { %8909 = sst [smem:[#allocation10_spill]] %s5521_s24  ;;  %s4712_s18 = sadd.s32 4294967295, %s5549_s30   ;;  %s5549_s30 = sphi %s5672_s30, %s30_s30   ;;  %s5545_s0 = sphi %s5670_s0, %s9125_s0   ;;  %s5541_s29 = sphi %s5668_s29, %s9124_s29   ;;  %s5537_s28 = sphi %s5666_s28, %s9123_s28   ;;  %s5533_s27 = sphi %s5664_s27, %s9122_s27   ;;  %s5529_s26 = sphi %s5662_s26, %s9121_s26   ;;  %s5525_s25 = sphi %s5660_s25, %s9120_s25   ;;  %s5521_s24 = sphi %s5658_s24, %s9119_s24  }
   0xf   : > { %8910 = sst [smem:[#allocation11_spill]] %s5525_s25  ;;  %s4713_s19 = sadd.s32 4294967294, %s5549_s30  }
  0x10   : > { %8911 = sst [smem:[#allocation12_spill]] %s5529_s26  ;;  %s39_s1 = sadd.s32 1, %s5541_s29 }
  0x11   : > { %8912 = sst [smem:[#allocation13_spill]] %s5541_s29  ;;  %s42_s20 = sadd.s32 1, %s5545_s0 }
  0x12   : > { %8913 = sst [smem:[#allocation14_spill]] %s5545_s0  ;;  %p40_p0 = scmp.ge.s32.totalorder %s39_s1, 2 }
  0x13   : > { %8914 = sst [smem:[#allocation15_spill]] %s5549_s30  ;;  %s436_s21 = sadd.s32 1, %s5529_s26 }
  0x14   : > { %p446_p1 = scmp.ne.s32.totalorder %s5529_s26, %s5525_s25  ;;  %p447_p2 = scmp.eq.s32.totalorder %s4712_s18, 3 }
  0x15   : > { %s9127_s1 = smov (%p40_p0, %s39_s1), 0  ;;  %s9129_s20 = smov (!%p40_p0, %s42_s20), %s5545_s0 }
  0x16   : > { %8915 = sst [smem:[#allocation16_spill]] %s9127_s1  ;;  %s433_s22 = ssub.s32 %s5541_s29, %s9127_s1 }
  0x17   : > { %p5710_p3 = por %p447_p2, %p446_p1  ;;  %p44_p4 = scmp.ge.s32.totalorder %s9129_s20, 2 }
  0x18   : > { %p434_p5 = scmp.eq.s32.totalorder %s433_s22, 0  ;;  %p452_p6 = scmp.ne.s32.totalorder %s5525_s25, %s5521_s24 }
  0x19   : > { %s8916_s23 = scalar_select %p5710_p3, 1, 0 }
  0x1a   : > { %p453_p7 = scmp.eq.s32.totalorder %s4713_s19, 3  ;;  %s9131_s20 = smov (%p44_p4, %s9129_s20), 0 }
  0x1b   : > { %8917 = sst [smem:[#allocation17_spill]] %s8916_s23  ;;  %p4716_p9 = scmp.ge.s32.totalorder %s5549_s30, 1 }
  0x1c   : > { %8918 = sst [smem:[#allocation18_spill]] %s9131_s20  ;;  %p5721_p8 = por %p453_p7, %p452_p6 }
  0x1d   : > { %s5719_s17 = scalar_select %p434_p5, %s5529_s26, %s436_s21  }
  0x1e   : > { %s8920_s16 = scalar_select %p5721_p8, 1, 0 }
  0x1f   : > { %8919 = sst [smem:[#allocation19_spill]] %s5719_s17  ;;  %p550_p10 = scmp.lt.s32.totalorder %s5549_s30, 5 }
  0x20   : > { %8921 = sst [smem:[#allocation20_spill]] %s8920_s16 }
  0x21   : > { %p551_p11 = pnand %p4716_p9, %p550_p10 }
  0x23   : > { %554 = sbr.rel (%p551_p11) target bundleno = 1849 (0x739), region = 88 }
  0x28   : > { %s8815_s18 = sand.u32 1, %s5525_s25   ;;  %s4718_s19 = sshll.u32 %s5533_s27, 3 }
  0x29   : > { %s4717_s21 = sshll.u32 %s8815_s18, 6  ;;  %p624_p12 = scmp.lt.s32.totalorder %s4718_s19, 15 }
  0x2a   : > { %p635_p13 = scmp.lt.s32.totalorder %s5537_s28, 1  ;;  %s5736_s1 = sshll.u32 %s5533_s27, 6 }
  0x2b   : > { %s9133_s19 = smov (!%p624_p12, %s4718_s19), 15  ;;  %8922 = sst [smem:[#allocation21_spill]] %s5736_s1 }
  0x2c   : > { %s5733_s22 = scalar_select %p635_p13, %s5537_s28, 1 }
  0x2d   : > { %s4719_s20 = sshll.u32 %s9133_s19, 3  ;;  %s8923_s17 = sld [smem:[#allocation58_spill]] }
  0x2e   : > { %s5746_s24 = scalar_lea.vmem %s8793_s2, %s4719_s20  ;;  %s4951_s30 = sshll.u32 %s5733_s22, 4 }
  0x2f   : > { %s642_s14 = scalar_lea.vmem %s8801_s10, %s5733_s22  ;;  %s5756_s19 = scalar_lea.vmem %s8800_s9, %s4951_s30 }
  0x30   : > { %s4952_s3 = sshll.u32 %s5733_s22, 5  ;;  %p654_p0 = scmp.eq.s32.totalorder %s5537_s28, 0 }
  0x31   : > { %p655_p1 = scmp.eq.s32.totalorder %s5533_s27, 0  ;;  %s5770_s25 = scalar_lea.vmem [#allocation7], %s4717_s21 }
  0x33   : > { %s5741_s26 = scalar_lea.vmem %s8923_s17, %s4719_s20  ;;  %s5762_s17 = scalar_lea.vmem %s8802_s11, %s4952_s3 }
  0x34   : > { %s650_s20 = scalar_lea.vmem %s8803_s12, %s5733_s22  ;;  %p656_p2 = pnand %p655_p1, %p654_p0 }
  0x36   : > { %659 = sbr.rel (%p656_p2) target bundleno = 294 (0x126), region = 92 }
  0x3b   : > { %v676_v0 = vld [vmem:[%s8797_s6] sm:$0x1f]  ;;  %vm842_vm0 = vcmask 1044480   ;;  %v5551_v1 = vmov 0   ;;  %v679_v3 = vld [vmem:[%s8796_s5 + $0x10] sm:$0xff]  ;;  %vm793_vm1 = vcmask 39936  }
  0x3c   : > { %5234 = vset.pattern.permute.xlu2 %v5551_v1  ;;  %5233 = vset.pattern.permute.xlu1 %v5551_v1  ;;  %v681_v2 = vld [vmem:[%s8796_s5 + $0x20] sm:$0xff]  ;;  %v682_v9 = vld [vmem:[%s8796_s5 + $0x28] sm:$0xff]  ;;  %v680_v10 = vld [vmem:[%s8796_s5 + $0x18] sm:$0xff]  ;;  %vm1251_vm5 = vcmask 261120  }
  0x3d   : > { %5232 = vset.pattern.permute.xlu0 %v5551_v1  ;;  %4727 = vmatpush.msk.msra.mxu0 %vm842_vm0, %v676_v0  ;;  %v677_v4 = vld [vmem:[%s8796_s5] sm:$0xff]  ;;  %v678_v11 = vld [vmem:[%s8796_s5 + $0x8] sm:$0xff]  ;;  %v684_v17 = vld [vmem:[%s8796_s5 + $0x38] sm:$0xff] }
  0x3e   : > { %5075 = vmatpush.msk.msra.mxu1 %vm842_vm0, %v676_v0  ;;  %5076 = vmatpush.msk.msra.mxu2 %vm842_vm0, %v676_v0  ;;  %v660_v5 = vld [vmem:[%s8795_s4] sm:$0xff]  ;;  %v661_v12 = vld [vmem:[%s8795_s4 + $0x8] sm:$0xff]  ;;  %v683_v18 = vld [vmem:[%s8796_s5 + $0x30] sm:$0xff] }
  0x3f   : > { %v664_v6 = vld [vmem:[%s8795_s4 + $0x20] sm:$0xff]  ;;  %5077 = vmatpush.msk.msra.mxu3 %vm842_vm0, %v676_v0  ;;  %716 = vperm.xlu2 %5234, %v681_v2   ;;  %v665_v13 = vld [vmem:[%s8795_s4 + $0x28] sm:$0xff]  ;;  %v662_v19 = vld [vmem:[%s8795_s4 + $0x10] sm:$0xff] }
  0x40   : > { %v668_v7 = vld [vmem:[%s8795_s4 + $0x40] sm:$0xff]  ;;  %706 = vperm.xlu1 %5233, %v679_v3   ;;  %696 = vperm.xlu0 %5232, %v677_v4   ;;  %v669_v14 = vld [vmem:[%s8795_s4 + $0x48] sm:$0xff]  ;;  %v666_v20 = vld [vmem:[%s8795_s4 + $0x30] sm:$0xff] }
  0x41   : > { %v672_v8 = vld [vmem:[%s8795_s4 + $0x60] sm:$0xff]  ;;  %4728 = vmatmul.msk.f32.vlgmr.msra.gmra.mxu0 %vm793_vm1, %v660_v5  ;;  %4732 = vmatmul.msk.f32.vlgmr.msra.gmra.mxu1 %vm793_vm1, %v664_v6  ;;  %v673_v15 = vld [vmem:[%s8795_s4 + $0x68] sm:$0xff]  ;;  %v670_v21 = vld [vmem:[%s8795_s4 + $0x50] sm:$0xff] }
  0x42   : > { %4736 = vmatmul.msk.f32.vlgmr.msra.gmra.mxu2 %vm793_vm1, %v668_v7  ;;  %4740 = vmatmul.msk.f32.vlgmr.msra.gmra.mxu3 %vm793_vm1, %v672_v8  ;;  %v685_v16 = vld [vmem:[%s8796_s5 + $0x40] sm:$0xff]  ;;  %v674_v22 = vld [vmem:[%s8795_s4 + $0x70] sm:$0xff]  ;;  %v688_v23 = vld [vmem:[%s8796_s5 + $0x58] sm:$0xff] }
  0x43   : > { %v687_v24 = vld [vmem:[%s8796_s5 + $0x50] sm:$0xff]  ;;  %v686_v25 = vld [vmem:[%s8796_s5 + $0x48] sm:$0xff]  ;;  %v663_v26 = vld [vmem:[%s8795_s4 + $0x18] sm:$0xff] }
  0x44   : > { %v667_v27 = vld [vmem:[%s8795_s4 + $0x38] sm:$0xff]  ;;  %v691_v30 = vld [vmem:[%s8796_s5 + $0x70] sm:$0xff]  ;;  %v690_v31 = vld [vmem:[%s8796_s5 + $0x68] sm:$0xff] }
  0x45   : > { %v671_v28 = vld [vmem:[%s8795_s4 + $0x58] sm:$0xff]  ;;  %v689_v32 = vld [vmem:[%s8796_s5 + $0x60] sm:$0xff] }
  0x46   : > { %v675_v29 = vld [vmem:[%s8795_s4 + $0x78] sm:$0xff]  ;;  %v5890_v38 = vld [vmem:[%s8798_s7] ss:$0 sm:$0xff] }
  0x47   : > { %721 = vperm.xlu2 %5234, %v682_v9   ;;  %v692_v33 = vld [vmem:[%s8796_s5 + $0x78] sm:$0xff]  ;;  %v5897_v44 = vld [vmem:[%s8799_s8] ss:$0 sm:$0xff] }
  0x48   : > { %711 = vperm.xlu1 %5233, %v680_v10   ;;  %701 = vperm.xlu0 %5232, %v678_v11  }
  0x49   : > { %4729 = vmatmul.msk.f32.gmra.mxu0 %vm793_vm1, %v661_v12  ;;  %4733 = vmatmul.msk.f32.gmra.mxu1 %vm793_vm1, %v665_v13 }
  0x4a   : > { %4737 = vmatmul.msk.f32.gmra.mxu2 %vm793_vm1, %v669_v14  ;;  %4741 = vmatmul.msk.f32.gmra.mxu3 %vm793_vm1, %v673_v15 }
  0x4f   : > { %736 = vperm.xlu2 %5234, %v685_v16  }
  0x50   : > { %731 = vperm.xlu1 %5233, %v684_v17   ;;  %726 = vperm.xlu0 %5232, %v683_v18  }
  0x51   : > { %4730 = vmatmul.msk.f32.gmra.mxu0 %vm793_vm1, %v662_v19  ;;  %4734 = vmatmul.msk.f32.gmra.mxu1 %vm793_vm1, %v666_v20 }
  0x52   : > { %4738 = vmatmul.msk.f32.gmra.mxu2 %vm793_vm1, %v670_v21  ;;  %4742 = vmatmul.msk.f32.gmra.mxu3 %vm793_vm1, %v674_v22 }
  0x57   : > { %751 = vperm.xlu2 %5234, %v688_v23  }
  0x58   : > { %746 = vperm.xlu1 %5233, %v687_v24   ;;  %741 = vperm.xlu0 %5232, %v686_v25  }
  0x59   : > { %4731 = vmatmul.msk.f32.gmra.mxu0 %vm793_vm1, %v663_v26  ;;  %4735 = vmatmul.msk.f32.gmra.mxu1 %vm793_vm1, %v667_v27 }
  0x5a   : > { %4739 = vmatmul.msk.f32.gmra.mxu2 %vm793_vm1, %v671_v28  ;;  %4743 = vmatmul.msk.f32.gmra.mxu3 %vm793_vm1, %v675_v29 }
  0x5f   : > { %766 = vperm.xlu2 %5234, %v691_v30  }
  0x60   : > { %761 = vperm.xlu1 %5233, %v690_v31   ;;  %756 = vperm.xlu0 %5232, %v689_v32  }
  0x68   : > { %771 = vperm.xlu0 %5232, %v692_v33  }
  0x99   : > { %v717_v34 = vpop.permute.xlu2 %716 }
  0x9a   : > { %v781_v42 = vmul.f32 %v5890_v38, %v717_v34 }
  0xa1   : > { %v722_v35 = vpop.permute.xlu2 %721 }
  0xa2   : > { %v782_v57 = vmul.f32 %v5890_v38, %v722_v35 }
  0xa9   : > { %v737_v39 = vpop.permute.xlu2 %736 }
  0xaa   : > { %v785_v55 = vmul.f32 %v5890_v38, %v737_v39 }
  0xb1   : > { %v5910_v56 = vpop.permute.xlu2 %751 }
  0xb2   : > { %v707_v36 = vpop.permute.xlu1 %706  ;;  %v697_v37 = vpop.permute.xlu0 %696 }
  0xb3   : > { %v777_v43 = vmul.f32 %v5890_v38, %v697_v37  ;;  %v779_v17 = vmul.f32 %v5890_v38, %v707_v36 }
  0xb9   : > { %v767_v15 = vpop.permute.xlu2 %766 }
  0xba   : > { %v712_v40 = vpop.permute.xlu1 %711  ;;  %v702_v41 = vpop.permute.xlu0 %701  ;;  %v5935_v20 = vmul.f32 %v5890_v38, %v767_v15 }
  0xbb   : > { %v778_v58 = vmul.f32 %v5890_v38, %v702_v41  ;;  %v5947_v30 = vmul.f32 %v5890_v38, %v712_v40 }
  0xbe   : > { %v863_v45 = vpop.f32.mrf.mxu0  ;;  %v875_v46 = vpop.f32.mrf.mxu1 }
  0xbf   : > { %v864_v47 = vadd.f32 %v863_v45, %v777_v43  ;;  %v876_v48 = vadd.f32 %v875_v46, %v781_v42 }
  0xc1   : > { %v5900_v49 = vadd.f32 %v5897_v44, %v864_v47  ;;  %v5903_v50 = vadd.f32 %v5897_v44, %v876_v48 }
  0xc2   : > { %v5905_v51 = vpop.permute.xlu1 %731  ;;  %v727_v52 = vpop.permute.xlu0 %726 }
  0xc3   : > { %v4744_v53 = vmul.f32 -1.442695, %v5900_v49  ;;  %v4748_v54 = vmul.f32 -1.442695, %v5903_v50  ;;  %v783_v22 = vmul.f32 %v5890_v38, %v727_v52 }
  0xc5   : > { %5237 = vpow2.f32 %v4744_v53  ;;  %v887_v59 = vpop.f32.mrf.mxu2  ;;  %v5941_v26 = vpop.f32.mrf.mxu3 }
  0xc6   : > { %5239 = vpow2.f32 %v4748_v54  ;;  %v888_v60 = vadd.f32 %v887_v59, %v785_v55  ;;  %v866_v61 = vpop.f32.mrf.mxu0  ;;  %v878_v62 = vpop.f32.mrf.mxu1 }
  0xc7   : > { %v867_v63 = vadd.f32 %v866_v61, %v778_v58  ;;  %v879_v0 = vadd.f32 %v878_v62, %v782_v57 }
  0xc8   : > { %v5915_v1 = vadd.f32 %v5897_v44, %v888_v60 }
  0xc9   : > { %v5918_v2 = vadd.f32 %v5897_v44, %v867_v63  ;;  %v5921_v3 = vadd.f32 %v5897_v44, %v879_v0 }
  0xca   : > { %v4752_v4 = vmul.f32 -1.442695, %v5915_v1  ;;  %v742_v5 = vpop.permute.xlu0 %741  ;;  %v747_v8 = vpop.permute.xlu1 %746 }
  0xcb   : > { %v5238_v6 = vpop.eup %5237  ;;  %v4745_v7 = vmul.f32 -1.442695, %v5918_v2  ;;  %v4749_v11 = vmul.f32 -1.442695, %v5921_v3  ;;  %v786_v12 = vmul.f32 %v5890_v38, %v742_v5  ;;  %v5957_v36 = vmul.f32 %v5890_v38, %v747_v8 }
  0xcc   : > { %v5240_v9 = vpop.eup %5239  ;;  %v5925_v10 = vadd.f32 1.0, %v5238_v6  ;;  %5241 = vpow2.f32 %v4752_v4 }
  0xcd   : > { %v5929_v13 = vadd.f32 1.0, %v5240_v9  ;;  %5243 = vpow2.f32 %v4745_v7  ;;  %v890_v14 = vpop.f32.mrf.mxu2 }
  0xce   : > { %5245 = vrcp.f32 %v5925_v10  ;;  %v869_v16 = vpop.f32.mrf.mxu0  ;;  %v891_v18 = vadd.f32 %v890_v14, %v786_v12  ;;  %v881_v19 = vpop.f32.mrf.mxu1  ;;  %v1004_v21 = vand.u32 2147483647, %v5925_v10  ;;  %v1006_v24 = vand.u32 2147483648, %v5925_v10 }
  0xcf   : > { %5247 = vrcp.f32 %v5929_v13  ;;  %v1064_v25 = vand.u32 2147483647, %v5929_v13  ;;  %v870_v28 = vadd.f32 %v869_v16, %v779_v17  ;;  %v1066_v31 = vand.u32 2147483648, %v5929_v13  ;;  %v902_v14 = vpop.f32.mrf.mxu3 }
  0xd0   : > { %5249 = vpow2.f32 %v4749_v11  ;;  %v5944_v27 = vadd.f32 %v5897_v44, %v891_v18  ;;  %v882_v33 = vadd.f32 %v881_v19, %v783_v22  ;;  %vm1000_vm2 = vweird.f32 %v5925_v10 }
  0xd1   : > { %vm1060_vm3 = vweird.f32 %v5929_v13  ;;  %vm5960_vm4 = vcmp.eq.f32.partialorder %v1004_v21, 8.507059e+37  ;;  %v1007_v46 = vor.u32 1.1754944e-38, %v1006_v24  ;;  %vm5967_vm6 = vcmp.eq.f32.partialorder %v1064_v25, 8.507059e+37 }
  0xd2   : > { %v5242_v23 = vpop.eup %5241  ;;  %v4753_v41 = vmul.f32 -1.442695, %v5944_v27  ;;  %v762_v42 = vpop.permute.xlu1 %761  ;;  %v5972_v52 = vadd.f32 %v5897_v44, %v870_v28  ;;  %v1067_v54 = vor.u32 1.1754944e-38, %v1066_v31  ;;  %v5976_v55 = vadd.f32 %v5897_v44, %v882_v33 }
  0xd3   : > { %v5244_v29 = vpop.eup %5243  ;;  %v5950_v32 = vadd.f32 1.0, %v5242_v23  ;;  %v757_v43 = vpop.permute.xlu0 %756  ;;  %v790_v59 = vmul.f32 %v5890_v38, %v762_v42 }
  0xd4   : > { %v5246_v34 = vpop.eup %5245  ;;  %v5954_v35 = vadd.f32 1.0, %v5244_v29  ;;  %v789_v60 = vmul.f32 %v5890_v38, %v757_v43  ;;  %v4746_v0 = vmul.f32 -1.442695, %v5972_v52 }
  0xd5   : > { %v5248_v37 = vpop.eup %5247  ;;  %v996_v39 = vmul.f32 %v5246_v34, %v5925_v10  ;;  %5251 = vrcp.f32 %v5950_v32  ;;  %v1124_v58 = vand.u32 2147483647, %v5950_v32  ;;  %vm1001_vm7 = vweird.f32 %v5246_v34  ;;  %v893_v42 = vpop.f32.mrf.mxu2 }
  0xd6   : > { %v5250_v45 = vpop.eup %5249  ;;  %v1056_v47 = vmul.f32 %v5248_v37, %v5929_v13  ;;  %5253 = vrcp.f32 %v5954_v35  ;;  %vm1061_vm8 = vweird.f32 %v5248_v37  ;;  %vm1120_vm9 = vweird.f32 %v5950_v32  ;;  %vm1002_vm10 = vmor %vm1000_vm2, %vm1001_vm7 }
  0xd7   : > { %v997_v53 = vsub.f32 1.0, %v996_v39  ;;  %v5981_v62 = vadd.f32 1.0, %v5250_v45  ;;  %5255 = vpow2.f32 %v4753_v41  ;;  %v1126_v6 = vand.u32 2147483648, %v5950_v32  ;;  %vm1062_vm13 = vmor %vm1060_vm3, %vm1061_vm8 }
  0xd8   : > { %v1057_v57 = vsub.f32 1.0, %v1056_v47  ;;  %v1019_v7 = vand.u32 2147483647, %v5954_v35  ;;  %vm5991_vm11 = vcmp.eq.f32.partialorder %v1124_v58, 8.507059e+37  ;;  %vm1015_vm12 = vweird.f32 %v5954_v35 }
  0xd9   : > { %v998_v61 = vmul.f32 %v5246_v34, %v997_v53  ;;  %5257 = vrcp.f32 %v5981_v62  ;;  %v1021_v12 = vand.u32 2147483648, %v5954_v35  ;;  %v4750_v10 = vmul.f32 -1.442695, %v5976_v55 }
  0xda   : > { %v1058_v63 = vmul.f32 %v5248_v37, %v1057_v57  ;;  %5259 = vpow2.f32 %v4746_v0  ;;  %v903_v17 = vadd.f32 %v902_v14, %v790_v59  ;;  %v1127_v13 = vor.u32 1.1754944e-38, %v1126_v6 }
  0xdb   : > { %v5252_v4 = vpop.eup %5251  ;;  %v999_v5 = vadd.f32 %v5246_v34, %v998_v61  ;;  %vm6011_vm15 = vcmp.eq.f32.partialorder %v1019_v7, 8.507059e+37  ;;  %v1022_v39 = vor.u32 1.1754944e-38, %v1021_v12  ;;  %5261 = vpow2.f32 %v4750_v10 }
  0xdc   : > { %v1059_v8 = vadd.f32 %v5248_v37, %v1058_v63  ;;  %v1116_v9 = vmul.f32 %v5252_v4, %v5950_v32  ;;  %v5254_v15 = vpop.eup %5253  ;;  %vm1121_vm14 = vweird.f32 %v5252_v4  ;;  %v1079_v45 = vand.u32 2147483647, %v5981_v62 }
  0xdd   : > { %v1003_v16 = vsel %vm1002_vm10, %v5246_v34, %v999_v5  ;;  %v1011_v22 = vmul.f32 %v5254_v15, %v5954_v35  ;;  %v5256_v23 = vpop.eup %5255  ;;  %vm1016_vm0 = vweird.f32 %v5254_v15  ;;  %vm1122_vm1 = vmor %vm1120_vm9, %vm1121_vm14  ;;  %v900_v47 = vadd.f32 %v5941_v26, %v789_v60 }
  0xde   : > { %v1008_v18 = vsel %vm5960_vm4, %v1007_v46, %v1003_v16  ;;  %v1063_v19 = vsel %vm1062_vm13, %v5248_v37, %v1059_v8  ;;  %v1117_v21 = vsub.f32 1.0, %v1116_v9  ;;  %v6008_v33 = vadd.f32 1.0, %v5256_v23  ;;  %vm1017_vm2 = vmor %vm1015_vm12, %vm1016_vm0  ;;  %v872_v16 = vpop.f32.mrf.mxu0 }
  0xdf   : > { %v1235_v24 = vmul.f32 %v1008_v18, %v5900_v49  ;;  %v1068_v25 = vsel %vm5967_vm6, %v1067_v54, %v1063_v19  ;;  %v1012_v31 = vsub.f32 1.0, %v1011_v22  ;;  %v5258_v34 = vpop.eup %5257  ;;  %v6016_v49 = vadd.f32 %v5897_v44, %v903_v17 }
  0xe0   : > { %v1239_v28 = vmul.f32 %v1068_v25, %v5903_v50  ;;  %v1118_v29 = vmul.f32 %v5252_v4, %v1117_v21  ;;  %v1071_v41 = vmul.f32 %v5258_v34, %v5981_v62  ;;  %v5260_v43 = vpop.eup %5259  ;;  %v1081_v46 = vand.u32 2147483648, %v5981_v62 }
  0xe1   : > { %1252 = vst.msk [vmem:[#allocation2] sm:$0xff] %vm1251_vm5, %v1235_v24  ;;  %v1013_v50 = vmul.f32 %v5254_v15, %v1012_v31  ;;  %5263 = vrcp.f32 %v6008_v33  ;;  %v6027_v57 = vadd.f32 1.0, %v5260_v43  ;;  %vm1076_vm3 = vweird.f32 %v5258_v34  ;;  %v5262_v60 = vpop.eup %5261 }
  0xe2   : > { %1256 = vst.msk [vmem:[#allocation2 + $0x20] sm:$0xff] %vm1251_vm5, %v1239_v28  ;;  %v1119_v40 = vadd.f32 %v5252_v4, %v1118_v29  ;;  %v1072_v54 = vsub.f32 1.0, %v1071_v41  ;;  %v4757_v32 = vmul.f32 -1.442695, %v6016_v49  ;;  %v894_v59 = vadd.f32 %v893_v42, %v5957_v36 }
  0xe3   : > { %v1014_v53 = vadd.f32 %v5254_v15, %v1013_v50  ;;  %5265 = vrcp.f32 %v6027_v57  ;;  %v784_v0 = vmul.f32 %v5890_v38, %v5905_v51  ;;  %vm1075_vm4 = vweird.f32 %v5981_v62 }
  0xe4   : > { %v1123_v48 = vsel %vm1122_vm1, %v5252_v4, %v1119_v40  ;;  %v1073_v26 = vmul.f32 %v5258_v34, %v1072_v54  ;;  %v1139_v35 = vand.u32 2147483647, %v6008_v33  ;;  %v6045_v5 = vadd.f32 1.0, %v5262_v60  ;;  %vm1077_vm6 = vmor %vm1075_vm4, %vm1076_vm3 }
  0xe5   : > { %v1128_v58 = vsel %vm5991_vm11, %v1127_v13, %v1123_v48  ;;  %v1018_v63 = vsel %vm1017_vm2, %v5254_v15, %v1014_v53  ;;  %5267 = vpow2.f32 %v4757_v32  ;;  %v1082_v7 = vor.u32 1.1754944e-38, %v1081_v46  ;;  %v905_v15 = vpop.f32.mrf.mxu3 }
  0xe6   : > { %v1243_v61 = vmul.f32 %v1128_v58, %v5915_v1  ;;  %v1023_v4 = vsel %vm6011_vm15, %v1022_v39, %v1018_v63  ;;  %v1074_v1 = vadd.f32 %v5258_v34, %v1073_v26  ;;  %v1141_v51 = vand.u32 2147483648, %v6008_v33 }
  0xe7   : > { %v1236_v36 = vmul.f32 %v1023_v4, %v5918_v2  ;;  %v5264_v6 = vpop.eup %5263  ;;  %v6050_v8 = vadd.f32 %v5897_v44, %v900_v47  ;;  %v6053_v62 = vadd.f32 %v5897_v44, %v894_v59  ;;  %vm1080_vm7 = vcmp.eq.f32.partialorder %v1079_v45, 8.507059e+37 }
  0xe8   : > { %1260 = vst.msk [vmem:[#allocation2 + $0x40] sm:$0xff] %vm1251_vm5, %v1243_v61  ;;  %v1078_v9 = vsel %vm1077_vm6, %v5258_v34, %v1074_v1  ;;  %v1131_v2 = vmul.f32 %v5264_v6, %v6008_v33  ;;  %5269 = vrcp.f32 %v6045_v5  ;;  %vm1135_vm8 = vweird.f32 %v6008_v33  ;;  %v884_v34 = vpop.f32.mrf.mxu1 }
  0xe9   : > { %1253 = vst.msk [vmem:[#allocation2 + $0x8] sm:$0xff] %vm1251_vm5, %v1236_v36  ;;  %v1083_v11 = vsel %vm1080_vm7, %v1082_v7, %v1078_v9  ;;  %vm6059_vm9 = vcmp.eq.f32.partialorder %v1139_v35, 8.507059e+37  ;;  %v1034_v14 = vand.u32 2147483647, %v6027_v57  ;;  %v5266_v10 = vpop.eup %5265  ;;  %v4756_v19 = vmul.f32 -1.442695, %v6050_v8 }
  0xea   : > { %v1240_v17 = vmul.f32 %v1083_v11, %v5921_v3  ;;  %v1132_v18 = vsub.f32 1.0, %v1131_v2  ;;  %v4754_v21 = vmul.f32 -1.442695, %v6053_v62  ;;  %vm1136_vm10 = vweird.f32 %v5264_v6 }
  0xeb   : > { %v1142_v22 = vor.u32 1.1754944e-38, %v1141_v51  ;;  %v1026_v23 = vmul.f32 %v5266_v10, %v6027_v57  ;;  %v1036_v24 = vand.u32 2147483648, %v6027_v57  ;;  %v5268_v25 = vpop.eup %5267  ;;  %5271 = vpow2.f32 %v4756_v19  ;;  %vm1137_vm13 = vmor %vm1135_vm8, %vm1136_vm10 }
  0xec   : > { %1257 = vst.msk [vmem:[#allocation2 + $0x28] sm:$0xff] %vm1251_vm5, %v1240_v17  ;;  %v1133_v13 = vmul.f32 %v5264_v6, %v1132_v18  ;;  %v906_v28 = vadd.f32 %v905_v15, %v5935_v20  ;;  %v873_v3 = vadd.f32 %v872_v16, %v5947_v30  ;;  %vm1030_vm11 = vweird.f32 %v6027_v57 }
  0xed   : > { %v1027_v29 = vsub.f32 1.0, %v1026_v23  ;;  %v6073_v31 = vadd.f32 1.0, %v5268_v25  ;;  %5273 = vpow2.f32 %v4754_v21  ;;  %vm6075_vm12 = vcmp.eq.f32.partialorder %v1034_v14, 8.507059e+37 }
  0xee   : > { %v5270_v37 = vpop.eup %5269  ;;  %v1134_v39 = vadd.f32 %v5264_v6, %v1133_v13  ;;  %v6080_v50 = vadd.f32 %v5897_v44, %v906_v28  ;;  %v6083_v20 = vadd.f32 %v5897_v44, %v873_v3  ;;  %vm1031_vm14 = vweird.f32 %v5266_v10  ;;  %v908_v13 = vpop.f32.mrf.mxu3 }
  0xef   : > { %v1028_v30 = vmul.f32 %v5266_v10, %v1027_v29  ;;  %v1086_v41 = vmul.f32 %v5270_v37, %v6045_v5  ;;  %5275 = vrcp.f32 %v6073_v31  ;;  %v1037_v43 = vor.u32 1.1754944e-38, %v1036_v24  ;;  %vm1032_vm15 = vmor %vm1030_vm11, %vm1031_vm14 }
  0xf0   : > { %v1138_v42 = vsel %vm1137_vm13, %v5264_v6, %v1134_v39  ;;  %v1094_v45 = vand.u32 2147483647, %v6045_v5  ;;  %v885_v46 = vadd.f32 %v884_v34, %v784_v0  ;;  %v4758_v54 = vmul.f32 -1.442695, %v6080_v50 }
  0xf1   : > { %v1143_v47 = vsel %vm6059_vm9, %v1142_v22, %v1138_v42  ;;  %v1029_v48 = vadd.f32 %v5266_v10, %v1028_v30  ;;  %v1087_v53 = vsub.f32 1.0, %v1086_v41  ;;  %v5272_v33 = vpop.eup %5271  ;;  %vm1091_vm0 = vweird.f32 %v5270_v37 }
  0xf2   : > { %v1244_v58 = vmul.f32 %v1143_v47, %v5944_v27  ;;  %v1096_v32 = vand.u32 2147483648, %v6045_v5  ;;  %v4747_v59 = vmul.f32 -1.442695, %v6083_v20  ;;  %v6099_v60 = vadd.f32 1.0, %v5272_v33 }
  0xf3   : > { %v5274_v61 = vpop.eup %5273  ;;  %v1033_v63 = vsel %vm1032_vm15, %v5266_v10, %v1029_v48  ;;  %v1088_v26 = vmul.f32 %v5270_v37, %v1087_v53  ;;  %5277 = vpow2.f32 %v4758_v54  ;;  %vm1090_vm1 = vweird.f32 %v6045_v5  ;;  %v772_v5 = vpop.permute.xlu0 %771 }
  0xf4   : > { %1261 = vst.msk [vmem:[#allocation2 + $0x48] sm:$0xff] %vm1251_vm5, %v1244_v58  ;;  %v1038_v0 = vsel %vm6075_vm12, %v1037_v43, %v1033_v63  ;;  %v6105_v27 = vadd.f32 1.0, %v5274_v61  ;;  %5279 = vpow2.f32 %v4747_v59  ;;  %v6110_v36 = vadd.f32 %v5897_v44, %v885_v46  ;;  %vm1092_vm2 = vmor %vm1090_vm1, %vm1091_vm0 }
  0xf5   : > { %v5276_v57 = vpop.eup %5275  ;;  %v1237_v4 = vmul.f32 %v1038_v0, %v5972_v52  ;;  %v1089_v35 = vadd.f32 %v5270_v37, %v1088_v26  ;;  %5281 = vrcp.f32 %v6099_v60  ;;  %v1097_v1 = vor.u32 1.1754944e-38, %v1096_v32 }
  0xf6   : > { %v1191_v6 = vmul.f32 %v5276_v57, %v6073_v31  ;;  %v1199_v7 = vand.u32 2147483647, %v6073_v31  ;;  %vm1095_vm3 = vcmp.eq.f32.partialorder %v1094_v45, 8.507059e+37  ;;  %v1201_v52 = vand.u32 2147483648, %v6073_v31 }
  0xf7   : > { %1254 = vst.msk [vmem:[#allocation2 + $0x10] sm:$0xff] %vm1251_vm5, %v1237_v4  ;;  %v1093_v51 = vsel %vm1092_vm2, %v5270_v37, %v1089_v35  ;;  %5283 = vrcp.f32 %v6105_v27  ;;  %v788_v9 = vmul.f32 %v5890_v38, %v5910_v56  ;;  %vm1195_vm4 = vweird.f32 %v6073_v31  ;;  %v896_v56 = vpop.f32.mrf.mxu2 }
  0xf8   : > { %v1098_v2 = vsel %vm1095_vm3, %v1097_v1, %v1093_v51  ;;  %v1192_v11 = vsub.f32 1.0, %v1191_v6  ;;  %v4751_v15 = vmul.f32 -1.442695, %v6110_v36  ;;  %v792_v16 = vmul.f32 %v5890_v38, %v772_v5 }
  0xf9   : > { %v5278_v12 = vpop.eup %5277  ;;  %v1241_v14 = vmul.f32 %v1098_v2, %v5976_v55  ;;  %vm1196_vm6 = vweird.f32 %v5276_v57  ;;  %vm6124_vm7 = vcmp.eq.f32.partialorder %v1199_v7, 8.507059e+37  ;;  %v1202_v55 = vor.u32 1.1754944e-38, %v1201_v52 }
  0xfa   : > { %v5280_v10 = vpop.eup %5279  ;;  %v1193_v17 = vmul.f32 %v5276_v57, %v1192_v11  ;;  %v6128_v19 = vadd.f32 1.0, %v5278_v12  ;;  %v1184_v22 = vand.u32 2147483647, %v6099_v60  ;;  %5285 = vpow2.f32 %v4751_v15  ;;  %vm1197_vm8 = vmor %vm1195_vm4, %vm1196_vm6 }
  0xfb   : > { %v5282_v21 = vpop.eup %5281  ;;  %1258 = vst.msk [vmem:[#allocation2 + $0x30] sm:$0xff] %vm1251_vm5, %v1241_v14  ;;  %v6132_v23 = vadd.f32 1.0, %v5280_v10  ;;  %v1186_v25 = vand.u32 2147483648, %v6099_v60  ;;  %v1154_v3 = vand.u32 2147483647, %v6105_v27  ;;  %v1156_v29 = vand.u32 2147483648, %v6105_v27 }
  0xfc   : > { %v1194_v38 = vadd.f32 %v5276_v57, %v1193_v17  ;;  %v1176_v24 = vmul.f32 %v5282_v21, %v6099_v60  ;;  %5287 = vrcp.f32 %v6128_v19  ;;  %v897_v34 = vadd.f32 %v896_v56, %v788_v9 }
  0xfd   : > { %v5284_v28 = vpop.eup %5283  ;;  %5289 = vrcp.f32 %v6132_v23  ;;  %vm1180_vm9 = vweird.f32 %v6099_v60  ;;  %vm6147_vm10 = vcmp.eq.f32.partialorder %v1184_v22, 8.507059e+37  ;;  %vm1150_vm11 = vweird.f32 %v6105_v27 }
  0xfe   : > { %v1198_v37 = vsel %vm1197_vm8, %v5276_v57, %v1194_v38  ;;  %v1177_v39 = vsub.f32 1.0, %v1176_v24  ;;  %v1146_v40 = vmul.f32 %v5284_v28, %v6105_v27  ;;  %v909_v31 = vadd.f32 %v908_v13, %v792_v16 }
  0xff   : > { %v1203_v30 = vsel %vm6124_vm7, %v1202_v55, %v1198_v37  ;;  %vm1181_vm12 = vweird.f32 %v5282_v21  ;;  %v1187_v47 = vor.u32 1.1754944e-38, %v1186_v25  ;;  %vm6153_vm13 = vcmp.eq.f32.partialorder %v1154_v3, 8.507059e+37 }
 0x100   : > { %v1248_v42 = vmul.f32 %v1203_v30, %v6016_v49  ;;  %v1178_v43 = vmul.f32 %v5282_v21, %v1177_v39  ;;  %v1147_v45 = vsub.f32 1.0, %v1146_v40  ;;  %v5286_v46 = vpop.eup %5285  ;;  %v1157_v53 = vor.u32 1.1754944e-38, %v1156_v29  ;;  %vm1182_vm15 = vmor %vm1180_vm9, %vm1181_vm12 }
 0x101   : > { %v6158_v54 = vadd.f32 %v5897_v44, %v897_v34  ;;  %vm1151_vm14 = vweird.f32 %v5284_v28  ;;  %v6161_v49 = vadd.f32 1.0, %v5286_v46  ;;  %v1214_v63 = vand.u32 2147483647, %v6128_v19 }
 0x102   : > { %v5288_v33 = vpop.eup %5287  ;;  %1265 = vst.msk [vmem:[#allocation2 + $0x68] sm:$0xff] %vm1251_vm5, %v1248_v42  ;;  %v1179_v58 = vadd.f32 %v5282_v21, %v1178_v43  ;;  %v1148_v32 = vmul.f32 %v5284_v28, %v1147_v45  ;;  %v1216_v26 = vand.u32 2147483648, %v6128_v19  ;;  %v6171_v1 = vadd.f32 %v5897_v44, %v909_v31  ;;  %vm1152_vm0 = vmor %vm1150_vm11, %vm1151_vm14 }
 0x103   : > { %v5290_v59 = vpop.eup %5289  ;;  %v1206_v61 = vmul.f32 %v5288_v33, %v6128_v19  ;;  %v4755_v0 = vmul.f32 -1.442695, %v6158_v54  ;;  %v1049_v7 = vand.u32 2147483647, %v6132_v23  ;;  %5291 = vrcp.f32 %v6161_v49 }
 0x104   : > { %v1183_v57 = vsel %vm1182_vm15, %v5282_v21, %v1179_v58  ;;  %v1149_v4 = vadd.f32 %v5284_v28, %v1148_v32  ;;  %v1041_v35 = vmul.f32 %v5290_v59, %v6132_v23  ;;  %v1051_v9 = vand.u32 2147483648, %v6132_v23 }
 0x105   : > { %v1188_v6 = vsel %vm6147_vm10, %v1187_v47, %v1183_v57  ;;  %v1207_v60 = vsub.f32 1.0, %v1206_v61  ;;  %vm1211_vm1 = vweird.f32 %v5288_v33  ;;  %5293 = vpow2.f32 %v4755_v0 }
 0x106   : > { %v1247_v5 = vmul.f32 %v1188_v6, %v6050_v8  ;;  %v1153_v51 = vsel %vm1152_vm0, %v5284_v28, %v1149_v4  ;;  %v1042_v52 = vsub.f32 1.0, %v1041_v35  ;;  %vm1046_vm2 = vweird.f32 %v5290_v59 }
 0x107   : > { %v1158_v44 = vsel %vm6153_vm13, %v1157_v53, %v1153_v51  ;;  %v1208_v2 = vmul.f32 %v5288_v33, %v1207_v60  ;;  %v4759_v12 = vmul.f32 -1.442695, %v6171_v1  ;;  %vm1210_vm3 = vweird.f32 %v6128_v19 }
 0x108   : > { %1264 = vst.msk [vmem:[#allocation2 + $0x60] sm:$0xff] %vm1251_vm5, %v1247_v5  ;;  %v1245_v27 = vmul.f32 %v1158_v44, %v6053_v62  ;;  %v1043_v11 = vmul.f32 %v5290_v59, %v1042_v52  ;;  %vm1268_vm4 = vcmask 785408   ;;  %vm1212_vm6 = vmor %vm1210_vm3, %vm1211_vm1  ;;  %v1217_v8 = vor.u32 1.1754944e-38, %v1216_v26 }
 0x109   : > { %v1209_v14 = vadd.f32 %v5288_v33, %v1208_v2  ;;  %vm1045_vm7 = vweird.f32 %v6132_v23  ;;  %5295 = vpow2.f32 %v4759_v12  ;;  %v5292_v16 = vpop.eup %5291  ;;  %vm1215_vm8 = vcmp.eq.f32.partialorder %v1214_v63, 8.507059e+37 }
 0x10a   : > { %1262 = vst.msk [vmem:[#allocation2 + $0x50] sm:$0xff] %vm1251_vm5, %v1245_v27  ;;  %v1044_v15 = vadd.f32 %v5290_v59, %v1043_v11  ;;  %vm1047_vm9 = vmor %vm1045_vm7, %vm1046_vm2  ;;  %v1052_v62 = vor.u32 1.1754944e-38, %v1051_v9  ;;  %v5552_v17 = vmov 0.0   ;;  %vm1050_vm10 = vcmp.eq.f32.partialorder %v1049_v7, 8.507059e+37 }
 0x10b   : > { %v1213_v10 = vsel %vm1212_vm6, %v5288_v33, %v1209_v14  ;;  %1269 = vst.msk [vmem:[#allocation4] sm:$0xff] %vm1268_vm4, %v5552_v17  ;;  %v1101_v19 = vmul.f32 %v5292_v16, %v6161_v49  ;;  %v5294_v21 = vpop.eup %5293  ;;  %v1111_v25 = vand.u32 2147483648, %v6161_v49  ;;  %vm1106_vm11 = vweird.f32 %v5292_v16 }
 0x10c   : > { %v1218_v18 = vsel %vm1215_vm8, %v1217_v8, %v1213_v10  ;;  %v1048_v56 = vsel %vm1047_vm9, %v5290_v59, %v1044_v15  ;;  %1270 = vst.msk [vmem:[#allocation4 + $0x8] sm:$0xff] %vm1268_vm4, %v5552_v17  ;;  %v990_v24 = vadd.f32 1.0, %v5294_v21  ;;  %vm1105_vm12 = vweird.f32 %v6161_v49 }
 0x10d   : > { %v1249_v55 = vmul.f32 %v1218_v18, %v6080_v50  ;;  %v1053_v22 = vsel %vm1050_vm10, %v1052_v62, %v1048_v56  ;;  %1271 = vst.msk [vmem:[#allocation4 + $0x10] sm:$0xff] %vm1268_vm4, %v5552_v17  ;;  %v1102_v38 = vsub.f32 1.0, %v1101_v19  ;;  %v1109_v50 = vand.u32 2147483647, %v6161_v49  ;;  %vm1107_vm13 = vmor %vm1105_vm12, %vm1106_vm11 }
 0x10e   : > { %v1238_v23 = vmul.f32 %v1053_v22, %v6083_v20  ;;  %1272 = vst.msk [vmem:[#allocation4 + $0x18] sm:$0xff] %vm1268_vm4, %v5552_v17  ;;  %5297 = vrcp.f32 %v990_v24  ;;  %v1112_v29 = vor.u32 1.1754944e-38, %v1111_v25  ;;  %v1171_v42 = vand.u32 2147483648, %v990_v24 }
 0x10f   : > { %1266 = vst.msk [vmem:[#allocation2 + $0x70] sm:$0xff] %vm1251_vm5, %v1249_v55  ;;  %v5296_v13 = vpop.eup %5295  ;;  %v1103_v28 = vmul.f32 %v5292_v16, %v1102_v38  ;;  %vm1110_vm14 = vcmp.eq.f32.partialorder %v1109_v50, 8.507059e+37  ;;  %v1169_v46 = vand.u32 2147483647, %v990_v24  ;;  %vm1165_vm0 = vweird.f32 %v990_v24 }
 0x110   : > { %1255 = vst.msk [vmem:[#allocation2 + $0x18] sm:$0xff] %vm1251_vm5, %v1238_v23  ;;  %v994_v3 = vadd.f32 1.0, %v5296_v13  ;;  %v1172_v53 = vor.u32 1.1754944e-38, %v1171_v42 }
 0x111   : > { %1273 = vst.msk [vmem:[#allocation4 + $0x20] sm:$0xff] %vm1268_vm4, %v5552_v17  ;;  %v1104_v20 = vadd.f32 %v5292_v16, %v1103_v28  ;;  %vm1170_vm3 = vcmp.eq.f32.partialorder %v1169_v46, 8.507059e+37 }
 0x112   : > { %1274 = vst.msk [vmem:[#allocation4 + $0x28] sm:$0xff] %vm1268_vm4, %v5552_v17  ;;  %5299 = vrcp.f32 %v994_v3  ;;  %v1231_v48 = vand.u32 2147483648, %v994_v3  ;;  %v1229_v58 = vand.u32 2147483647, %v994_v3  ;;  %vm1225_vm6 = vweird.f32 %v994_v3 }
 0x113   : > { %1275 = vst.msk [vmem:[#allocation4 + $0x30] sm:$0xff] %vm1268_vm4, %v5552_v17  ;;  %v1108_v34 = vsel %vm1107_vm13, %v5292_v16, %v1104_v20 }
 0x114   : > { %1276 = vst.msk [vmem:[#allocation4 + $0x38] sm:$0xff] %vm1268_vm4, %v5552_v17  ;;  %v1113_v37 = vsel %vm1110_vm14, %v1112_v29, %v1108_v34  ;;  %v5298_v39 = vpop.eup %5297  ;;  %v1232_v63 = vor.u32 1.1754944e-38, %v1231_v48  ;;  %vm1230_vm8 = vcmp.eq.f32.partialorder %v1229_v58, 8.507059e+37 }
 0x115   : > { %1277 = vst.msk [vmem:[#allocation4 + $0x40] sm:$0xff] %vm1268_vm4, %v5552_v17  ;;  %v1242_v40 = vmul.f32 %v1113_v37, %v6110_v36  ;;  %v1161_v30 = vmul.f32 %v5298_v39, %v990_v24  ;;  %vm1166_vm15 = vweird.f32 %v5298_v39 }
 0x116   : > { %1278 = vst.msk [vmem:[#allocation4 + $0x48] sm:$0xff] %vm1268_vm4, %v5552_v17  ;;  %vm1167_vm1 = vmor %vm1165_vm0, %vm1166_vm15 }
 0x117   : > { %1279 = vst.msk [vmem:[#allocation4 + $0x50] sm:$0xff] %vm1268_vm4, %v5552_v17  ;;  %v1162_v31 = vsub.f32 1.0, %v1161_v30 }
 0x118   : > { %1259 = vst.msk [vmem:[#allocation2 + $0x38] sm:$0xff] %vm1251_vm5, %v1242_v40  ;;  %v5300_v41 = vpop.eup %5299 }
 0x119   : > { %1280 = vst.msk [vmem:[#allocation4 + $0x58] sm:$0xff] %vm1268_vm4, %v5552_v17  ;;  %v1221_v43 = vmul.f32 %v5300_v41, %v994_v3  ;;  %v1163_v45 = vmul.f32 %v5298_v39, %v1162_v31  ;;  %vm1226_vm2 = vweird.f32 %v5300_v41 }
 0x11a   : > { %1281 = vst.msk [vmem:[#allocation4 + $0x60] sm:$0xff] %vm1268_vm4, %v5552_v17  ;;  %vm1227_vm7 = vmor %vm1225_vm6, %vm1226_vm2 }
 0x11b   : > { %1282 = vst.msk [vmem:[#allocation4 + $0x68] sm:$0xff] %vm1268_vm4, %v5552_v17  ;;  %v1222_v36 = vsub.f32 1.0, %v1221_v43  ;;  %v1164_v47 = vadd.f32 %v5298_v39, %v1163_v45 }
 0x11c   : > { %1283 = vst.msk [vmem:[#allocation4 + $0x70] sm:$0xff] %vm1268_vm4, %v5552_v17 }
 0x11d   : > { %1284 = vst.msk [vmem:[#allocation4 + $0x78] sm:$0xff] %vm1268_vm4, %v5552_v17  ;;  %v1223_v33 = vmul.f32 %v5300_v41, %v1222_v36  ;;  %v1168_v32 = vsel %vm1167_vm1, %v5298_v39, %v1164_v47 }
 0x11e   : > { %v1173_v49 = vsel %vm1170_vm3, %v1172_v53, %v1168_v32 }
 0x11f   : > { %v1224_v59 = vadd.f32 %v5300_v41, %v1223_v33  ;;  %v1246_v61 = vmul.f32 %v1173_v49, %v6158_v54 }
 0x121   : > { %v1228_v26 = vsel %vm1227_vm7, %v5300_v41, %v1224_v59  ;;  %1263 = vst.msk [vmem:[#allocation2 + $0x58] sm:$0xff] %vm1251_vm5, %v1246_v61 }
 0x122   : > { %v1233_v0 = vsel %vm1230_vm8, %v1232_v63, %v1228_v26 }
 0x123   : > { %v1250_v57 = vmul.f32 %v1233_v0, %v6171_v1 }
 0x125   : > { %1267 = vst.msk [vmem:[#allocation2 + $0x78] sm:$0xff] %vm1251_vm5, %v1250_v57 }
 0x126 PF: > { %p4760_p4 = scmp.ne.s32.totalorder %s5533_s27, 0 }
 0x128   : > { %1287 = sbr.rel (%p4760_p4) target bundleno = 667 (0x29b), region = 96 }
 0x12d   : > { %v4954_v4 = vld [vmem:[%s5756_s19 + $0x8] sm:$0xff]  ;;  %v4953_v35 = vld [vmem:[%s5756_s19] sm:$0xff]  ;;  %vm1332_vm4 = vcmask 261120   ;;  %v1290_v1 = vld [vmem:[#allocation2 + $0x10] sm:$0xff] }
 0x12e   : > { %v1288_v54 = vld [vmem:[#allocation2] sm:$0xff]  ;;  %1363 = vmatpush.bf16.msra.mxu0 %v4954_v4  ;;  %5078 = vmatpush.bf16.msra.mxu2 %v4954_v4  ;;  %v1289_v6 = vld [vmem:[#allocation2 + $0x8] sm:$0xff]  ;;  %v1291_v52 = vld [vmem:[#allocation2 + $0x18] sm:$0xff] }
 0x12f   : > { %v1296_v60 = vld [vmem:[#allocation2 + $0x40] sm:$0xff]  ;;  %v1297_v7 = vld [vmem:[#allocation2 + $0x48] sm:$0xff]  ;;  %v1304_v5 = vpack.c.bf16 %v1289_v6, %v1288_v54  ;;  %v1298_v9 = vld [vmem:[#allocation2 + $0x50] sm:$0xff]  ;;  %v1305_v2 = vpack.c.bf16 %v1291_v52, %v1290_v1 }
 0x130   : > { %v1308_v51 = vpack.c.bf16 %v1297_v7, %v1296_v60  ;;  %v1299_v44 = vld [vmem:[#allocation2 + $0x58] sm:$0xff]  ;;  %v1292_v11 = vld [vmem:[#allocation2 + $0x20] sm:$0xff]  ;;  %v1293_v12 = vld [vmem:[#allocation2 + $0x28] sm:$0xff] }
 0x131   : > { %v1309_v27 = vpack.c.bf16 %v1299_v44, %v1298_v9  ;;  %v1300_v14 = vld [vmem:[#allocation2 + $0x60] sm:$0xff]  ;;  %v1301_v8 = vld [vmem:[#allocation2 + $0x68] sm:$0xff]  ;;  %v1306_v15 = vpack.c.bf16 %v1293_v12, %v1292_v11  ;;  %v1294_v10 = vld [vmem:[#allocation2 + $0x30] sm:$0xff] }
 0x132   : > { %1364 = vmatpush.bf16.msra.mxu0 %v4953_v35  ;;  %5079 = vmatpush.bf16.msra.mxu2 %v4953_v35  ;;  %v1310_v16 = vpack.c.bf16 %v1301_v8, %v1300_v14  ;;  %v1295_v62 = vld [vmem:[#allocation2 + $0x38] sm:$0xff]  ;;  %v1302_v17 = vld [vmem:[#allocation2 + $0x70] sm:$0xff]  ;;  %v6237_v22 = vld [vmem:[%s642_s14] ss:$0 sm:$0xff] }
 0x133   : > { %v1303_v18 = vld [vmem:[#allocation2 + $0x78] sm:$0xff]  ;;  %v1307_v56 = vpack.c.bf16 %v1295_v62, %v1294_v10  ;;  %v1728_v55 = vld [vmem:[%s5762_s17 + $0x10] sm:$0xff]  ;;  %v1727_v23 = vld [vmem:[%s5762_s17 + $0x8] sm:$0xff] }
 0x134   : > { %v1311_v19 = vpack.c.bf16 %v1303_v18, %v1302_v17  ;;  %v1729_v21 = vld [vmem:[%s5762_s17 + $0x18] sm:$0xff]  ;;  %v1726_v38 = vld [vmem:[%s5762_s17] sm:$0xff] }
 0x135   : > { %4769 = vmatmul.msk.bf16.vlgmr.msra.gmra.mxu0 %vm1332_vm4, %v1304_v5  ;;  %4773 = vmatmul.msk.bf16.vlgmr.msra.gmra.mxu2 %vm1332_vm4, %v1308_v51 }
 0x136   : > { %1790 = vmatpush.msra.mxu1 %v1729_v21  ;;  %5080 = vmatpush.msra.mxu3 %v1729_v21 }
 0x138   : > { %1791 = vmatpush.msra.mxu1 %v1728_v55  ;;  %5081 = vmatpush.msra.mxu3 %v1728_v55 }
 0x13a   : > { %1792 = vmatpush.msra.mxu1 %v1727_v23  ;;  %5082 = vmatpush.msra.mxu3 %v1727_v23 }
 0x13c   : > { %1793 = vmatpush.msra.mxu1 %v1726_v38  ;;  %5083 = vmatpush.msra.mxu3 %v1726_v38 }
 0x145   : > { %4770 = vmatmul.msk.bf16.gmra.mxu0 %vm1332_vm4, %v1305_v2  ;;  %4774 = vmatmul.msk.bf16.gmra.mxu2 %vm1332_vm4, %v1309_v27 }
 0x155   : > { %4771 = vmatmul.msk.bf16.gmra.mxu0 %vm1332_vm4, %v1306_v15  ;;  %4775 = vmatmul.msk.bf16.gmra.mxu2 %vm1332_vm4, %v1310_v16 }
 0x165   : > { %4772 = vmatmul.msk.bf16.gmra.mxu0 %vm1332_vm4, %v1307_v56  ;;  %4776 = vmatmul.msk.bf16.gmra.mxu2 %vm1332_vm4, %v1311_v19 }
 0x1b2   : > { %v1366_v24 = vpop.f32.mrf.mxu0 }
 0x1b3   : > { %v6242_v25 = vadd.f32 %v6237_v22, %v1366_v24 }
 0x1b5   : > { %v4777_v13 = vmul.f32 -1.442695, %v6242_v25 }
 0x1b7   : > { %5302 = vpow2.f32 %v4777_v13 }
 0x1b8   : > { %v1386_v28 = vpop.f32.mrf.mxu2 }
 0x1b9   : > { %v6246_v50 = vadd.f32 %v6237_v22, %v1386_v28 }
 0x1ba   : > { %v1368_v3 = vpop.f32.mrf.mxu0 }
 0x1bb   : > { %v4785_v20 = vmul.f32 -1.442695, %v6246_v50  ;;  %v6250_v29 = vadd.f32 %v6237_v22, %v1368_v3 }
 0x1bd   : > { %v5303_v34 = vpop.eup %5302  ;;  %5304 = vpow2.f32 %v4785_v20  ;;  %v4778_v37 = vmul.f32 -1.442695, %v6250_v29 }
 0x1be   : > { %v1454_v39 = vadd.f32 1.0, %v5303_v34 }
 0x1bf   : > { %5306 = vpow2.f32 %v4778_v37 }
 0x1c0   : > { %5308 = vrcp.f32 %v1454_v39  ;;  %v1388_v40 = vpop.f32.mrf.mxu2  ;;  %v1479_v58 = vand.u32 2147483647, %v1454_v39  ;;  %v1481_v32 = vand.u32 2147483648, %v1454_v39  ;;  %vm1475_vm5 = vweird.f32 %v1454_v39 }
 0x1c1   : > { %v6254_v30 = vadd.f32 %v6237_v22, %v1388_v40 }
 0x1c2   : > { %v1371_v41 = vpop.f32.mrf.mxu0  ;;  %vm6281_vm11 = vcmp.eq.f32.partialorder %v1479_v58, 8.507059e+37  ;;  %v1482_v7 = vor.u32 1.1754944e-38, %v1481_v32 }
 0x1c3   : > { %v5305_v31 = vpop.eup %5304  ;;  %v4786_v42 = vmul.f32 -1.442695, %v6254_v30  ;;  %v6258_v43 = vadd.f32 %v6237_v22, %v1371_v41 }
 0x1c4   : > { %v6260_v45 = vadd.f32 1.0, %v5305_v31 }
 0x1c5   : > { %v5307_v46 = vpop.eup %5306  ;;  %5310 = vpow2.f32 %v4786_v42  ;;  %v4779_v36 = vmul.f32 -1.442695, %v6258_v43 }
 0x1c6   : > { %v5309_v47 = vpop.eup %5308  ;;  %5312 = vrcp.f32 %v6260_v45  ;;  %v6264_v48 = vadd.f32 1.0, %v5307_v46  ;;  %v1599_v4 = vand.u32 2147483647, %v6260_v45  ;;  %vm1595_vm12 = vweird.f32 %v6260_v45 }
 0x1c7   : > { %5314 = vpow2.f32 %v4779_v36  ;;  %v1471_v53 = vmul.f32 %v5309_v47, %v1454_v39  ;;  %vm1476_vm9 = vweird.f32 %v5309_v47  ;;  %v1601_v52 = vand.u32 2147483648, %v6260_v45 }
 0x1c8   : > { %5316 = vrcp.f32 %v6264_v48  ;;  %v1391_v33 = vpop.f32.mrf.mxu2  ;;  %vm6277_vm10 = vmor %vm1475_vm5, %vm1476_vm9  ;;  %v1494_v27 = vand.u32 2147483647, %v6264_v48  ;;  %vm6295_vm13 = vcmp.eq.f32.partialorder %v1599_v4, 8.507059e+37  ;;  %v1496_v10 = vand.u32 2147483648, %v6264_v48 }
 0x1c9   : > { %v6268_v49 = vadd.f32 %v6237_v22, %v1391_v33  ;;  %v1472_v59 = vsub.f32 1.0, %v1471_v53  ;;  %vm1490_vm14 = vweird.f32 %v6264_v48  ;;  %v1602_v21 = vor.u32 1.1754944e-38, %v1601_v52 }
 0x1ca   : > { %v1373_v61 = vpop.f32.mrf.mxu0  ;;  %vm6309_vm0 = vcmp.eq.f32.partialorder %v1494_v27, 8.507059e+37  ;;  %v1497_v34 = vor.u32 1.1754944e-38, %v1496_v10 }
 0x1cb   : > { %v5311_v63 = vpop.eup %5310  ;;  %v4787_v26 = vmul.f32 -1.442695, %v6268_v49  ;;  %v6272_v0 = vadd.f32 %v6237_v22, %v1373_v61  ;;  %v1473_v57 = vmul.f32 %v5309_v47, %v1472_v59 }
 0x1cc   : > { %v5313_v35 = vpop.eup %5312  ;;  %v6275_v54 = vadd.f32 1.0, %v5311_v63 }
 0x1cd   : > { %v5315_v5 = vpop.eup %5314  ;;  %5318 = vpow2.f32 %v4787_v26  ;;  %v4780_v51 = vmul.f32 -1.442695, %v6272_v0  ;;  %v1474_v1 = vadd.f32 %v5309_v47, %v1473_v57  ;;  %v1591_v2 = vmul.f32 %v5313_v35, %v6260_v45 }
 0x1ce   : > { %v5317_v9 = vpop.eup %5316  ;;  %5320 = vrcp.f32 %v6275_v54  ;;  %v6289_v44 = vadd.f32 1.0, %v5315_v5  ;;  %vm1596_vm15 = vweird.f32 %v5313_v35  ;;  %vm1610_vm2 = vweird.f32 %v6275_v54 }
 0x1cf   : > { %5322 = vpow2.f32 %v4780_v51  ;;  %v1478_v11 = vsel %vm6277_vm10, %v5309_v47, %v1474_v1  ;;  %v1486_v14 = vmul.f32 %v5317_v9, %v6264_v48  ;;  %v1592_v16 = vsub.f32 1.0, %v1591_v2  ;;  %vm1597_vm3 = vmor %vm1595_vm12, %vm1596_vm15 }
 0x1d0   : > { %5324 = vrcp.f32 %v6289_v44  ;;  %v1393_v8 = vpop.f32.mrf.mxu2  ;;  %v1483_v15 = vsel %vm6281_vm11, %v1482_v7, %v1478_v11  ;;  %vm1491_vm1 = vweird.f32 %v5317_v9  ;;  %v1614_v41 = vand.u32 2147483647, %v6275_v54 }
 0x1d1   : > { %v6305_v62 = vadd.f32 %v6237_v22, %v1393_v8  ;;  %v1710_v17 = vmul.f32 %v1483_v15, %v6242_v25  ;;  %v1487_v18 = vsub.f32 1.0, %v1486_v14  ;;  %v1593_v19 = vmul.f32 %v5313_v35, %v1592_v16  ;;  %vm1492_vm6 = vmor %vm1490_vm14, %vm1491_vm1 }
 0x1d2   : > { %v1376_v56 = vpop.f32.mrf.mxu0  ;;  %v1616_v53 = vand.u32 2147483648, %v6275_v54  ;;  %v1509_v26 = vand.u32 2147483647, %v6289_v44  ;;  %vm1505_vm8 = vweird.f32 %v6289_v44  ;;  %vm6366_vm9 = vcmp.eq.f32.partialorder %v1614_v41, 8.507059e+37 }
 0x1d3   : > { %v5319_v23 = vpop.eup %5318  ;;  %v4788_v38 = vmul.f32 -1.442695, %v6305_v62  ;;  %v6315_v24 = vadd.f32 %v6237_v22, %v1376_v56  ;;  %4793 = vmatmul.msk.f32.vlgmr.msra.gmra.mxu1 %vm1332_vm4, %v1710_v17  ;;  %v1488_v13 = vmul.f32 %v5317_v9, %v1487_v18  ;;  %v1594_v20 = vadd.f32 %v5313_v35, %v1593_v19 }
 0x1d4   : > { %v6318_v28 = vpop.eup %5320  ;;  %v6320_v3 = vadd.f32 1.0, %v5319_v23  ;;  %v1617_v2 = vor.u32 1.1754944e-38, %v1616_v53  ;;  %vm6376_vm11 = vcmp.eq.f32.partialorder %v1509_v26, 8.507059e+37 }
 0x1d5   : > { %v5323_v37 = vpop.eup %5322  ;;  %5326 = vpow2.f32 %v4788_v38  ;;  %v4781_v39 = vmul.f32 -1.442695, %v6315_v24  ;;  %v1489_v40 = vadd.f32 %v5317_v9, %v1488_v13  ;;  %v1598_v46 = vsel %vm1597_vm3, %v5313_v35, %v1594_v20 }
 0x1d6   : > { %v6328_v31 = vpop.eup %5324  ;;  %5328 = vrcp.f32 %v6320_v3  ;;  %v6331_v42 = vadd.f32 1.0, %v5323_v37  ;;  %v1606_v36 = vmul.f32 %v6318_v28, %v6275_v54  ;;  %v1603_v45 = vsel %vm6295_vm13, %v1602_v21, %v1598_v46 }
 0x1d7   : > { %5330 = vpow2.f32 %v4781_v39  ;;  %v1493_v47 = vsel %vm1492_vm6, %v5317_v9, %v1489_v40  ;;  %v1718_v58 = vmul.f32 %v1603_v45, %v6246_v50  ;;  %v1501_v63 = vmul.f32 %v6328_v31, %v6289_v44 }
 0x1d8   : > { %5332 = vrcp.f32 %v6331_v42  ;;  %v1396_v33 = vpop.f32.mrf.mxu2  ;;  %v1498_v32 = vsel %vm6309_vm0, %v1497_v34, %v1493_v47  ;;  %v1607_v48 = vsub.f32 1.0, %v1606_v36  ;;  %vm1611_vm7 = vweird.f32 %v6318_v28 }
 0x1d9   : > { %v6346_v59 = vadd.f32 %v6237_v22, %v1396_v33  ;;  %v1711_v61 = vmul.f32 %v1498_v32, %v6250_v29  ;;  %4801 = vmatmul.msk.f32.vlgmr.msra.gmra.mxu3 %vm1332_vm4, %v1718_v58  ;;  %v1511_v35 = vand.u32 2147483648, %v6289_v44  ;;  %v1502_v5 = vsub.f32 1.0, %v1501_v63  ;;  %vm1612_vm10 = vmor %vm1610_vm2, %vm1611_vm7 }
 0x1da   : > { %v1378_v57 = vpop.f32.mrf.mxu0  ;;  %v1608_v4 = vmul.f32 %v6318_v28, %v1607_v48  ;;  %vm1506_vm5 = vweird.f32 %v6328_v31  ;;  %v1629_v44 = vand.u32 2147483647, %v6320_v3  ;;  %v1631_v13 = vand.u32 2147483648, %v6320_v3 }
 0x1db   : > { %v5327_v6 = vpop.eup %5326  ;;  %v4789_v60 = vmul.f32 -1.442695, %v6346_v59  ;;  %v6359_v7 = vadd.f32 %v6237_v22, %v1378_v57  ;;  %4794 = vmatmul.msk.f32.gmra.mxu1 %vm1332_vm4, %v1711_v61  ;;  %v1503_v12 = vmul.f32 %v6328_v31, %v1502_v5  ;;  %vm6388_vm12 = vmor %vm1505_vm8, %vm1506_vm5  ;;  %v1512_v54 = vor.u32 1.1754944e-38, %v1511_v35 }
 0x1dc   : > { %v5329_v51 = vpop.eup %5328  ;;  %v6363_v1 = vadd.f32 1.0, %v5327_v6  ;;  %v1609_v52 = vadd.f32 %v6318_v28, %v1608_v4  ;;  %vm1625_vm13 = vweird.f32 %v6320_v3  ;;  %vm1630_vm15 = vcmp.eq.f32.partialorder %v1629_v44, 8.507059e+37 }
 0x1dd   : > { %v5331_v27 = vpop.eup %5330  ;;  %5334 = vpow2.f32 %v4789_v60  ;;  %v4782_v11 = vmul.f32 -1.442695, %v6359_v7  ;;  %v1621_v10 = vmul.f32 %v5329_v51, %v6320_v3  ;;  %v1504_v56 = vadd.f32 %v6328_v31, %v1503_v12 }
 0x1de   : > { %v6380_v8 = vpop.eup %5332  ;;  %5336 = vrcp.f32 %v6363_v1  ;;  %v1613_v15 = vsel %vm1612_vm10, %v6318_v28, %v1609_v52  ;;  %v6393_v17 = vadd.f32 1.0, %v5331_v27  ;;  %vm1626_vm14 = vweird.f32 %v5329_v51 }
 0x1df   : > { %5338 = vpow2.f32 %v4782_v11  ;;  %v1618_v18 = vsel %vm6366_vm9, %v1617_v2, %v1613_v15  ;;  %v1622_v55 = vsub.f32 1.0, %v1621_v10  ;;  %v1508_v38 = vsel %vm6388_vm12, %v6328_v31, %v1504_v56  ;;  %vm1627_vm0 = vmor %vm1625_vm13, %vm1626_vm14 }
 0x1e0   : > { %v1398_v19 = vpop.f32.mrf.mxu2  ;;  %v1719_v21 = vmul.f32 %v1618_v18, %v6254_v30  ;;  %v1516_v28 = vmul.f32 %v6380_v8, %v6331_v42  ;;  %v1513_v34 = vsel %vm6376_vm11, %v1512_v54, %v1508_v38  ;;  %5340 = vrcp.f32 %v6393_v17 }
 0x1e1   : > { %v6401_v23 = vadd.f32 %v6237_v22, %v1398_v19  ;;  %v1623_v37 = vmul.f32 %v5329_v51, %v1622_v55  ;;  %v1712_v31 = vmul.f32 %v1513_v34, %v6258_v43  ;;  %v1632_v58 = vor.u32 1.1754944e-38, %v1631_v13 }
 0x1e2   : > { %4802 = vmatmul.msk.f32.gmra.mxu3 %vm1332_vm4, %v1719_v21  ;;  %v1381_v20 = vpop.f32.mrf.mxu0  ;;  %v1517_v47 = vsub.f32 1.0, %v1516_v28  ;;  %v1524_v32 = vand.u32 2147483647, %v6331_v42  ;;  %vm1521_vm1 = vweird.f32 %v6380_v8  ;;  %vm1520_vm2 = vweird.f32 %v6331_v42 }
 0x1e3   : > { %v5335_v39 = vpop.eup %5334  ;;  %v4790_v40 = vmul.f32 -1.442695, %v6401_v23  ;;  %v6416_v41 = vadd.f32 %v6237_v22, %v1381_v20  ;;  %v1624_v45 = vadd.f32 %v5329_v51, %v1623_v37  ;;  %4795 = vmatmul.msk.f32.gmra.mxu1 %vm1332_vm4, %v1712_v31  ;;  %v1526_v57 = vand.u32 2147483648, %v6331_v42  ;;  %vm1522_vm3 = vmor %vm1520_vm2, %vm1521_vm1 }
 0x1e4   : > { %v6419_v46 = vpop.eup %5336  ;;  %v6421_v36 = vadd.f32 1.0, %v5335_v39  ;;  %v1518_v63 = vmul.f32 %v6380_v8, %v1517_v47  ;;  %vm1525_vm6 = vcmp.eq.f32.partialorder %v1524_v32, 8.507059e+37  ;;  %v1644_v2 = vand.u32 2147483647, %v6363_v1 }
 0x1e5   : > { %v5339_v53 = vpop.eup %5338  ;;  %5342 = vpow2.f32 %v4790_v40  ;;  %v4783_v33 = vmul.f32 -1.442695, %v6416_v41  ;;  %v1628_v61 = vsel %vm1627_vm0, %v5329_v51, %v1624_v45  ;;  %v1636_v6 = vmul.f32 %v6419_v46, %v6363_v1 }
 0x1e6   : > { %v6429_v48 = vadd.f32 1.0, %v5339_v53  ;;  %v1633_v26 = vsel %vm1630_vm15, %v1632_v58, %v1628_v61  ;;  %v1519_v35 = vadd.f32 %v6380_v8, %v1518_v63  ;;  %v6440_v60 = vpop.eup %5340  ;;  %v1527_v51 = vor.u32 1.1754944e-38, %v1526_v57 }
 0x1e7   : > { %5344 = vpow2.f32 %v4783_v33  ;;  %v1720_v4 = vmul.f32 %v1633_v26, %v6268_v49  ;;  %v1637_v9 = vsub.f32 1.0, %v1636_v6  ;;  %v1646_v15 = vand.u32 2147483648, %v6363_v1 }
 0x1e8   : > { %5346 = vrcp.f32 %v6421_v36  ;;  %v1401_v3 = vpop.f32.mrf.mxu2  ;;  %v1523_v52 = vsel %vm1522_vm3, %v6380_v8, %v1519_v35  ;;  %vm1641_vm7 = vweird.f32 %v6419_v46  ;;  %vm1640_vm8 = vweird.f32 %v6363_v1 }
 0x1e9   : > { %v6443_v5 = vadd.f32 %v6237_v22, %v1401_v3  ;;  %5348 = vrcp.f32 %v6429_v48  ;;  %v1528_v14 = vsel %vm1525_vm6, %v1527_v51, %v1523_v52  ;;  %v1638_v10 = vmul.f32 %v6419_v46, %v1637_v9  ;;  %vm1642_vm9 = vmor %vm1640_vm8, %vm1641_vm7 }
 0x1ea   : > { %4803 = vmatmul.msk.f32.gmra.mxu3 %vm1332_vm4, %v1720_v4  ;;  %v1383_v42 = vpop.f32.mrf.mxu0  ;;  %v1713_v54 = vmul.f32 %v1528_v14, %v6272_v0  ;;  %vm6461_vm5 = vcmp.eq.f32.partialorder %v1644_v2, 8.507059e+37  ;;  %v1531_v44 = vmul.f32 %v6440_v60, %v6393_v17  ;;  %v1647_v38 = vor.u32 1.1754944e-38, %v1646_v15 }
 0x1eb   : > { %v5343_v27 = vpop.eup %5342  ;;  %v4791_v11 = vmul.f32 -1.442695, %v6443_v5  ;;  %v6451_v12 = vadd.f32 %v6237_v22, %v1383_v42  ;;  %v1639_v55 = vadd.f32 %v6419_v46, %v1638_v10  ;;  %vm1535_vm10 = vweird.f32 %v6393_v17 }
 0x1ec   : > { %v6454_v16 = vadd.f32 1.0, %v5343_v27  ;;  %4796 = vmatmul.msk.f32.gmra.mxu1 %vm1332_vm4, %v1713_v54  ;;  %v1539_v1 = vand.u32 2147483647, %v6393_v17  ;;  %v1532_v34 = vsub.f32 1.0, %v1531_v44  ;;  %vm1536_vm11 = vweird.f32 %v6440_v60 }
 0x1ed   : > { %v5345_v8 = vpop.eup %5344  ;;  %5350 = vpow2.f32 %v4791_v11  ;;  %v4784_v18 = vmul.f32 -1.442695, %v6451_v12  ;;  %v1643_v20 = vsel %vm1642_vm9, %v6419_v46, %v1639_v55  ;;  %v1541_v37 = vand.u32 2147483648, %v6393_v17  ;;  %vm6491_vm12 = vmor %vm1535_vm10, %vm1536_vm11 }
 0x1ee   : > { %v5347_v19 = vpop.eup %5346  ;;  %5352 = vrcp.f32 %v6454_v16  ;;  %v6466_v21 = vadd.f32 1.0, %v5345_v8  ;;  %v1648_v40 = vsel %vm6461_vm5, %v1647_v38, %v1643_v20  ;;  %v1533_v47 = vmul.f32 %v6440_v60, %v1532_v34 }
 0x1ef   : > { %5354 = vpow2.f32 %v4784_v18  ;;  %v6474_v13 = vpop.eup %5348  ;;  %v1651_v31 = vmul.f32 %v5347_v19, %v6421_v36  ;;  %v1721_v45 = vmul.f32 %v1648_v40, %v6305_v62  ;;  %vm6495_vm13 = vcmp.eq.f32.partialorder %v1539_v1, 8.507059e+37 }
 0x1f0   : > { %v1403_v28 = vpop.f32.mrf.mxu2  ;;  %5356 = vrcp.f32 %v6466_v21  ;;  %v1542_v58 = vor.u32 1.1754944e-38, %v1541_v37  ;;  %v1534_v26 = vadd.f32 %v6440_v60, %v1533_v47  ;;  %v1659_v17 = vand.u32 2147483647, %v6421_v36 }
 0x1f1   : > { %v6480_v39 = vadd.f32 %v6237_v22, %v1403_v28  ;;  %v1652_v32 = vsub.f32 1.0, %v1651_v31  ;;  %v1661_v57 = vand.u32 2147483648, %v6421_v36  ;;  %vm1656_vm14 = vweird.f32 %v5347_v19 }
 0x1f2   : > { %4804 = vmatmul.msk.f32.gmra.mxu3 %vm1332_vm4, %v1721_v45  ;;  %v1546_v35 = vmul.f32 %v6474_v13, %v6429_v48  ;;  %v1538_v51 = vsel %vm6491_vm12, %v6440_v60, %v1534_v26  ;;  %vm1655_vm15 = vweird.f32 %v6421_v36  ;;  %vm1660_vm0 = vcmp.eq.f32.partialorder %v1659_v17, 8.507059e+37 }
 0x1f3   : > { %v5351_v46 = vpop.eup %5350  ;;  %v4792_v53 = vmul.f32 -1.442695, %v6480_v39  ;;  %v1653_v4 = vmul.f32 %v5347_v19, %v1652_v32  ;;  %v1543_v42 = vsel %vm6495_vm13, %v1542_v58, %v1538_v51  ;;  %vm1657_vm1 = vmor %vm1655_vm15, %vm1656_vm14  ;;  %v1662_v11 = vor.u32 1.1754944e-38, %v1661_v57 }
 0x1f4   : > { %v6499_v61 = vpop.eup %5352  ;;  %v6501_v63 = vadd.f32 1.0, %v5351_v46  ;;  %v1547_v9 = vsub.f32 1.0, %v1546_v35  ;;  %v1714_v27 = vmul.f32 %v1543_v42, %v6315_v24  ;;  %vm1551_vm2 = vweird.f32 %v6474_v13 }
 0x1f5   : > { %v5355_v3 = vpop.eup %5354  ;;  %5358 = vpow2.f32 %v4792_v53  ;;  %v1654_v52 = vadd.f32 %v5347_v19, %v1653_v4  ;;  %v1554_v14 = vand.u32 2147483647, %v6429_v48  ;;  %v1556_v36 = vand.u32 2147483648, %v6429_v48 }
 0x1f6   : > { %5360 = vrcp.f32 %v6501_v63  ;;  %v6510_v6 = vadd.f32 1.0, %v5355_v3  ;;  %v6518_v2 = vpop.eup %5356  ;;  %v1548_v60 = vmul.f32 %v6474_v13, %v1547_v9  ;;  %v1666_v54 = vmul.f32 %v6499_v61, %v6454_v16  ;;  %4797 = vmatmul.msk.f32.gmra.mxu1 %vm1332_vm4, %v1714_v27 }
 0x1f7   : > { %v1658_v15 = vsel %vm1657_vm1, %v5347_v19, %v1654_v52  ;;  %vm1550_vm3 = vweird.f32 %v6429_v48  ;;  %vm6530_vm6 = vcmp.eq.f32.partialorder %v1554_v14, 8.507059e+37  ;;  %vm1670_vm7 = vweird.f32 %v6454_v16 }
 0x1f8   : > { %5362 = vrcp.f32 %v6510_v6  ;;  %v1663_v10 = vsel %vm1660_vm0, %v1662_v11, %v1658_v15  ;;  %v1549_v19 = vadd.f32 %v6474_v13, %v1548_v60  ;;  %v1667_v55 = vsub.f32 1.0, %v1666_v54  ;;  %vm1552_vm8 = vmor %vm1550_vm3, %vm1551_vm2 }
 0x1f9   : > { %v1722_v56 = vmul.f32 %v1663_v10, %v6346_v59  ;;  %v1557_v1 = vor.u32 1.1754944e-38, %v1556_v36  ;;  %v1676_v48 = vand.u32 2147483648, %v6454_v16  ;;  %v1561_v28 = vmul.f32 %v6518_v2, %v6466_v21 }
 0x1fa   : > { %v1553_v20 = vsel %vm1552_vm8, %v6474_v13, %v1549_v19  ;;  %v1668_v34 = vmul.f32 %v6499_v61, %v1667_v55  ;;  %vm1671_vm5 = vweird.f32 %v6499_v61  ;;  %v1674_v37 = vand.u32 2147483647, %v6454_v16 }
 0x1fb   : > { %v5359_v18 = vpop.eup %5358  ;;  %4805 = vmatmul.msk.f32.gmra.mxu3 %vm1332_vm4, %v1722_v56  ;;  %v1558_v40 = vsel %vm6530_vm6, %v1557_v1, %v1553_v20  ;;  %vm1565_vm9 = vweird.f32 %v6466_v21  ;;  %vm1566_vm10 = vweird.f32 %v6518_v2  ;;  %v1562_v13 = vsub.f32 1.0, %v1561_v28  ;;  %vm1672_vm11 = vmor %vm1670_vm7, %vm1671_vm5 }
 0x1fc   : > { %v5361_v44 = vpop.eup %5360  ;;  %v6537_v38 = vadd.f32 1.0, %v5359_v18  ;;  %v1715_v31 = vmul.f32 %v1558_v40, %v6359_v7  ;;  %v1669_v45 = vadd.f32 %v6499_v61, %v1668_v34  ;;  %v1569_v47 = vand.u32 2147483647, %v6466_v21  ;;  %vm6568_vm13 = vmor %vm1565_vm9, %vm1566_vm10 }
 0x1fd   : > { %v1677_v53 = vor.u32 1.1754944e-38, %v1676_v48  ;;  %v1571_v33 = vand.u32 2147483648, %v6466_v21  ;;  %v1681_v22 = vmul.f32 %v5361_v44, %v6501_v63  ;;  %vm1675_vm12 = vcmp.eq.f32.partialorder %v1674_v37, 8.507059e+37 }
 0x1fe   : > { %5364 = vrcp.f32 %v6537_v38  ;;  %v5363_v46 = vpop.eup %5362  ;;  %v1673_v58 = vsel %vm1672_vm11, %v6499_v61, %v1669_v45  ;;  %v1563_v32 = vmul.f32 %v6518_v2, %v1562_v13  ;;  %4798 = vmatmul.msk.f32.gmra.mxu1 %vm1332_vm4, %v1715_v31  ;;  %v1691_v3 = vand.u32 2147483648, %v6501_v63 }
 0x1ff   : > { %v1678_v26 = vsel %vm1675_vm12, %v1677_v53, %v1673_v58  ;;  %v1572_v17 = vor.u32 1.1754944e-38, %v1571_v33  ;;  %v1682_v57 = vsub.f32 1.0, %v1681_v22  ;;  %vm1570_vm14 = vcmp.eq.f32.partialorder %v1569_v47, 8.507059e+37 }
 0x200   : > { %v1723_v61 = vmul.f32 %v1678_v26, %v6401_v23  ;;  %v1564_v4 = vadd.f32 %v6518_v2, %v1563_v32  ;;  %v1576_v35 = vmul.f32 %v5363_v46, %v6510_v6  ;;  %vm1686_vm15 = vweird.f32 %v5361_v44 }
 0x201   : > { %v1683_v42 = vmul.f32 %v5361_v44, %v1682_v57  ;;  %v1689_v21 = vand.u32 2147483647, %v6501_v63  ;;  %vm1685_vm0 = vweird.f32 %v6501_v63  ;;  %v1586_v27 = vand.u32 2147483648, %v6510_v6 }
 0x202   : > { %v1568_v52 = vsel %vm6568_vm13, %v6518_v2, %v1564_v4  ;;  %v1577_v9 = vsub.f32 1.0, %v1576_v35  ;;  %v1692_v15 = vor.u32 1.1754944e-38, %v1691_v3  ;;  %vm1687_vm1 = vmor %vm1685_vm0, %vm1686_vm15  ;;  %vm1581_vm2 = vweird.f32 %v5363_v46 }
 0x203   : > { %4806 = vmatmul.msk.f32.gmra.mxu3 %vm1332_vm4, %v1723_v61  ;;  %v1573_v11 = vsel %vm1570_vm14, %v1572_v17, %v1568_v52  ;;  %v1684_v14 = vadd.f32 %v5361_v44, %v1683_v42  ;;  %v1584_v10 = vand.u32 2147483647, %v6510_v6  ;;  %vm1690_vm3 = vcmp.eq.f32.partialorder %v1689_v21, 8.507059e+37 }
 0x204   : > { %v5365_v51 = vpop.eup %5364  ;;  %v1716_v36 = vmul.f32 %v1573_v11, %v6416_v41  ;;  %v1578_v54 = vmul.f32 %v5363_v46, %v1577_v9  ;;  %vm1580_vm6 = vweird.f32 %v6510_v6  ;;  %v1587_v56 = vor.u32 1.1754944e-38, %v1586_v27 }
 0x205   : > { %v1696_v60 = vmul.f32 %v5365_v51, %v6537_v38  ;;  %v1688_v8 = vsel %vm1687_vm1, %v5361_v44, %v1684_v14  ;;  %v1706_v19 = vand.u32 2147483648, %v6537_v38  ;;  %vm1582_vm7 = vmor %vm1580_vm6, %vm1581_vm2  ;;  %vm1701_vm8 = vweird.f32 %v5365_v51 }
 0x206   : > { %v1693_v2 = vsel %vm1690_vm3, %v1692_v15, %v1688_v8  ;;  %v1579_v18 = vadd.f32 %v5363_v46, %v1578_v54  ;;  %4799 = vmatmul.msk.f32.gmra.mxu1 %vm1332_vm4, %v1716_v36  ;;  %v1704_v48 = vand.u32 2147483647, %v6537_v38  ;;  %vm1585_vm5 = vcmp.eq.f32.partialorder %v1584_v10, 8.507059e+37 }
 0x207   : > { %v1697_v63 = vsub.f32 1.0, %v1696_v60  ;;  %v1724_v55 = vmul.f32 %v1693_v2, %v6443_v5  ;;  %vm1700_vm9 = vweird.f32 %v6537_v38  ;;  %v1707_v6 = vor.u32 1.1754944e-38, %v1706_v19 }
 0x208   : > { %v1583_v28 = vsel %vm1582_vm7, %v5363_v46, %v1579_v18  ;;  %vm1702_vm10 = vmor %vm1700_vm9, %vm1701_vm8  ;;  %vm1705_vm11 = vcmp.eq.f32.partialorder %v1704_v48, 8.507059e+37  ;;  %vm1859_vm12 = vcmask 257024   ;;  %vm1892_vm13 = vcmask 519424  }
 0x209   : > { %v1698_v1 = vmul.f32 %v5365_v51, %v1697_v63  ;;  %v1588_v44 = vsel %vm1585_vm5, %v1587_v56, %v1583_v28  ;;  %v1876_v38 = vpack.c.bf16 %v6242_v25, %v6242_v25  ;;  %v1877_v53 = vpack.c.bf16 %v6250_v29, %v6250_v29 }
 0x20a   : > { %v1717_v34 = vmul.f32 %v1588_v44, %v6451_v12  ;;  %v1884_v58 = vpack.c.bf16 %v6246_v50, %v6246_v50  ;;  %v1878_v26 = vpack.c.bf16 %v6258_v43, %v6258_v43  ;;  %v1885_v17 = vpack.c.bf16 %v6254_v30, %v6254_v30 }
 0x20b   : > { %v1699_v20 = vadd.f32 %v5365_v51, %v1698_v1  ;;  %4807 = vmatmul.msk.f32.gmra.mxu3 %vm1332_vm4, %v1724_v55  ;;  %v1879_v3 = vpack.c.bf16 %v6272_v0, %v6272_v0  ;;  %v1886_v4 = vpack.c.bf16 %v6268_v49, %v6268_v49  ;;  %v1880_v0 = vpack.c.bf16 %v6315_v24, %v6315_v24 }
 0x20c   : > { %v1887_v21 = vpack.c.bf16 %v6305_v62, %v6305_v62  ;;  %v1881_v27 = vpack.c.bf16 %v6359_v7, %v6359_v7  ;;  %v1888_v24 = vpack.c.bf16 %v6346_v59, %v6346_v59  ;;  %v1882_v60 = vpack.c.bf16 %v6416_v41, %v6416_v41 }
 0x20d   : > { %v1703_v37 = vsel %vm1702_vm10, %v5365_v51, %v1699_v20  ;;  %v1889_v7 = vpack.c.bf16 %v6401_v23, %v6401_v23  ;;  %v1883_v8 = vpack.c.bf16 %v6451_v12, %v6451_v12  ;;  %v1890_v41 = vpack.c.bf16 %v6443_v5, %v6443_v5 }
 0x20e   : > { %v1708_v40 = vsel %vm1705_vm11, %v1707_v6, %v1703_v37  ;;  %4800 = vmatmul.msk.f32.gmra.mxu1 %vm1332_vm4, %v1717_v34  ;;  %v1891_v18 = vpack.c.bf16 %v6480_v39, %v6480_v39 }
 0x20f   : > { %v1725_v31 = vmul.f32 %v1708_v40, %v6480_v39 }
 0x213   : > { %4808 = vmatmul.msk.f32.gmra.mxu3 %vm1332_vm4, %v1725_v31 }
 0x250   : > { %v1795_v45 = vpop.f32.mrf.mxu1 }
 0x251   : > { %v1843_v13 = vpack.c.bf16 %v1795_v45, %v1795_v45 }
 0x253   : > { %1860 = vst.msk [vmem:[#allocation3] sm:$0xf] %vm1859_vm12, %v1843_v13 }
 0x254   : > { %1893 = vst.msk [vmem:[#allocation3] sm:$0xf] %vm1892_vm13, %v1876_v38 }
 0x258   : > { %v1798_v47 = vpop.f32.mrf.mxu1 }
 0x259   : > { %v1844_v46 = vpack.c.bf16 %v1798_v47, %v1798_v47 }
 0x25b   : > { %1861 = vst.msk [vmem:[#allocation3 + $0x4] sm:$0xf] %vm1859_vm12, %v1844_v46 }
 0x25c   : > { %1894 = vst.msk [vmem:[#allocation3 + $0x4] sm:$0xf] %vm1892_vm13, %v1877_v53  ;;  %v1819_v33 = vpop.f32.mrf.mxu3 }
 0x25d   : > { %v1851_v22 = vpack.c.bf16 %v1819_v33, %v1819_v33 }
 0x25f   : > { %1868 = vst.msk [vmem:[#allocation3 + $0x20] sm:$0xf] %vm1859_vm12, %v1851_v22 }
 0x260   : > { %1901 = vst.msk [vmem:[#allocation3 + $0x20] sm:$0xf] %vm1892_vm13, %v1884_v58  ;;  %v1801_v25 = vpop.f32.mrf.mxu1 }
 0x261   : > { %v1845_v32 = vpack.c.bf16 %v1801_v25, %v1801_v25 }
 0x263   : > { %1862 = vst.msk [vmem:[#allocation3 + $0x8] sm:$0xf] %vm1859_vm12, %v1845_v32 }
 0x264   : > { %1895 = vst.msk [vmem:[#allocation3 + $0x8] sm:$0xf] %vm1892_vm13, %v1878_v26 }
 0x265   : > { %v1822_v29 = vpop.f32.mrf.mxu3 }
 0x266   : > { %v1852_v16 = vpack.c.bf16 %v1822_v29, %v1822_v29 }
 0x268   : > { %1869 = vst.msk [vmem:[#allocation3 + $0x24] sm:$0xf] %vm1859_vm12, %v1852_v16 }
 0x269   : > { %1902 = vst.msk [vmem:[#allocation3 + $0x24] sm:$0xf] %vm1892_vm13, %v1885_v17  ;;  %v1804_v50 = vpop.f32.mrf.mxu1 }
 0x26a   : > { %v1846_v57 = vpack.c.bf16 %v1804_v50, %v1804_v50 }
 0x26c   : > { %1863 = vst.msk [vmem:[#allocation3 + $0xc] sm:$0xf] %vm1859_vm12, %v1846_v57 }
 0x26d   : > { %v1825_v61 = vpop.f32.mrf.mxu3  ;;  %1896 = vst.msk [vmem:[#allocation3 + $0xc] sm:$0xf] %vm1892_vm13, %v1879_v3 }
 0x26e   : > { %v1853_v43 = vpack.c.bf16 %v1825_v61, %v1825_v61 }
 0x270   : > { %1870 = vst.msk [vmem:[#allocation3 + $0x28] sm:$0xf] %vm1859_vm12, %v1853_v43 }
 0x271   : > { %1903 = vst.msk [vmem:[#allocation3 + $0x28] sm:$0xf] %vm1892_vm13, %v1886_v4 }
 0x273   : > { %v1807_v30 = vpop.f32.mrf.mxu1 }
 0x274   : > { %v1847_v51 = vpack.c.bf16 %v1807_v30, %v1807_v30 }
 0x275   : > { %v1828_v35 = vpop.f32.mrf.mxu3 }
 0x276   : > { %v1854_v42 = vpack.c.bf16 %v1828_v35, %v1828_v35  ;;  %1864 = vst.msk [vmem:[#allocation3 + $0x10] sm:$0xf] %vm1859_vm12, %v1847_v51 }
 0x277   : > { %1897 = vst.msk [vmem:[#allocation3 + $0x10] sm:$0xf] %vm1892_vm13, %v1880_v0 }
 0x278   : > { %1871 = vst.msk [vmem:[#allocation3 + $0x2c] sm:$0xf] %vm1859_vm12, %v1854_v42 }
 0x279   : > { %1904 = vst.msk [vmem:[#allocation3 + $0x2c] sm:$0xf] %vm1892_vm13, %v1887_v21 }
 0x27b   : > { %v1810_v49 = vpop.f32.mrf.mxu1 }
 0x27c   : > { %v1848_v52 = vpack.c.bf16 %v1810_v49, %v1810_v49 }
 0x27e   : > { %v1831_v9 = vpop.f32.mrf.mxu3  ;;  %1865 = vst.msk [vmem:[#allocation3 + $0x14] sm:$0xf] %vm1859_vm12, %v1848_v52 }
 0x27f   : > { %v1855_v11 = vpack.c.bf16 %v1831_v9, %v1831_v9  ;;  %1898 = vst.msk [vmem:[#allocation3 + $0x14] sm:$0xf] %vm1892_vm13, %v1881_v27 }
 0x281   : > { %1872 = vst.msk [vmem:[#allocation3 + $0x30] sm:$0xf] %vm1859_vm12, %v1855_v11 }
 0x282   : > { %1905 = vst.msk [vmem:[#allocation3 + $0x30] sm:$0xf] %vm1892_vm13, %v1888_v24 }
 0x283   : > { %v1813_v62 = vpop.f32.mrf.mxu1 }
 0x284   : > { %v1849_v14 = vpack.c.bf16 %v1813_v62, %v1813_v62 }
 0x286   : > { %v1834_v15 = vpop.f32.mrf.mxu3  ;;  %1866 = vst.msk [vmem:[#allocation3 + $0x18] sm:$0xf] %vm1859_vm12, %v1849_v14 }
 0x287   : > { %v1856_v36 = vpack.c.bf16 %v1834_v15, %v1834_v15  ;;  %1899 = vst.msk [vmem:[#allocation3 + $0x18] sm:$0xf] %vm1892_vm13, %v1882_v60 }
 0x289   : > { %1873 = vst.msk [vmem:[#allocation3 + $0x34] sm:$0xf] %vm1859_vm12, %v1856_v36 }
 0x28a   : > { %1906 = vst.msk [vmem:[#allocation3 + $0x34] sm:$0xf] %vm1892_vm13, %v1889_v7 }
 0x28b   : > { %v1816_v59 = vpop.f32.mrf.mxu1 }
 0x28c   : > { %v1850_v54 = vpack.c.bf16 %v1816_v59, %v1816_v59 }
 0x28e   : > { %v1837_v10 = vpop.f32.mrf.mxu3  ;;  %1867 = vst.msk [vmem:[#allocation3 + $0x1c] sm:$0xf] %vm1859_vm12, %v1850_v54 }
 0x28f   : > { %v1857_v63 = vpack.c.bf16 %v1837_v10, %v1837_v10  ;;  %1900 = vst.msk [vmem:[#allocation3 + $0x1c] sm:$0xf] %vm1892_vm13, %v1883_v8 }
 0x291   : > { %1874 = vst.msk [vmem:[#allocation3 + $0x38] sm:$0xf] %vm1859_vm12, %v1857_v63 }
 0x292   : > { %1907 = vst.msk [vmem:[#allocation3 + $0x38] sm:$0xf] %vm1892_vm13, %v1890_v41 }
 0x296   : > { %v1840_v23 = vpop.f32.mrf.mxu3 }
 0x297   : > { %v1858_v2 = vpack.c.bf16 %v1840_v23, %v1840_v23 }
 0x299   : > { %1875 = vst.msk [vmem:[#allocation3 + $0x3c] sm:$0xf] %vm1859_vm12, %v1858_v2 }
 0x29a   : > { %1908 = vst.msk [vmem:[#allocation3 + $0x3c] sm:$0xf] %vm1892_vm13, %v1891_v18 }
 0x29b PF: > { %v1909_v5 = vld [vmem:[%s5741_s26] sm:$0xff]  ;;  %v5553_v12 = vmov 2   ;;  %v5554_v56 = vmov 1   ;;  %v8837_v19 = vmov 0   ;;  %v1910_v39 = vld [vmem:[%s5741_s26 + $0x8] sm:$0xff]  ;;  %v1911_v55 = vld [vmem:[%s5741_s26 + $0x10] sm:$0xff] }
 0x29c   : > { %5368 = vset.pattern.permute.xlu2 %v5553_v12  ;;  %5367 = vset.pattern.permute.xlu1 %v5554_v56  ;;  %v1912_v1 = vld [vmem:[%s5741_s26 + $0x18] sm:$0xff]  ;;  %v1913_v48 = vld [vmem:[%s5741_s26 + $0x20] sm:$0xff]  ;;  %v1914_v28 = vld [vmem:[%s5741_s26 + $0x28] sm:$0xff]  ;;  %s8966_s17 = sld [smem:[#allocation59_spill]]  ;;  %s5563_s22 = smov 96  }
 0x29d   : > { %5366 = vset.pattern.permute.xlu0 %v8837_v19  ;;  %2074 = vperm.xlu2 %5368, %v1909_v5   ;;  %v1915_v44 = vld [vmem:[%s5741_s26 + $0x30] sm:$0xff]  ;;  %v1916_v20 = vld [vmem:[%s5741_s26 + $0x38] sm:$0xff]  ;;  %v1918_v6 = vld [vmem:[%s5746_s24 + $0x8] sm:$0xff]  ;;  %s9022_s18 = sld [smem:[#allocation60_spill]]  ;;  %p4929_p5 = scmp.ne.s32.totalorder %s5537_s28, 1 }
 0x29e   : > { %2033 = vperm.xlu1 %5367, %v1909_v5   ;;  %1985 = vperm.xlu0 %5366, %v1909_v5   ;;  %v1923_v34 = vld [vmem:[%s5746_s24 + $0x30] sm:$0xff]  ;;  %v1917_v37 = vld [vmem:[%s5746_s24] sm:$0xff]  ;;  %v1920_v40 = vld [vmem:[%s5746_s24 + $0x18] sm:$0xff]  ;;  %s9095_s27 = sld [smem:[#allocation61_spill]] (!%p4929_p5)  ;;  %s5565_s30 = smov (!%p4929_p5), 32  }
 0x29f   : > { %v1919_v31 = vld [vmem:[%s5746_s24 + $0x10] sm:$0xff]  ;;  %v1922_v45 = vld [vmem:[%s5746_s24 + $0x28] sm:$0xff]  ;;  %v1921_v13 = vld [vmem:[%s5746_s24 + $0x20] sm:$0xff] }
 0x2a0   : > { %v1924_v38 = vld [vmem:[%s5746_s24 + $0x38] sm:$0xff]  ;;  %s9006_s24 = sld [smem:[#allocation21_spill]] }
 0x2a2   : > { %v1976_v47 = vld [vmem:[%s8966_s17] sm:$0x7]  ;;  %s9099_s17 = sld [smem:[#allocation62_spill]] (!%p4929_p5) }
 0x2a3   : > { %v6689_v53 = vperm.slane %v1976_v47, 2  ;;  %v6691_v33 = vperm.slane %v1976_v47, 1  ;;  %v6693_v22 = vperm.slane %v1976_v47, 0 }
 0x2a4   : > { %s9096_s19 = smov (!%p4929_p5), %s9095_s27 }
 0x2a5   : > { %2078 = vperm.xlu2 %5368, %v1910_v39  }
 0x2a6   : > { %2037 = vperm.xlu1 %5367, %v1910_v39   ;;  %1990 = vperm.xlu0 %5366, %v1910_v39   ;;  %s8364_s0 = scalar_lea.vmem [#allocation2], %s9006_s24  ;;  %s8476_s13 = scalar_lea.vmem [#allocation4], %s9006_s24 }
 0x2ad   : > { %5370 = vset.pattern.permute.xlu2 %v5554_v56 }
 0x2ae   : > { %5369 = vset.pattern.permute.xlu1 %v8837_v19  ;;  %1995 = vperm.xlu0 %5366, %v1911_v55  }
 0x2af   : > { %2041 = vperm.xlu2 %5370, %v1911_v55   ;;  %2000 = vperm.xlu1 %5369, %v1912_v1  }
 0x2b6   : > { %5371 = vset.pattern.permute.xlu0 %v5554_v56 }
 0x2b7   : > { %5373 = vset.pattern.permute.xlu2 %v5553_v12  ;;  %5372 = vset.pattern.permute.xlu1 %v5553_v12 }
 0x2b8   : > { %2045 = vperm.xlu0 %5371, %v1912_v1   ;;  %2086 = vperm.xlu2 %5373, %v1912_v1  }
 0x2b9   : > { %2082 = vperm.xlu1 %5372, %v1911_v55  }
 0x2c0   : > { %2049 = vperm.xlu0 %5371, %v1913_v48   ;;  %5375 = vset.pattern.permute.xlu2 %v8837_v19 }
 0x2c1   : > { %5374 = vset.pattern.permute.xlu1 %v8837_v19  ;;  %2010 = vperm.xlu2 %5375, %v1914_v28  }
 0x2c2   : > { %2005 = vperm.xlu1 %5374, %v1913_v48  }
 0x2c8   : > { %5378 = vset.pattern.permute.xlu0 %v5553_v12 }
 0x2c9   : > { %2094 = vperm.xlu0 %5378, %v1914_v28   ;;  %5377 = vset.pattern.permute.xlu2 %v5553_v12 }
 0x2ca   : > { %5376 = vset.pattern.permute.xlu1 %v5554_v56  ;;  %2090 = vperm.xlu2 %5377, %v1913_v48  }
 0x2cb   : > { %2053 = vperm.xlu1 %5376, %v1914_v28  }
 0x2d1   : > { %2098 = vperm.xlu0 %5378, %v1915_v44  }
 0x2d2   : > { %5380 = vset.pattern.permute.xlu2 %v8837_v19 }
 0x2d3   : > { %5379 = vset.pattern.permute.xlu1 %v8837_v19  ;;  %2020 = vperm.xlu2 %5380, %v1916_v20  }
 0x2d4   : > { %2015 = vperm.xlu1 %5379, %v1915_v44  }
 0x2d9   : > { %5385 = vset.pattern.permute.xlu0 %v8837_v19 }
 0x2da   : > { %2158 = vperm.xlu0 %5385, %v1918_v6  }
 0x2db   : > { %5382 = vset.pattern.permute.xlu2 %v5554_v56 }
 0x2dc   : > { %5381 = vset.pattern.permute.xlu1 %v5554_v56  ;;  %2061 = vperm.xlu2 %5382, %v1916_v20  }
 0x2dd   : > { %2057 = vperm.xlu1 %5381, %v1915_v44  }
 0x2e2   : > { %2173 = vperm.xlu0 %5385, %v1923_v34  }
 0x2e4   : > { %5384 = vset.pattern.permute.xlu2 %v8837_v19 }
 0x2e5   : > { %5383 = vset.pattern.permute.xlu1 %v5553_v12  ;;  %2155 = vperm.xlu2 %5384, %v1917_v37  }
 0x2e6   : > { %2102 = vperm.xlu1 %5383, %v1916_v20  }
 0x2ed   : > { %2164 = vperm.xlu2 %5384, %v1920_v40  }
 0x2ee   : > { %5386 = vset.pattern.permute.xlu1 %v8837_v19 }
 0x2ef   : > { %2161 = vperm.xlu1 %5386, %v1919_v31  }
 0x2f5   : > { %2170 = vperm.xlu2 %5384, %v1922_v45  }
 0x2f7   : > { %2167 = vperm.xlu1 %5386, %v1921_v13   ;;  %v2075_v46 = vpop.permute.xlu2 %2074 }
 0x2f8   : > { %v6696_v58 = vsub.f32 %v6689_v53, %v2075_v46 }
 0x2fa   : > { %8967 = vst [vmem:[#allocation22_spill] sm:$0xff] %v6696_v58  ;;  %v2137_v16 = vmul.f32 %v6696_v58, %v6696_v58 }
 0x2ff   : > { %2176 = vperm.xlu1 %5386, %v1924_v38   ;;  %v2079_v57 = vpop.permute.xlu2 %2078 }
 0x300   : > { %v6724_v21 = vsub.f32 %v6689_v53, %v2079_v57 }
 0x302   : > { %8973 = vst [vmem:[#allocation28_spill] sm:$0xff] %v6724_v21  ;;  %v2138_v9 = vmul.f32 %v6724_v21, %v6724_v21 }
 0x309   : > { %v6726_v49 = vpop.permute.xlu2 %2041 }
 0x310   : > { %v2034_v25 = vpop.permute.xlu1 %2033  ;;  %v1986_v32 = vpop.permute.xlu0 %1985 }
 0x311   : > { %v6699_v26 = vsub.f32 %v6691_v33, %v2034_v25  ;;  %v6702_v29 = vsub.f32 %v6693_v22, %v1986_v32 }
 0x312   : > { %v2087_v59 = vpop.permute.xlu2 %2086 }
 0x313   : > { %8968 = vst [vmem:[#allocation23_spill] sm:$0xff] %v6699_v26  ;;  %v2121_v17 = vmul.f32 %v6699_v26, %v6699_v26  ;;  %v2113_v50 = vmul.f32 %v6702_v29, %v6702_v29  ;;  %v6736_v54 = vsub.f32 %v6689_v53, %v2087_v59  ;;  %v8839_v59 = vmov 683565275  }
 0x314   : > { %8969 = vst [vmem:[#allocation24_spill] sm:$0xff] %v6702_v29 }
 0x315   : > { %v2129_v3 = vadd.f32 %v2121_v17, %v2113_v50  ;;  %8975 = vst [vmem:[#allocation30_spill] sm:$0xff] %v6736_v54  ;;  %v2140_v18 = vmul.f32 %v6736_v54, %v6736_v54 }
 0x317   : > { %v6710_v61 = vadd.f32 %v2137_v16, %v2129_v3 }
 0x318   : > { %v2038_v43 = vpop.permute.xlu1 %2037  ;;  %v1991_v4 = vpop.permute.xlu0 %1990 }
 0x319   : > { %8970 = vst [vmem:[#allocation25_spill] sm:$0xff] %v6710_v61  ;;  %v2218_v30 = vadd.f32 1e-12, %v6710_v61  ;;  %v6714_v35 = vsub.f32 %v6691_v33, %v2038_v43  ;;  %v6717_v51 = vsub.f32 %v6693_v22, %v1991_v4 }
 0x31b   : > { %8971 = vst [vmem:[#allocation26_spill] sm:$0xff] %v6714_v35  ;;  %5389 = vrsqrt.f32 %v2218_v30  ;;  %v2122_v42 = vmul.f32 %v6714_v35, %v6714_v35  ;;  %v2114_v0 = vmul.f32 %v6717_v51, %v6717_v51  ;;  %vm2232_vm14 = vweird.f32 %v2218_v30 }
 0x31c   : > { %8972 = vst [vmem:[#allocation27_spill] sm:$0xff] %v6717_v51 }
 0x31d   : > { %v2130_v52 = vadd.f32 %v2122_v42, %v2114_v0 }
 0x31f   : > { %v6732_v62 = vadd.f32 %v2138_v9, %v2130_v52  ;;  %v8835_v52 = vmov 2475754826  }
 0x320   : > { %v6730_v27 = vpop.permute.xlu0 %1995 }
 0x321   : > { %v5390_v11 = vpop.eup %5389  ;;  %8974 = vst [vmem:[#allocation29_spill] sm:$0xff] %v6732_v62  ;;  %v2219_v60 = vadd.f32 1e-12, %v6732_v62  ;;  %v2001_v36 = vpop.permute.xlu1 %2000 }
 0x322   : > { %v2227_v24 = vmul.f32 %v5390_v11, %v2218_v30  ;;  %vm2233_vm4 = vweird.f32 %v5390_v11  ;;  %v6739_v10 = vsub.f32 %v6693_v22, %v2001_v36  ;;  %v8831_v36 = vmov 2102212464  }
 0x323   : > { %5391 = vrsqrt.f32 %v2219_v60  ;;  %vm2234_vm15 = vmor %vm2232_vm14, %vm2233_vm4  ;;  %vm2242_vm6 = vweird.f32 %v2219_v60 }
 0x324   : > { %v2228_v14 = vmul.f32 %v5390_v11, %v2227_v24  ;;  %8976 = vst [vmem:[#allocation31_spill] sm:$0xff] %v6739_v10  ;;  %v2116_v5 = vmul.f32 %v6739_v10, %v6739_v10 }
 0x326   : > { %v2229_v15 = vmul.f32 0.5, %v2228_v14 }
 0x328   : > { %v2230_v7 = vsub.f32 1.5, %v2229_v15 }
 0x329   : > { %v5392_v55 = vpop.eup %5391 }
 0x32a   : > { %v2231_v8 = vmul.f32 %v5390_v11, %v2230_v7  ;;  %v2046_v63 = vpop.permute.xlu0 %2045  ;;  %v2237_v20 = vmul.f32 %v5392_v55, %v2219_v60  ;;  %vm2243_vm2 = vweird.f32 %v5392_v55 }
 0x32b   : > { %v6742_v41 = vsub.f32 %v6691_v33, %v2046_v63  ;;  %v6756_v28 = vpop.permute.xlu1 %2082  ;;  %vm6766_vm8 = vmor %vm2242_vm6, %vm2243_vm2 }
 0x32c   : > { %v2235_v23 = vsel %vm2234_vm15, %v5390_v11, %v2231_v8  ;;  %v2238_v40 = vmul.f32 %v5392_v55, %v2237_v20  ;;  %v8833_v11 = vmov 2131351028  }
 0x32d   : > { %8977 = vst [vmem:[#allocation32_spill] sm:$0xff] %v6742_v41  ;;  %v2306_v2 = vmul.f32 %v2235_v23, %v6710_v61  ;;  %v2124_v12 = vmul.f32 %v6742_v41, %v6742_v41 }
 0x32e   : > { %v2239_v13 = vmul.f32 0.5, %v2238_v40  ;;  %v2011_v40 = vpop.permute.xlu2 %2010 }
 0x32f   : > { %v6751_v56 = vmul.f32 0.62831855, %v2306_v2  ;;  %v2132_v39 = vadd.f32 %v2124_v12, %v2116_v5  ;;  %v8829_v2 = vmov 920167782  }
 0x330   : > { %v2240_v32 = vsub.f32 1.5, %v2239_v13 }
 0x331   : > { %v2325_v1 = vand.u32 2139095040, %v6751_v56  ;;  %v6754_v48 = vadd.f32 %v2140_v18, %v2132_v39  ;;  %v8826_v43 = vand.u32 2147483647, %v6751_v56 }
 0x332   : > { %v6761_v17 = vpop.permute.xlu0 %2049  ;;  %v2241_v3 = vmul.f32 %v5392_v55, %v2240_v32 }
 0x333   : > { %8978 = vst [vmem:[#allocation33_spill] sm:$0xff] %v6754_v48  ;;  %v2326_v44 = vshrl.u32 %v2325_v1, 23  ;;  %v2221_v6 = vadd.f32 1e-12, %v6754_v48  ;;  %v2329_v60 = vand.u32 8388607, %v8826_v43 }
 0x334   : > { %v6759_v47 = vpop.permute.xlu1 %2005  ;;  %v2245_v14 = vsel %vm6766_vm8, %v5392_v55, %v2241_v3 }
 0x335   : > { %v4809_v34 = vadd.s32 4294967169, %v2326_v44  ;;  %5393 = vrsqrt.f32 %v2221_v6  ;;  %vm2262_vm3 = vweird.f32 %v2221_v6 }
 0x337   : > { %v2332_v37 = vadd.s32 1, %v4809_v34 }
 0x339   : > { %vm2333_vm0 = vcmp.gt.s32.totalorder %v2332_v37, 0 }
 0x33a   : > { %v2334_v45 = vsel %vm2333_vm0, %v2332_v37, 0  ;;  %v2307_v37 = vmul.f32 %v2245_v14, %v6732_v62 }
 0x33b   : > { %v5394_v31 = vpop.eup %5393  ;;  %v2336_v46 = vand.u32 31, %v2334_v45  ;;  %v6786_v5 = vshrl.u32 %v2334_v45, 5  ;;  %v2095_v45 = vpop.permute.xlu0 %2094 }
 0x33c   : > { %v2257_v38 = vmul.f32 %v5394_v31, %v2221_v6  ;;  %vm2263_vm1 = vweird.f32 %v5394_v31  ;;  %v8827_v6 = vmov 1326507024   ;;  %v6809_v32 = vsub.f32 %v6689_v53, %v2095_v45 }
 0x33d   : > { %v6763_v50 = vsub.s32 32, %v2336_v46  ;;  %vm2264_vm7 = vmor %vm2262_vm3, %vm2263_vm1  ;;  %v2054_v0 = vpop.permute.xlu1 %2053  ;;  %v2339_v8 = vshll.u32 %v8839_v59, %v2336_v46  ;;  %v2342_v63 = vshll.u32 %v8835_v52, %v2336_v46  ;;  %v2348_v23 = vshll.u32 %v8831_v36, %v2336_v46 }
 0x33e   : > { %v2258_v25 = vmul.f32 %v5394_v31, %v2257_v38  ;;  %v6791_v39 = vsub.f32 %v6691_v33, %v2054_v0  ;;  %v2345_v55 = vshll.u32 %v8833_v11, %v2336_v46  ;;  %v2351_v38 = vshll.u32 %v8829_v2, %v2336_v46  ;;  %8983 = vst [vmem:[#allocation36_spill] sm:$0xff] %v6809_v32 }
 0x33f   : > { %v2340_v9 = vshrl.u32 %v8835_v52, %v6763_v50  ;;  %v2343_v24 = vshrl.u32 %v8833_v11, %v6763_v50  ;;  %v2346_v7 = vshrl.u32 %v8831_v36, %v6763_v50  ;;  %v2349_v18 = vshrl.u32 %v8829_v2, %v6763_v50 }
 0x340   : > { %v2259_v16 = vmul.f32 0.5, %v2258_v25  ;;  %8981 = vst [vmem:[#allocation34_spill] sm:$0xff] %v6791_v39  ;;  %v2352_v34 = vshrl.u32 %v8827_v6, %v6763_v50  ;;  %v6806_v25 = vsub.f32 %v6693_v22, %v2011_v40  ;;  %vm2354_vm5 = vcmp.lt.s32.totalorder %v6786_v5, 1 }
 0x341   : > { %v6794_v1 = vor.u32 %v2340_v9, %v2339_v8  ;;  %v6796_v44 = vor.u32 %v2343_v24, %v2342_v63  ;;  %v2350_v20 = vor.u32 %v2349_v18, %v2348_v23  ;;  %v6802_v13 = vor.u32 %v2346_v7, %v2345_v55 }
 0x342   : > { %v2260_v57 = vsub.f32 1.5, %v2259_v16  ;;  %8982 = vst [vmem:[#allocation35_spill] sm:$0xff] %v6806_v25  ;;  %v2330_v16 = vor.u32 8388608, %v2329_v60  ;;  %v2353_v3 = vor.u32 %v2352_v34, %v2351_v38  ;;  %vm2357_vm9 = vcmp.lt.s32.totalorder %v6786_v5, 4 }
 0x343   : > { %vm2356_vm10 = vcmp.lt.s32.totalorder %v6786_v5, 3  ;;  %v2362_v46 = vsel %vm2354_vm5, %v6794_v1, %v6796_v44  ;;  %v2363_v30 = vsel %vm2357_vm9, %v2350_v20, 920167782  ;;  %v6826_v0 = vmul.f32 0.62831855, %v2307_v37 }
 0x344   : > { %v2261_v4 = vmul.f32 %v5394_v31, %v2260_v57  ;;  %v6830_v9 = vsub.f32 %v6693_v22, %v6730_v27  ;;  %v2364_v24 = vsel %vm2356_vm10, %v6802_v13, %v2363_v30  ;;  %v2118_v14 = vmul.f32 %v6806_v25, %v6806_v25 }
 0x345   : > { %8985 = vst [vmem:[#allocation38_spill] sm:$0xff] %v6826_v0  ;;  %vm2355_vm11 = vcmp.lt.s32.totalorder %v6786_v5, 2  ;;  %v6844_v60 = vsub.f32 %v6689_v53, %v6756_v28  ;;  %v2367_v7 = vsel %vm2357_vm9, %v2353_v3, 1326507024  ;;  %v2142_v8 = vmul.f32 %v6809_v32, %v6809_v32 }
 0x346   : > { %v2265_v42 = vsel %vm2264_vm7, %v5394_v31, %v2261_v4  ;;  %v2126_v4 = vmul.f32 %v6791_v39, %v6791_v39  ;;  %8986 = vst [vmem:[#allocation39_spill] sm:$0xff] %v6830_v9  ;;  %v2365_v27 = vsel %vm2355_vm11, %v2362_v46, %v2364_v24  ;;  %v2368_v23 = vsel %vm2356_vm10, %v2350_v20, %v2367_v7  ;;  %v2091_v24 = vpop.permute.xlu2 %2090 }
 0x347   : > { %v2309_v15 = vmul.f32 %v2265_v42, %v6754_v48  ;;  %v6824_v42 = vsub.f32 %v6691_v33, %v6726_v49  ;;  %v2366_v49 = vsel %vm2354_vm5, %v6796_v44, %v6802_v13  ;;  %8987 = vst [vmem:[#allocation40_spill] sm:$0xff] %v6844_v60  ;;  %v6854_v18 = vshll.u32 %v2330_v16, 8 }
 0x348   : > { %v2134_v63 = vadd.f32 %v2126_v4, %v2118_v14  ;;  %v2479_v28 = vand.u32 2139095040, %v6826_v0  ;;  %v2115_v34 = vmul.f32 %v6830_v9, %v6830_v9  ;;  %v2369_v37 = vsel %vm2355_vm11, %v2366_v49, %v2368_v23 }
 0x349   : > { %v6788_v12 = vmul.f32 0.62831855, %v2309_v15  ;;  %8984 = vst [vmem:[#allocation37_spill] sm:$0xff] %v6824_v42  ;;  %v2123_v55 = vmul.f32 %v6824_v42, %v6824_v42  ;;  %v2139_v45 = vmul.f32 %v6844_v60, %v6844_v60  ;;  %v2373_v38 = vand.u32 65535, %v2369_v37 }
 0x34a   : > { %v2395_v20 = vand.u32 65535, %v2365_v27  ;;  %v6865_v16 = vadd.f32 %v2142_v8, %v2134_v63  ;;  %v2372_v3 = vshrl.u32 %v6854_v18, 16  ;;  %v2374_v4 = vshrl.u32 %v2369_v37, 16 }
 0x34b   : > { %v2787_v31 = vand.u32 2139095040, %v6788_v12  ;;  %v2480_v46 = vshrl.u32 %v2479_v28, 23  ;;  %v2131_v30 = vadd.f32 %v2123_v55, %v2115_v34  ;;  %v6870_v7 = vsub.f32 %v6689_v53, %v2091_v24 }
 0x34c   : > { %8988 = vst [vmem:[#allocation41_spill] sm:$0xff] %v6865_v16  ;;  %v2377_v49 = vmul.u32 %v2373_v38, %v2372_v3  ;;  %v2399_v23 = vmul.u32 %v2395_v20, %v2372_v3  ;;  %v2378_v34 = vmul.u32 %v2374_v4, %v2372_v3  ;;  %v8996_v39 = vmov 1326507024  }
 0x34d   : > { %v2788_v57 = vshrl.u32 %v2787_v31, 23  ;;  %v2396_v31 = vshrl.u32 %v2365_v27, 16  ;;  %8989 = vst [vmem:[#allocation42_spill] sm:$0xff] %v6870_v7  ;;  %v6872_v43 = vadd.f32 %v2139_v45, %v2131_v30  ;;  %v6875_v27 = vadd.f32 1e-12, %v6865_v16 }
 0x34e   : > { %v4812_v6 = vadd.s32 4294967169, %v2480_v46  ;;  %v2381_v2 = vshll.u32 %v2377_v49, 16  ;;  %v2403_v24 = vshll.u32 %v2399_v23, 16  ;;  %v8999_v48 = vmov 0  }
 0x34f   : > { %v4818_v15 = vadd.s32 4294967169, %v2788_v57  ;;  %v2371_v57 = vand.u32 65535, %v6854_v18  ;;  %5395 = vrsqrt.f32 %v6875_v27  ;;  %v2400_v46 = vmul.u32 %v2396_v31, %v2372_v3 }
 0x350   : > { %v2338_v3 = vshrl.u32 %v8839_v59, %v6763_v50 }
 0x351   : > { %v2794_v40 = vadd.s32 1, %v4818_v15  ;;  %v2376_v14 = vmul.u32 %v2374_v4, %v2371_v57  ;;  %v2398_v15 = vmul.u32 %v2396_v31, %v2371_v57  ;;  %v2375_v8 = vmul.u32 %v2373_v38, %v2371_v57 }
 0x352   : > { %v2397_v28 = vmul.u32 %v2395_v20, %v2371_v57  ;;  %v6882_v20 = vadd.f32 1e-12, %v6872_v43  ;;  %v6886_v57 = vsub.f32 %v6691_v33, %v6761_v17  ;;  %v2486_v31 = vadd.s32 1, %v4812_v6 }
 0x353   : > { %vm2795_vm12 = vcmp.gt.s32.totalorder %v2794_v40, 0  ;;  %v2379_v63 = vshll.u32 %v2376_v14, 16  ;;  %v2401_v55 = vshll.u32 %v2398_v15, 16  ;;  %v2380_v4 = vshrl.u32 %v2376_v14, 16 }
 0x354   : > { %v2796_v37 = vsel %vm2795_vm12, %v2794_v40, 0  ;;  %8990 = vst [vmem:[#allocation43_spill] sm:$0xff] %v6886_v57  ;;  %v2402_v14 = vshrl.u32 %v2398_v15, 16  ;;  %5397 = vrsqrt.f32 %v6882_v20  ;;  %vm2487_vm0 = vcmp.gt.s32.totalorder %v2486_v31, 0 }
 0x355   : > { %vm2383_vm13 = vc.u32 %v2375_v8, %v2379_v63  ;;  %v2385_v36 = vadd.s32 %v2379_v63, %v2375_v8  ;;  %vm2405_vm4 = vc.u32 %v2397_v28, %v2401_v55  ;;  %v2407_v52 = vadd.s32 %v2401_v55, %v2397_v28 }
 0x356   : > { %v2384_v11 = vsel %vm2383_vm13, 1, %v8837_v19  ;;  %v2798_v45 = vand.u32 31, %v2796_v37  ;;  %v2406_v40 = vsel %vm2405_vm4, 1, %v8837_v19  ;;  %v6890_v63 = vsub.f32 %v6693_v22, %v6759_v47 }
 0x357   : > { %v2386_v30 = vadd.s32 %v2384_v11, %v2378_v34  ;;  %vm2387_vm14 = vc.u32 %v2385_v36, %v2381_v2  ;;  %vm2409_vm15 = vc.u32 %v2407_v52, %v2403_v24  ;;  %v2359_v11 = vsel %vm2357_vm9, %v6802_v13, 2102212464 }
 0x358   : > { %v2388_v38 = vsel %vm2387_vm14, 1, %v8837_v19  ;;  %8991 = vst [vmem:[#allocation44_spill] sm:$0xff] %v6890_v63  ;;  %v2408_v36 = vadd.s32 %v2406_v40, %v2400_v46  ;;  %v2410_v2 = vsel %vm2409_vm15, 1, %v8837_v19  ;;  %v2382_v28 = vshrl.u32 %v2377_v49, 16 }
 0x359   : > { %v2390_v8 = vadd.s32 %v2388_v38, %v2386_v30  ;;  %v6898_v55 = vsub.s32 32, %v2798_v45  ;;  %v6900_v30 = vpop.eup %5395  ;;  %v2141_v47 = vmul.f32 %v6870_v7, %v6870_v7  ;;  %v2358_v13 = vsel %vm2354_vm5, %v2338_v3, %v6794_v1 }
 0x35a   : > { %v2412_v34 = vadd.s32 %v2410_v2, %v2408_v36  ;;  %v2360_v6 = vsel %vm2356_vm10, %v6796_v44, %v2359_v11  ;;  %v2404_v49 = vshrl.u32 %v2399_v23, 16  ;;  %v8842_v38 = vand.u32 2147483647, %v6788_v12 }
 0x35b   : > { %v2391_v17 = vadd.s32 %v2390_v8, %v2380_v4  ;;  %v2117_v46 = vmul.f32 %v6890_v63, %v6890_v63  ;;  %v2125_v40 = vmul.f32 %v6886_v57, %v6886_v57  ;;  %v6918_v1 = vadd.s32 %v2407_v52, %v2403_v24 }
 0x35c   : > { %v2413_v15 = vadd.s32 %v2412_v34, %v2402_v14  ;;  %v2277_v44 = vmul.f32 %v6900_v30, %v6875_v27  ;;  %v2361_v4 = vsel %vm2355_vm11, %v2358_v13, %v2360_v6  ;;  %v8992_v23 = vmov 2475754826  }
 0x35d   : > { %v6910_v50 = vadd.s32 %v2391_v17, %v2382_v28  ;;  %v2802_v11 = vshrl.u32 %v8992_v23, %v6898_v55  ;;  %v2801_v36 = vshll.u32 %v8839_v59, %v2798_v45  ;;  %v2804_v2 = vshll.u32 %v8992_v23, %v2798_v45 }
 0x35e   : > { %v2414_v8 = vadd.s32 %v2413_v15, %v2404_v49  ;;  %v8993_v52 = vmov 2131351028   ;;  %v2791_v28 = vand.u32 8388607, %v8842_v38  ;;  %v8994_v17 = vmov 2102212464   ;;  %v6944_v15 = vpop.eup %5397 }
 0x35f   : > { %vm2417_vm1 = vc.u32 %v6910_v50, %v6918_v1  ;;  %v2805_v24 = vshrl.u32 %v8993_v52, %v6898_v55  ;;  %v2807_v5 = vshll.u32 %v8993_v52, %v2798_v45  ;;  %v2808_v14 = vshrl.u32 %v8994_v17, %v6898_v55 }
 0x360   : > { %v2418_v3 = vadd.s32 1, %v2414_v8  ;;  %v6937_v34 = vshrl.u32 %v2796_v37, 5  ;;  %v2415_v13 = vmul.u32 %v6854_v18, %v2361_v4  ;;  %v6940_v6 = vor.u32 %v2802_v11, %v2801_v36 }
 0x361   : > { %v6942_v49 = vor.u32 %v2805_v24, %v2804_v2  ;;  %v2809_v59 = vor.u32 %v2808_v14, %v2807_v5  ;;  %v2810_v7 = vshll.u32 %v8994_v17, %v2798_v45  ;;  %v8995_v38 = vmov 920167782  }
 0x362   : > { %v2419_v19 = vsel %vm2417_vm1, %v2418_v3, %v2414_v8  ;;  %v2811_v57 = vshrl.u32 %v8995_v38, %v6898_v55  ;;  %v2133_v63 = vadd.f32 %v2125_v40, %v2117_v46  ;;  %v2813_v37 = vshll.u32 %v8995_v38, %v2798_v45 }
 0x363   : > { %v2420_v32 = vadd.s32 %v2419_v19, %v2415_v13  ;;  %v2814_v18 = vshrl.u32 %v8996_v39, %v6898_v55  ;;  %v2488_v4 = vsel %vm2487_vm0, %v2486_v31, 0  ;;  %v2278_v11 = vmul.f32 %v6900_v30, %v2277_v44 }
 0x364   : > { %v2792_v36 = vor.u32 8388608, %v2791_v28  ;;  %v2812_v2 = vor.u32 %v2811_v57, %v2810_v7  ;;  %vm2816_vm2 = vcmp.lt.s32.totalorder %v6937_v34, 1  ;;  %vm2819_vm3 = vcmp.lt.s32.totalorder %v6937_v34, 4 }
 0x365   : > { %v2421_v8 = vadd.s32 536870912, %v2420_v32  ;;  %v2815_v24 = vor.u32 %v2814_v18, %v2813_v37  ;;  %vm2818_vm6 = vcmp.lt.s32.totalorder %v6937_v34, 3  ;;  %v2824_v19 = vsel %vm2816_vm2, %v6940_v6, %v6942_v49 }
 0x366   : > { %v2825_v45 = vsel %vm2819_vm3, %v2812_v2, 920167782  ;;  %v2828_v7 = vsel %vm2816_vm2, %v6942_v49, %v2809_v59  ;;  %v6966_v57 = vadd.f32 %v2141_v47, %v2133_v63  ;;  %v6974_v44 = vand.u32 31, %v2488_v4 }
 0x367   : > { %v6968_v31 = vshrl.u32 %v2421_v8, 30  ;;  %v2826_v46 = vsel %vm2818_vm6, %v2809_v59, %v2825_v45  ;;  %v2829_v40 = vsel %vm2819_vm3, %v2815_v24, 1326507024  ;;  %vm2817_vm7 = vcmp.lt.s32.totalorder %v6937_v34, 2 }
 0x368   : > { %8997 = vst [vmem:[#allocation45_spill] sm:$0xff] %v6966_v57  ;;  %v2830_v3 = vsel %vm2818_vm6, %v2812_v2, %v2829_v40  ;;  %v6979_v28 = vshll.u32 %v2792_v36, 8  ;;  %v6981_v5 = vmul.f32 0.5, %v2278_v11  ;;  %v2827_v47 = vsel %vm2817_vm7, %v2824_v19, %v2826_v46 }
 0x369   : > { %v2423_v63 = vshll.u32 %v6968_v31, 30  ;;  %v2831_v14 = vsel %vm2817_vm7, %v2828_v7, %v2830_v3  ;;  %v6992_v36 = vmul.f32 %v6944_v15, %v6882_v20  ;;  %v6994_v2 = vshrl.u32 %v2488_v4, 5 }
 0x36a   : > { %v2833_v13 = vand.u32 65535, %v6979_v28  ;;  %v2834_v37 = vshrl.u32 %v6979_v28, 16  ;;  %v2835_v18 = vand.u32 65535, %v2831_v14  ;;  %v2836_v8 = vshrl.u32 %v2831_v14, 16 }
 0x36b   : > { %v2424_v11 = vsub.s32 %v2420_v32, %v2423_v63  ;;  %v6997_v24 = vadd.f32 1e-12, %v6966_v57  ;;  %v2857_v46 = vand.u32 65535, %v2827_v47  ;;  %v2858_v40 = vshrl.u32 %v2827_v47, 16 }
 0x36c   : > { %v2838_v19 = vmul.u32 %v2836_v8, %v2833_v13  ;;  %v2839_v45 = vmul.u32 %v2835_v18, %v2834_v37  ;;  %v7000_v3 = vsub.s32 32, %v6974_v44  ;;  %v2280_v14 = vsub.f32 1.5, %v6981_v5 }
 0x36d   : > { %vm2425_vm8 = vcmp.lt.s32.totalorder %v2424_v11, 0  ;;  %v2426_v7 = vsub.s32 0, %v2424_v11  ;;  %v2837_v25 = vmul.u32 %v2835_v18, %v2833_v13  ;;  %v8998_v32 = vmov 683565275  }
 0x36e   : > { %v2841_v60 = vshll.u32 %v2838_v19, 16  ;;  %v2800_v4 = vshrl.u32 %v8998_v32, %v6898_v55  ;;  %v2821_v63 = vsel %vm2819_vm3, %v2809_v59, 2102212464  ;;  %v2840_v9 = vmul.u32 %v2836_v8, %v2834_v37 }
 0x36f   : > { %v2427_v42 = vsel %vm2425_vm8, %v2426_v7, %v2424_v11  ;;  %v2843_v41 = vshll.u32 %v2839_v45, 16  ;;  %v2416_v47 = vadd.s32 %v6918_v1, %v6910_v50  ;;  %v2860_v5 = vmul.u32 %v2858_v40, %v2833_v13 }
 0x370   : > { %v2428_v54 = vclz %v2427_v42  ;;  %vm2845_vm5 = vc.u32 %v2837_v25, %v2841_v60  ;;  %v2847_v10 = vadd.s32 %v2841_v60, %v2837_v25  ;;  %v2861_v18 = vmul.u32 %v2857_v46, %v2834_v37 }
 0x371   : > { %v2846_v21 = vsel %vm2845_vm5, 1, %v8999_v48  ;;  %v2820_v55 = vsel %vm2816_vm2, %v2800_v4, %v6940_v6  ;;  %v2822_v59 = vsel %vm2818_vm6, %v6942_v49, %v2821_v63  ;;  %v2859_v42 = vmul.u32 %v2857_v46, %v2833_v13 }
 0x372   : > { %v4810_v35 = vadd.s32 4294967294, %v2428_v54  ;;  %v2848_v7 = vadd.s32 %v2846_v21, %v2840_v9  ;;  %vm2849_vm9 = vc.u32 %v2847_v10, %v2843_v41  ;;  %v2863_v60 = vshll.u32 %v2860_v5, 16 }
 0x373   : > { %v2850_v25 = vsel %vm2849_vm9, 1, %v8999_v48  ;;  %v2842_v50 = vshrl.u32 %v2838_v19, 16  ;;  %v2844_v1 = vshrl.u32 %v2839_v45, 16  ;;  %v2865_v54 = vshll.u32 %v2861_v18, 16 }
 0x374   : > { %vm4811_vm10 = vcmp.lt.s32.totalorder %v4810_v35, 0  ;;  %v2852_v8 = vadd.s32 %v2850_v25, %v2848_v7  ;;  %vm2867_vm11 = vc.u32 %v2859_v42, %v2863_v60  ;;  %v2869_v58 = vadd.s32 %v2863_v60, %v2859_v42 }
 0x375   : > { %v2431_v51 = vsel %vm4811_vm10, 0, %v4810_v35  ;;  %v2862_v10 = vmul.u32 %v2858_v40, %v2834_v37  ;;  %vm2282_vm12 = vweird.f32 %v6875_v27  ;;  %v2868_v9 = vsel %vm2867_vm11, 1, %v8999_v48 }
 0x376   : > { %v2432_v26 = vsub.s32 32, %v2431_v51  ;;  %v2436_v6 = vsub.s32 4294967266, %v2431_v51  ;;  %v2853_v21 = vadd.s32 %v2852_v8, %v2842_v50  ;;  %v2433_v41 = vshll.u32 %v2424_v11, %v2431_v51 }
 0x377   : > { %vm2871_vm13 = vc.u32 %v2869_v58, %v2865_v54  ;;  %v8861_v49 = vand.u32 2147483647, %v6826_v0  ;;  %v2870_v35 = vadd.s32 %v2868_v9, %v2862_v10  ;;  %v7023_v46 = vmul.f32 %v6900_v30, %v2280_v14 }
 0x378   : > { %v2434_v13 = vshrl.u32 %v2416_v47, %v2432_v26  ;;  %v2437_v19 = vadd.s32 127, %v2436_v6  ;;  %v7020_v45 = vadd.s32 %v2853_v21, %v2844_v1  ;;  %vm2283_vm4 = vweird.f32 %v6900_v30 }
 0x379   : > { %v2864_v4 = vshrl.u32 %v2860_v5, 16  ;;  %v2872_v37 = vsel %vm2871_vm13, 1, %v8999_v48  ;;  %v7027_v11 = vadd.s32 %v2869_v58, %v2865_v54  ;;  %vm2324_vm14 = vcmp.lt.s32.totalorder %v6751_v56, 0  ;;  %vm7068_vm1 = vmor %vm2282_vm12, %vm2283_vm4 }
 0x37a   : > { %v2435_v40 = vor.u32 %v2434_v13, %v2433_v41  ;;  %v2438_v51 = vshll.u32 %v2437_v19, 23  ;;  %v2874_v63 = vadd.s32 %v2872_v37, %v2870_v35  ;;  %v2823_v26 = vsel %vm2817_vm7, %v2820_v55, %v2822_v59 }
 0x37b   : > { %v2866_v47 = vshrl.u32 %v2861_v18, 16  ;;  %v2483_v14 = vand.u32 8388607, %v8861_v49  ;;  %v2497_v7 = vshrl.u32 %v8993_v52, %v7000_v3  ;;  %v9000_v5 = vand.u32 2147483647, %v6751_v56 }
 0x37c   : > { %v2439_v58 = vor.u32 4788187, %v2438_v51  ;;  %v2875_v42 = vadd.s32 %v2874_v63, %v2864_v4  ;;  %vm2879_vm0 = vc.u32 %v7020_v45, %v7027_v11  ;;  %v2494_v34 = vshrl.u32 %v8992_v23, %v7000_v3 }
 0x37d   : > { %vm7038_vm15 = vcmp.le.f32.partialorder %v9000_v5, 0.7853982  ;;  %v2442_v18 = vcvt.s32.f32 %v2435_v40  ;;  %v2496_v55 = vshll.u32 %v8992_v23, %v6974_v44  ;;  %v2499_v59 = vshll.u32 %v8993_v52, %v6974_v44 }
 0x37e   : > { %v2500_v60 = vshrl.u32 %v8994_v17, %v7000_v3  ;;  %v2440_v50 = vand.u32 2147483647, %v2439_v58  ;;  %v2876_v1 = vadd.s32 %v2875_v42, %v2866_v47  ;;  %v2502_v8 = vshll.u32 %v8994_v17, %v6974_v44 }
 0x37f   : > { %v2503_v54 = vshrl.u32 %v8995_v38, %v7000_v3  ;;  %v7056_v6 = vor.u32 %v2497_v7, %v2496_v55  ;;  %v2505_v10 = vshll.u32 %v8995_v38, %v6974_v44  ;;  %v2506_v41 = vshrl.u32 %v8996_v39, %v7000_v3 }
 0x380   : > { %v7058_v21 = vor.u32 %v2500_v60, %v2499_v59  ;;  %v2443_v13 = vmul.f32 %v2442_v18, %v2440_v50  ;;  %v2880_v19 = vadd.s32 1, %v2876_v1  ;;  %v2493_v35 = vshll.u32 %v8998_v32, %v6974_v44 }
 0x381   : > { %v2504_v4 = vor.u32 %v2503_v54, %v2502_v8  ;;  %v2285_v37 = vsel %vm7068_vm1, %v6900_v30, %v7023_v46  ;;  %v2877_v40 = vmul.u32 %v6979_v28, %v2823_v26  ;;  %v2484_v51 = vor.u32 8388608, %v2483_v14 }
 0x382   : > { %v2507_v63 = vor.u32 %v2506_v41, %v2505_v10  ;;  %v2444_v27 = vxor.u32 2147483648, %v2443_v13  ;;  %v2881_v47 = vsel %vm2879_vm0, %v2880_v19, %v2876_v1  ;;  %v7082_v7 = vor.u32 %v2494_v34, %v2493_v35 }
 0x383   : > { %vm2508_vm2 = vcmp.lt.s32.totalorder %v6994_v2, 1  ;;  %v2882_v44 = vadd.s32 %v2881_v47, %v2877_v40  ;;  %vm2509_vm3 = vcmp.lt.s32.totalorder %v6994_v2, 2  ;;  %vm2511_vm6 = vcmp.lt.s32.totalorder %v6994_v2, 4 }
 0x384   : > { %v2520_v30 = vsel %vm2508_vm2, %v7056_v6, %v7058_v21  ;;  %v2445_v28 = vsel %vm2324_vm14, %v2444_v27, %v2443_v13  ;;  %vm2510_vm7 = vcmp.lt.s32.totalorder %v6994_v2, 3  ;;  %v2517_v46 = vsel %vm2511_vm6, %v2504_v4, 920167782 }
 0x385   : > { %v2521_v26 = vsel %vm2511_vm6, %v2507_v63, 1326507024  ;;  %v7101_v14 = vsel %vm7038_vm15, %v6751_v56, %v2445_v28  ;;  %v2883_v5 = vadd.s32 536870912, %v2882_v44  ;;  %v7105_v42 = vshll.u32 %v2484_v51, 8 }
 0x386   : > { %v2522_v58 = vsel %vm2510_vm7, %v2504_v4, %v2521_v26  ;;  %v2248_v34 = vmul.f32 %v6944_v15, %v6992_v36  ;;  %5399 = vrsqrt.f32 %v6997_v24  ;;  %v7112_v18 = vmul.f32 %v7101_v14, %v7101_v14 }
 0x387   : > { %v2523_v55 = vsel %vm2509_vm3, %v2520_v30, %v2522_v58  ;;  %v7116_v59 = vshrl.u32 %v2883_v5, 30  ;;  %v2516_v60 = vsel %vm2508_vm2, %v7082_v7, %v7056_v6  ;;  %v2518_v36 = vsel %vm2510_vm7, %v7058_v21, %v2517_v46 }
 0x388   : > { %v2527_v50 = vand.u32 65535, %v2523_v55  ;;  %v2311_v1 = vmul.f32 %v2285_v37, %v6865_v16  ;;  %v2458_v8 = vmul.f32 -0.00019511016, %v7112_v18  ;;  %v2525_v54 = vand.u32 65535, %v7105_v42 }
 0x389   : > { %9005 = vst [vmem:[#allocation46_spill] sm:$0xff] %v7116_v59  ;;  %v2528_v10 = vshrl.u32 %v2523_v55, 16  ;;  %v1925_v41 = vlaneseq  ;;  %v2885_v9 = vshll.u32 %v7116_v59, 30  ;;  %v2526_v13 = vshrl.u32 %v7105_v42, 16  ;;  %v2016_v55 = vpop.permute.xlu1 %2015 }
 0x38a   : > { %v2519_v19 = vsel %vm2509_vm3, %v2516_v60, %v2518_v36  ;;  %v2249_v4 = vmul.f32 0.5, %v2248_v34  ;;  %v7138_v63 = vmul.f32 0.62831855, %v2311_v1  ;;  %v2459_v27 = vadd.f32 0.008332121, %v2458_v8 }
 0x38b   : > { %v2530_v35 = vmul.u32 %v2528_v10, %v2525_v54  ;;  %v7132_v40 = vsub.s32 %v2882_v44, %v2885_v9  ;;  %v7134_v51 = vmul.u32 %v2527_v50, %v2526_v13  ;;  %v2529_v47 = vmul.u32 %v2527_v50, %v2525_v54 }
 0x38c   : > { %v7136_v37 = vpop.eup %5399  ;;  %9007 = vst [vmem:[#allocation47_spill] sm:$0xff] %v7138_v63  ;;  %v7140_v28 = vshrl.u32 %v1925_v41, 7  ;;  %v7143_v46 = vstv %s9006_s24  ;;  %v2550_v5 = vshrl.u32 %v2519_v19, 16  ;;  %v2451_v58 = vmul.f32 -0.001358992, %v7112_v18 }
 0x38d   : > { %v2533_v30 = vshll.u32 %v2530_v35, 16  ;;  %9009 = vst [vmem:[#allocation49_spill] sm:$0xff] %v7143_v46  ;;  %v2888_v26 = vsub.s32 0, %v7132_v40  ;;  %vm2887_vm8 = vcmp.lt.s32.totalorder %v7132_v40, 0  ;;  %v2250_v34 = vsub.f32 1.5, %v2249_v4 }
 0x38e   : > { %9008 = vst [vmem:[#allocation48_spill] sm:$0xff] %v7140_v28  ;;  %v2532_v60 = vmul.u32 %v2528_v10, %v2526_v13  ;;  %v2535_v36 = vshll.u32 %v7134_v51, 16  ;;  %v2549_v50 = vand.u32 65535, %v2519_v19  ;;  %v2267_v1 = vmul.f32 %v7136_v37, %v6997_v24 }
 0x38f   : > { %vm2537_vm5 = vc.u32 %v2529_v47, %v2533_v30  ;;  %v2539_v44 = vadd.s32 %v2533_v30, %v2529_v47  ;;  %v3095_v8 = vand.u32 2139095040, %v7138_v63  ;;  %v2460_v9 = vmul.f32 %v2459_v27, %v7112_v18 }
 0x390   : > { %v2538_v49 = vsel %vm2537_vm5, 1, %v8999_v48  ;;  %v2889_v16 = vsel %vm2887_vm8, %v2888_v26, %v7132_v40  ;;  %v2552_v47 = vmul.u32 %v2550_v5, %v2525_v54  ;;  %v2452_v4 = vadd.f32 0.041655596, %v2451_v58 }
 0x391   : > { %v2540_v59 = vadd.s32 %v2538_v49, %v2532_v60  ;;  %vm2541_vm9 = vc.u32 %v2539_v44, %v2535_v36  ;;  %v7158_v19 = vadd.s32 %v7143_v46, %v7140_v28  ;;  %v2553_v30 = vmul.u32 %v2549_v50, %v2526_v13  ;;  %v2099_v44 = vpop.permute.xlu0 %2098 }
 0x392   : > { %v2542_v10 = vsel %vm2541_vm9, 1, %v8999_v48  ;;  %v2555_v62 = vshll.u32 %v2552_v47, 16  ;;  %v7161_v29 = vmul.f32 %v6944_v15, %v2250_v34  ;;  %v7163_v27 = vand.u32 127, %v1925_v41 }
 0x393   : > { %9010 = vst [vmem:[#allocation50_spill] sm:$0xff] %v7158_v19  ;;  %v2890_v61 = vclz %v2889_v16  ;;  %v2544_v0 = vadd.s32 %v2542_v10, %v2540_v59  ;;  %vm2253_vm10 = vweird.f32 %v6944_v15  ;;  %v2268_v49 = vmul.f32 %v7136_v37, %v2267_v1 }
 0x394   : > { %v3096_v26 = vshrl.u32 %v3095_v8, 23  ;;  %v2461_v58 = vadd.f32 -0.16666654, %v2460_v9  ;;  %v2551_v60 = vmul.u32 %v2549_v50, %v2525_v54  ;;  %v2453_v36 = vmul.f32 %v2452_v4, %v7112_v18  ;;  %v2058_v4 = vpop.permute.xlu1 %2057 }
 0x395   : > { %v7169_v19 = vsub.f32 %v6689_v53, %v2099_v44  ;;  %v7172_v34 = vsub.f32 %v6693_v22, %v2016_v55  ;;  %v2534_v41 = vshrl.u32 %v2530_v35, 16  ;;  %vm2252_vm11 = vweird.f32 %v6882_v20 }
 0x396   : > { %v2554_v16 = vmul.u32 %v2550_v5, %v2526_v13  ;;  %v2557_v59 = vshll.u32 %v2553_v30, 16  ;;  %vm2559_vm12 = vc.u32 %v2551_v60, %v2555_v62  ;;  %v2561_v10 = vadd.s32 %v2555_v62, %v2551_v60  ;;  %v2021_v13 = vpop.permute.xlu2 %2020  ;;  %vm7212_vm0 = vmor %vm2252_vm11, %vm2253_vm10 }
 0x397   : > { %9011 = vst [vmem:[#allocation51_spill] sm:$0xff] %v7169_v19  ;;  %v4819_v1 = vadd.s32 4294967294, %v2890_v61  ;;  %v2492_v8 = vshrl.u32 %v8998_v32, %v7000_v3  ;;  %v2545_v54 = vadd.s32 %v2544_v0, %v2534_v41  ;;  %v2560_v50 = vsel %vm2559_vm12, 1, %v8999_v48 }
 0x398   : > { %9012 = vst [vmem:[#allocation52_spill] sm:$0xff] %v7172_v34  ;;  %v2462_v9 = vmul.f32 %v2461_v58, %v7112_v18  ;;  %v2513_v55 = vsel %vm2511_vm6, %v7058_v21, 2102212464  ;;  %v2562_v35 = vadd.s32 %v2560_v50, %v2554_v16  ;;  %vm2563_vm13 = vc.u32 %v2561_v10, %v2557_v59 }
 0x399   : > { %v4824_v5 = vadd.s32 4294967169, %v3096_v26  ;;  %v2446_v62 = vsub.s32 4, %v6968_v31  ;;  %v2536_v61 = vshrl.u32 %v7134_v51, 16  ;;  %v2564_v3 = vsel %vm2563_vm13, 1, %v8999_v48 }
 0x39a   : > { %v2454_v0 = vadd.f32 -0.4999988, %v2453_v36  ;;  %v2512_v58 = vsel %vm2508_vm2, %v2492_v8, %v7082_v7  ;;  %v2556_v44 = vshrl.u32 %v2552_v47, 16  ;;  %v2566_v60 = vadd.s32 %v2564_v3, %v2562_v35 }
 0x39b   : > { %vm4820_vm4 = vcmp.lt.s32.totalorder %v4819_v1, 0  ;;  %v2514_v21 = vsel %vm2510_vm7, %v7056_v6, %v2513_v55  ;;  %v7191_v41 = vadd.s32 %v2545_v54, %v2536_v61  ;;  %v7194_v26 = vsub.f32 %v6691_v33, %v2058_v4 }
 0x39c   : > { %v2463_v51 = vadd.f32 1.0, %v2462_v9  ;;  %v2119_v36 = vmul.f32 %v7172_v34, %v7172_v34  ;;  %v2558_v16 = vshrl.u32 %v2553_v30, 16  ;;  %v2567_v50 = vadd.s32 %v2566_v60, %v2556_v44 }
 0x39d   : > { %9013 = vst [vmem:[#allocation53_spill] sm:$0xff] %v7194_v26  ;;  %v3102_v48 = vadd.s32 1, %v4824_v5  ;;  %v2447_v7 = vsel %vm2324_vm14, %v2446_v62, %v6968_v31  ;;  %v7201_v47 = vadd.s32 %v2561_v10, %v2557_v59  ;;  %v2127_v6 = vmul.f32 %v7194_v26, %v7194_v26 }
 0x39e   : > { %v2455_v8 = vmul.f32 %v2454_v0, %v7112_v18  ;;  %v2893_v54 = vsel %vm4820_vm4, 0, %v4819_v1  ;;  %v2515_v9 = vsel %vm2509_vm3, %v2512_v58, %v2514_v21  ;;  %v2568_v55 = vadd.s32 %v2567_v50, %v2558_v16  ;;  %v2062_v58 = vpop.permute.xlu2 %2061 }
 0x39f   : > { %v2143_v31 = vmul.f32 %v7169_v19, %v7169_v19  ;;  %v1927_v59 = vadd.s32 8, %v7140_v28  ;;  %vm2571_vm14 = vc.u32 %v7191_v41, %v7201_v47  ;;  %v2135_v18 = vadd.f32 %v2127_v6, %v2119_v36 }
 0x3a0   : > { %v2255_v2 = vsel %vm7212_vm0, %v6944_v15, %v7161_v29  ;;  %v2449_v20 = vsel %vm7038_vm15, 0, %v2447_v7  ;;  %v2464_v10 = vmul.f32 %v2463_v51, %v7101_v14  ;;  %v2572_v1 = vadd.s32 1, %v2568_v55 }
 0x3a1   : > { %vm3103_vm1 = vcmp.gt.s32.totalorder %v3102_v48, 0  ;;  %v2898_v35 = vsub.s32 4294967266, %v2893_v54  ;;  %v2569_v4 = vmul.u32 %v7105_v42, %v2515_v9  ;;  %v7229_v5 = vadd.f32 %v2143_v31, %v2135_v18 }
 0x3a2   : > { %v7232_v62 = vsub.f32 %v6693_v22, %v2021_v13  ;;  %v2269_v61 = vmul.f32 0.5, %v2268_v49  ;;  %v2456_v3 = vadd.f32 1.0, %v2455_v8  ;;  %v2573_v0 = vsel %vm2571_vm14, %v2572_v1, %v2568_v55 }
 0x3a3   : > { %9016 = vst [vmem:[#allocation54_spill] sm:$0xff] %v7229_v5  ;;  %v2466_v29 = vand.u32 3, %v2449_v20  ;;  %v2894_v15 = vsub.s32 32, %v2893_v54  ;;  %v2574_v25 = vadd.s32 %v2573_v0, %v2569_v4  ;;  %v7235_v44 = vadd.f32 1e-12, %v7229_v5 }
 0x3a4   : > { %9017 = vst [vmem:[#allocation55_spill] sm:$0xff] %v7232_v62  ;;  %v2308_v14 = vmul.f32 %v2255_v2, %v6872_v43  ;;  %v7239_v60 = vsub.f32 %v6691_v33, %v2062_v58  ;;  %v3104_v42 = vsel %vm3103_vm1, %v3102_v48, 0  ;;  %v2469_v21 = vxor.u32 2147483648, %v2464_v10 }
 0x3a5   : > { %v2878_v22 = vadd.s32 %v7027_v11, %v7020_v45  ;;  %v2899_v49 = vadd.s32 127, %v2898_v35  ;;  %v2575_v13 = vadd.s32 536870912, %v2574_v25  ;;  %5401 = vrsqrt.f32 %v7235_v44 }
 0x3a6   : > { %9018 = vst [vmem:[#allocation56_spill] sm:$0xff] %v7239_v60  ;;  %v2120_v51 = vmul.f32 %v7232_v62, %v7232_v62  ;;  %v2270_v36 = vsub.f32 1.5, %v2269_v61  ;;  %v2472_v16 = vxor.u32 2147483648, %v2456_v3  ;;  %v7247_v50 = vadd.s32 %v7143_v46, %v1927_v59 }
 0x3a7   : > { %v3106_v7 = vand.u32 31, %v3104_v42  ;;  %vm2468_vm15 = vcmp.eq.s32.totalorder %v2466_v29, 0  ;;  %v2896_v33 = vshrl.u32 %v2878_v22, %v2894_v15  ;;  %v7249_v48 = vshrl.u32 %v2575_v13, 30 }
 0x3a8   : > { %v7251_v6 = vmul.f32 0.62831855, %v2308_v14  ;;  %v2128_v45 = vmul.f32 %v7239_v60, %v7239_v60  ;;  %vm2465_vm2 = vweird.f32 %v6751_v56  ;;  %v2470_v11 = vsel %vm2468_vm15, %v2456_v3, %v2469_v21 }
 0x3a9   : > { %vm2471_vm3 = vcmp.eq.s32.totalorder %v2466_v29, 2  ;;  %v2895_v8 = vshll.u32 %v7132_v40, %v2893_v54  ;;  %v2900_v9 = vshll.u32 %v2899_v49, 23  ;;  %v2577_v55 = vshll.u32 %v7249_v48, 30 }
 0x3aa   : > { %v7259_v30 = vmul.f32 %v7136_v37, %v2270_v36  ;;  %vm2273_vm6 = vweird.f32 %v7136_v37  ;;  %vm2467_vm7 = vcmp.lt.s32.totalorder %v2466_v29, 2  ;;  %v2473_v31 = vsel %vm2471_vm3, %v2472_v16, %v2464_v10 }
 0x3ab   : > { %v5402_v59 = vpop.eup %5401  ;;  %v7262_v18 = vsub.s32 32, %v3106_v7  ;;  %v2474_v2 = vsel %vm2467_vm7, %v2470_v11, %v2473_v31  ;;  %v2897_v20 = vor.u32 %v2896_v33, %v2895_v8  ;;  %v7264_v1 = vsub.s32 %v2574_v25, %v2577_v55 }
 0x3ac   : > { %v2633_v35 = vand.u32 2139095040, %v7251_v6  ;;  %vm2272_vm8 = vweird.f32 %v6997_v24  ;;  %v7268_v40 = vadd.f32 %v2128_v45, %v2120_v51  ;;  %v2287_v54 = vmul.f32 %v5402_v59, %v7235_v44 }
 0x3ad   : > { %vm7271_vm5 = vmor %vm2272_vm8, %vm2273_vm6  ;;  %v2901_v10 = vor.u32 4788187, %v2900_v9  ;;  %vm2579_vm9 = vcmp.lt.s32.totalorder %v7264_v1, 0  ;;  %v2580_v61 = vsub.s32 0, %v7264_v1  ;;  %v8874_v3 = vand.u32 2147483647, %v7138_v63 }
 0x3ae   : > { %v2275_v24 = vsel %vm7271_vm5, %v7136_v37, %v7259_v30  ;;  %v7282_v0 = vshrl.u32 %v3104_v42, 5  ;;  %v2475_v58 = vsel %vm2465_vm2, nan, %v2474_v2  ;;  %v2288_v29 = vmul.f32 %v5402_v59, %v2287_v54 }
 0x3af   : > { %v2904_v15 = vcvt.s32.f32 %v2897_v20  ;;  %v2570_v25 = vadd.s32 %v7201_v47, %v7191_v41  ;;  %v2581_v14 = vsel %vm2579_vm9, %v2580_v61, %v7264_v1  ;;  %v3119_v21 = vshrl.u32 %v8995_v38, %v7262_v18 }
 0x3b0   : > { %v2582_v22 = vclz %v2581_v14  ;;  %v2289_v49 = vmul.f32 0.5, %v2288_v29  ;;  %v3110_v37 = vshrl.u32 %v8992_v23, %v7262_v18  ;;  %v3113_v42 = vshrl.u32 %v8993_v52, %v7262_v18 }
 0x3b1   : > { %v2902_v56 = vand.u32 2147483647, %v2901_v10  ;;  %v3099_v13 = vand.u32 8388607, %v8874_v3  ;;  %v3116_v41 = vshrl.u32 %v8994_v17, %v7262_v18  ;;  %v3118_v47 = vshll.u32 %v8994_v17, %v3106_v7 }
 0x3b2   : > { %v4813_v51 = vadd.s32 4294967294, %v2582_v22  ;;  %v2290_v36 = vsub.f32 1.5, %v2289_v49  ;;  %v3109_v16 = vshll.u32 %v8998_v32, %v3106_v7  ;;  %v3112_v33 = vshll.u32 %v8992_v23, %v3106_v7 }
 0x3b3   : > { %vm2293_vm10 = vweird.f32 %v5402_v59  ;;  %v3115_v45 = vshll.u32 %v8993_v52, %v3106_v7  ;;  %v3120_v11 = vor.u32 %v3119_v21, %v3118_v47  ;;  %v3122_v8 = vshrl.u32 %v8996_v39, %v7262_v18 }
 0x3b4   : > { %vm4814_vm11 = vcmp.lt.s32.totalorder %v4813_v51, 0  ;;  %v2291_v9 = vmul.f32 %v5402_v59, %v2290_v36  ;;  %v7305_v55 = vor.u32 %v3110_v37, %v3109_v16  ;;  %v7307_v30 = vor.u32 %v3113_v42, %v3112_v33 }
 0x3b5   : > { %v2585_v31 = vsel %vm4814_vm11, 0, %v4813_v51  ;;  %vm2292_vm12 = vweird.f32 %v7235_v44  ;;  %v7310_v2 = vor.u32 %v3116_v41, %v3115_v45  ;;  %v3121_v20 = vshll.u32 %v8995_v38, %v3106_v7 }
 0x3b6   : > { %v2586_v54 = vsub.s32 32, %v2585_v31  ;;  %vm2294_vm13 = vmor %vm2292_vm12, %vm2293_vm10  ;;  %v3100_v4 = vor.u32 8388608, %v3099_v13  ;;  %vm3124_vm4 = vcmp.lt.s32.totalorder %v7282_v0, 1  ;;  %vm3127_vm0 = vcmp.lt.s32.totalorder %v7282_v0, 4 }
 0x3b7   : > { %v2590_v10 = vsub.s32 4294967266, %v2585_v31  ;;  %v2295_v61 = vsel %vm2294_vm13, %v5402_v59, %v2291_v9  ;;  %v3123_v29 = vor.u32 %v3122_v8, %v3121_v20  ;;  %v3133_v14 = vsel %vm3127_vm0, %v3120_v11, 920167782 }
 0x3b8   : > { %v2588_v21 = vshrl.u32 %v2570_v25, %v2586_v54  ;;  %v2312_v44 = vmul.f32 %v2295_v61, %v7229_v5  ;;  %vm3126_vm14 = vcmp.lt.s32.totalorder %v7282_v0, 3  ;;  %v3132_v7 = vsel %vm3124_vm4, %v7305_v55, %v7307_v30 }
 0x3b9   : > { %v2905_v22 = vmul.f32 %v2904_v15, %v2902_v56  ;;  %v2587_v49 = vshll.u32 %v7264_v1, %v2585_v31  ;;  %v2591_v37 = vadd.s32 127, %v2590_v10  ;;  %v3134_v59 = vsel %vm3126_vm14, %v7310_v2, %v3133_v14 }
 0x3ba   : > { %v7327_v42 = vmul.f32 0.62831855, %v2312_v44  ;;  %vm3125_vm1 = vcmp.lt.s32.totalorder %v7282_v0, 2  ;;  %v3136_v25 = vsel %vm3124_vm4, %v7307_v30, %v7310_v2  ;;  %v7334_v13 = vshll.u32 %v3100_v4, 8 }
 0x3bb   : > { %v2589_v41 = vor.u32 %v2588_v21, %v2587_v49  ;;  %v2592_v15 = vshll.u32 %v2591_v37, 23  ;;  %v3135_v1 = vsel %vm3125_vm1, %v3132_v7, %v3134_v59  ;;  %v3137_v56 = vsel %vm3127_vm0, %v3123_v29, 1326507024  ;;  %v9023_v29 = vld [vmem:[#allocation38_spill] sm:$0xff]  ;;  %v2156_v49 = vpop.permute.xlu2 %2155 }
 0x3bc   : > { %9021 = vst [vmem:[#allocation57_spill] sm:$0xff] %v7327_v42  ;;  %v7342_v47 = vshrl.u32 %v2633_v35, 23  ;;  %v7345_v51 = vmul.f32 %v2275_v24, %v6966_v57  ;;  %v3249_v36 = vand.u32 2139095040, %v7327_v42  ;;  %v3138_v16 = vsel %vm3126_vm14, %v3120_v11, %v3137_v56  ;;  %v7355_v35 = vld [vmem:[%s9022_s18] ss:$0 sm:$0xff]  ;;  %v2103_v11 = vpop.permute.xlu1 %2102 }
 0x3bd   : > { %v3554_v33 = vadd.f32 1.0, %v2475_v58  ;;  %v2906_v45 = vxor.u32 2147483648, %v2905_v22  ;;  %v2593_v8 = vor.u32 4788187, %v2592_v15  ;;  %v3139_v9 = vsel %vm3125_vm1, %v3136_v25, %v3138_v16  ;;  %v9028_v16 = vld [vmem:[#allocation50_spill] sm:$0xff] }
 0x3be   : > { %v3250_v31 = vshrl.u32 %v3249_v36, 23  ;;  %v3143_v20 = vand.u32 65535, %v3139_v9  ;;  %v3144_v54 = vshrl.u32 %v3139_v9, 16  ;;  %v3166_v4 = vshrl.u32 %v3135_v1, 16 }
 0x3bf   : > { %v2594_v24 = vand.u32 2147483647, %v2593_v8  ;;  %v2596_v10 = vcvt.s32.f32 %v2589_v41  ;;  %v3141_v61 = vand.u32 65535, %v7334_v13  ;;  %v3142_v58 = vshrl.u32 %v7334_v13, 16  ;;  %v9029_v8 = vld [vmem:[#allocation25_spill] sm:$0xff] }
 0x3c0   : > { %vm2786_vm15 = vcmp.lt.s32.totalorder %v6788_v12, 0  ;;  %v9024_v14 = vand.u32 2147483647, %v9023_v29  ;;  %v2600_v44 = vsub.s32 4, %v7249_v48  ;;  %v4827_v7 = vadd.s32 4294967169, %v3250_v31 }
 0x3c1   : > { %vm2478_vm3 = vcmp.lt.s32.totalorder %v9023_v29, 0  ;;  %v2597_v37 = vmul.f32 %v2596_v10, %v2594_v24  ;;  %v3146_v59 = vmul.u32 %v3144_v54, %v3141_v61  ;;  %v7368_v25 = vmul.u32 %v3143_v20, %v3142_v58 }
 0x3c2   : > { %vm7362_vm2 = vcmp.le.f32.partialorder %v9024_v14, 0.7853982  ;;  %v3562_v41 = vmul.f32 0.5, %v3554_v33  ;;  %v3165_v15 = vand.u32 65535, %v3135_v1  ;;  %v7370_v56 = vmul.u32 %v3166_v4, %v3141_v61 }
 0x3c3   : > { %v7373_v36 = vsub.f32 %v6689_v53, %v2103_v11  ;;  %vm2186_vm6 = vcmp.ne.s32.totalorder %v9028_v16, %v7163_v27  ;;  %vm2194_vm7 = vcmp.lt.f32.partialorder %v9029_v8, 25.0  ;;  %v2907_v9 = vsel %vm2786_vm15, %v2906_v45, %v2905_v22 }
 0x3c4   : > { %v2598_v31 = vxor.u32 2147483648, %v2597_v37  ;;  %v3145_v24 = vmul.u32 %v3143_v20, %v3141_v61  ;;  %v3149_v10 = vshll.u32 %v3146_v59, 16  ;;  %vm2178_vm8 = vcmp.eq.s32.totalorder %v7355_v35, %v2156_v49 }
 0x3c5   : > { %9027 = vst [vmem:[#allocation38_spill] sm:$0xff] %v7373_v36  ;;  %v2601_v1 = vsel %vm2478_vm3, %v2600_v44, %v7249_v48  ;;  %v3256_v33 = vadd.s32 1, %v4827_v7  ;;  %v3148_v53 = vmul.u32 %v3144_v54, %v3142_v58  ;;  %v3171_v11 = vshll.u32 %v7370_v56, 16 }
 0x3c6   : > { %v2599_v14 = vsel %vm2478_vm3, %v2598_v31, %v2597_v37  ;;  %v3151_v3 = vshll.u32 %v7368_v25, 16  ;;  %vm3153_vm5 = vc.u32 %v3145_v24, %v3149_v10  ;;  %v3155_v22 = vadd.s32 %v3149_v10, %v3145_v24 }
 0x3c7   : > { %v7391_v45 = vsel %vm7362_vm2, %v9023_v29, %v2599_v14  ;;  %v9030_v20 = vmov 0   ;;  %v3167_v62 = vmul.u32 %v3165_v15, %v3141_v61  ;;  %v3169_v48 = vmul.u32 %v3165_v15, %v3142_v58 }
 0x3c8   : > { %v3154_v60 = vsel %vm3153_vm5, 1, %v9030_v20  ;;  %v2604_v54 = vmul.f32 %v7391_v45, %v7391_v45  ;;  %vm3157_vm9 = vc.u32 %v3155_v22, %v3151_v3  ;;  %v3170_v7 = vmul.u32 %v3166_v4, %v3142_v58 }
 0x3c9   : > { %v3156_v44 = vadd.s32 %v3154_v60, %v3148_v53  ;;  %v9031_v37 = vand.u32 2147483647, %v6788_v12  ;;  %vm3257_vm11 = vcmp.gt.s32.totalorder %v3256_v33, 0  ;;  %v3150_v24 = vshrl.u32 %v3146_v59, 16 }
 0x3ca   : > { %v3158_v10 = vsel %vm3157_vm9, 1, %v9030_v20  ;;  %vm3175_vm12 = vc.u32 %v3167_v62, %v3171_v11  ;;  %v2605_v14 = vmul.f32 -0.001358992, %v2604_v54  ;;  %v2612_v61 = vmul.f32 -0.00019511016, %v2604_v54 }
 0x3cb   : > { %vm7398_vm10 = vcmp.le.f32.partialorder %v9031_v37, 0.7853982  ;;  %v3160_v15 = vadd.s32 %v3158_v10, %v3156_v44  ;;  %v3176_v19 = vsel %vm3175_vm12, 1, %v9030_v20  ;;  %v3173_v26 = vshll.u32 %v3169_v48, 16 }
 0x3cc   : > { %v3177_v60 = vadd.s32 %v3171_v11, %v3167_v62  ;;  %v3178_v3 = vadd.s32 %v3176_v19, %v3170_v7  ;;  %v2144_v4 = vmul.f32 %v7373_v36, %v7373_v36  ;;  %v2606_v58 = vadd.f32 0.041655596, %v2605_v14 }
 0x3cd   : > { %v2613_v53 = vadd.f32 0.008332121, %v2612_v61  ;;  %v3258_v22 = vsel %vm3257_vm11, %v3256_v33, 0  ;;  %v3161_v37 = vadd.s32 %v3160_v15, %v3150_v24  ;;  %v2603_v59 = vsel %vm7362_vm2, 0, %v2601_v1  ;;  %vm2202_vm2 = vmand %vm2186_vm6, %vm2194_vm7 }
 0x3ce   : > { %v3108_v34 = vshrl.u32 %v8998_v32, %v7262_v18  ;;  %v3129_v44 = vsel %vm3127_vm0, %v7310_v2, 2102212464  ;;  %vm3179_vm13 = vc.u32 %v3177_v60, %v3173_v26  ;;  %v2607_v62 = vmul.f32 %v2606_v58, %v2604_v54  ;;  %vm2210_vm0 = vmand %vm2178_vm8, %vm2202_vm2  ;;  %v9035_v58 = vld [vmem:[#allocation24_spill] sm:$0xff] }
 0x3cf   : > { %v2614_v19 = vmul.f32 %v2613_v53, %v2604_v54  ;;  %v3152_v11 = vshrl.u32 %v7368_v25, 16  ;;  %v3180_v7 = vsel %vm3179_vm13, 1, %v9030_v20  ;;  %v7420_v21 = vand.u32 31, %v3258_v22 }
 0x3d0   : > { %v3128_v18 = vsel %vm3124_vm4, %v3108_v34, %v7305_v55  ;;  %v3172_v2 = vshrl.u32 %v7370_v56, 16  ;;  %v3182_v1 = vadd.s32 %v3180_v7, %v3178_v3  ;;  %v2608_v25 = vadd.f32 -0.4999988, %v2607_v62  ;;  %v2159_v56 = vpop.permute.xlu0 %2158 }
 0x3d1   : > { %v2615_v33 = vadd.f32 -0.16666654, %v2614_v19  ;;  %v3130_v8 = vsel %vm3126_vm14, %v7307_v30, %v3129_v44  ;;  %v7431_v16 = vadd.s32 %v3161_v37, %v3152_v11  ;;  %v7433_v24 = vsel %vm2210_vm0, %v3562_v41, 0.0 }
 0x3d2   : > { %v2620_v10 = vand.u32 3, %v2603_v59  ;;  %v3174_v14 = vshrl.u32 %v3169_v48, 16  ;;  %v3183_v61 = vadd.s32 %v3182_v1, %v3172_v2  ;;  %v7438_v34 = vsel %vm7398_vm10, %v6788_v12, %v2907_v9 }
 0x3d3   : > { %v2609_v55 = vmul.f32 %v2608_v25, %v2604_v54  ;;  %v2616_v49 = vmul.f32 %v2615_v33, %v2604_v54  ;;  %v7440_v15 = vadd.s32 %v3177_v60, %v3173_v26  ;;  %vm2619_vm4 = vweird.f32 %v9023_v29  ;;  %v9036_v26 = vld [vmem:[#allocation29_spill] sm:$0xff] }
 0x3d4   : > { %v7444_v30 = vsub.s32 32, %v7420_v21  ;;  %v3131_v41 = vsel %vm3125_vm1, %v3128_v18, %v3130_v8  ;;  %v3184_v48 = vadd.s32 %v3183_v61, %v3174_v14  ;;  %v7449_v3 = vadd.f32 %v2144_v4, %v7268_v40 }
 0x3d5   : > { %v7453_v9 = vmul.f32 %v7433_v24, %v9035_v58  ;;  %vm2187_vm14 = vcmp.ne.s32.totalorder %v7247_v50, %v7163_v27  ;;  %vm2195_vm3 = vcmp.lt.f32.partialorder %v9036_v26, 25.0  ;;  %v2610_v54 = vadd.f32 1.0, %v2609_v55 }
 0x3d6   : > { %9034 = vst [vmem:[#allocation50_spill] sm:$0xff] %v7449_v3  ;;  %v2617_v60 = vadd.f32 1.0, %v2616_v49  ;;  %vm3187_vm6 = vc.u32 %v7431_v16, %v7440_v15  ;;  %v7462_v0 = vmul.f32 %v7438_v34, %v7438_v34  ;;  %vm2621_vm1 = vcmp.lt.s32.totalorder %v2620_v10, 2  ;;  %vm2203_vm11 = vmand %vm2187_vm14, %vm2195_vm3 }
 0x3d7   : > { %vm2622_vm7 = vcmp.eq.s32.totalorder %v2620_v10, 0  ;;  %vm2179_vm8 = vcmp.eq.s32.totalorder %v7355_v35, %v2159_v56  ;;  %v3188_v40 = vadd.s32 1, %v3184_v48  ;;  %vm2625_vm5 = vcmp.eq.s32.totalorder %v2620_v10, 2 }
 0x3d8   : > { %v2618_v4 = vmul.f32 %v2617_v60, %v7391_v45  ;;  %v2626_v53 = vxor.u32 2147483648, %v2610_v54  ;;  %v3185_v37 = vmul.u32 %v7334_v13, %v3131_v41  ;;  %v7467_v59 = vshrl.u32 %v3258_v22, 5  ;;  %vm2211_vm12 = vmand %vm2179_vm8, %vm2203_vm11 }
 0x3d9   : > { %v3189_v44 = vsel %vm3187_vm6, %v3188_v40, %v3184_v48  ;;  %v7470_v62 = vadd.f32 1e-12, %v7449_v3  ;;  %v3276_v19 = vshrl.u32 %v8996_v39, %v7444_v30  ;;  %v8880_v18 = vand.u32 2147483647, %v7327_v42 }
 0x3da   : > { %v2623_v11 = vxor.u32 2147483648, %v2618_v4  ;;  %v3190_v7 = vadd.s32 %v3189_v44, %v3185_v37  ;;  %v3273_v45 = vshrl.u32 %v8995_v38, %v7444_v30  ;;  %v3264_v2 = vshrl.u32 %v8992_v23, %v7444_v30  ;;  %v9037_v37 = vld [vmem:[#allocation23_spill] sm:$0xff] }
 0x3db   : > { %v3267_v13 = vshrl.u32 %v8993_v52, %v7444_v30  ;;  %v3270_v22 = vshrl.u32 %v8994_v17, %v7444_v30  ;;  %v3275_v1 = vshll.u32 %v8995_v38, %v7420_v21  ;;  %v2627_v33 = vsel %vm2625_vm5, %v2626_v53, %v2618_v4 }
 0x3dc   : > { %v2624_v25 = vsel %vm2622_vm7, %v2610_v54, %v2623_v11  ;;  %v3191_v8 = vadd.s32 536870912, %v3190_v7  ;;  %v3272_v14 = vshll.u32 %v8994_v17, %v7420_v21  ;;  %v3266_v55 = vshll.u32 %v8992_v23, %v7420_v21 }
 0x3dd   : > { %v2628_v61 = vsel %vm2621_vm1, %v2624_v25, %v2627_v33  ;;  %v3269_v49 = vshll.u32 %v8993_v52, %v7420_v21  ;;  %v3277_v41 = vor.u32 %v3276_v19, %v3275_v1  ;;  %v3253_v54 = vand.u32 8388607, %v8880_v18  ;;  %v9038_v19 = vld [vmem:[#allocation22_spill] sm:$0xff]  ;;  %v9039_v33 = vld [vmem:[#allocation27_spill] sm:$0xff] }
 0x3de   : > { %v2629_v48 = vsel %vm2619_vm4, nan, %v2628_v61  ;;  %v7496_v58 = vshrl.u32 %v3191_v8, 30  ;;  %v3274_v60 = vor.u32 %v3273_v45, %v3272_v14  ;;  %v3263_v10 = vshll.u32 %v8998_v32, %v7420_v21  ;;  %v9040_v14 = vld [vmem:[#allocation26_spill] sm:$0xff] }
 0x3df   : > { %v3555_v40 = vadd.f32 1.0, %v2629_v48  ;;  %v7502_v4 = vor.u32 %v3267_v13, %v3266_v55  ;;  %v7504_v53 = vor.u32 %v3270_v22, %v3269_v49  ;;  %v3618_v44 = vmul.f32 %v7433_v24, %v9037_v37  ;;  %v9041_v55 = vld [vmem:[#allocation28_spill] sm:$0xff] }
 0x3e0   : > { %v3642_v29 = vmul.f32 %v7433_v24, %v9038_v19  ;;  %v2920_v11 = vmul.f32 -0.00019511016, %v7462_v0  ;;  %vm3281_vm9 = vcmp.lt.s32.totalorder %v7467_v59, 4  ;;  %v3193_v45 = vshll.u32 %v7496_v58, 30 }
 0x3e1   : > { %v3563_v21 = vmul.f32 0.5, %v3555_v40  ;;  %v7518_v13 = vor.u32 %v3264_v2, %v3263_v10  ;;  %v3291_v22 = vsel %vm3281_vm9, %v3277_v41, 1326507024  ;;  %5403 = vrsqrt.f32 %v7470_v62 }
 0x3e2   : > { %vm3278_vm13 = vcmp.lt.s32.totalorder %v7467_v59, 1  ;;  %vm3280_vm2 = vcmp.lt.s32.totalorder %v7467_v59, 3  ;;  %v3287_v50 = vsel %vm3281_vm9, %v3274_v60, 920167782  ;;  %v3254_v1 = vor.u32 8388608, %v3253_v54 }
 0x3e3   : > { %v3571_v26 = vsel %vm2211_vm12, %v3563_v21, 0.0  ;;  %v3290_v2 = vsel %vm3278_vm13, %v7502_v4, %v7504_v53  ;;  %v3292_v56 = vsel %vm3280_vm2, %v3274_v60, %v3291_v22  ;;  %v7539_v41 = vsub.s32 %v3190_v7, %v3193_v45 }
 0x3e4   : > { %v4983_v25 = vpack.c.bf16 %v3571_v26, %v7433_v24  ;;  %v3595_v8 = vmul.f32 %v3571_v26, %v9039_v33  ;;  %v3619_v61 = vmul.f32 %v3571_v26, %v9040_v14  ;;  %v3643_v49 = vmul.f32 %v3571_v26, %v9041_v55 }
 0x3e5   : > { %vm3279_vm0 = vcmp.lt.s32.totalorder %v7467_v59, 2  ;;  %v3286_v48 = vsel %vm3278_vm13, %v7518_v13, %v7502_v4  ;;  %v3288_v54 = vsel %vm3280_vm2, %v7504_v53, %v3287_v50  ;;  %v4815_v10 = vadd.s32 4294967169, %v7342_v47 }
 0x3e6   : > { %4984 = vst [vmem:[#allocation5 + $0x30] sm:$0xff] %v4983_v25   ;;  %v5003_v24 = vpack.c.bf16 %v3595_v8, %v7453_v9  ;;  %v5023_v60 = vpack.c.bf16 %v3619_v61, %v3618_v44  ;;  %v5043_v40 = vpack.c.bf16 %v3643_v49, %v3642_v29  ;;  %v7552_v7 = vsel %vm3279_vm0, %v3290_v2, %v3292_v56  ;;  %v9043_v8 = vld [vmem:[#allocation46_spill] sm:$0xff] }
 0x3e7   : > { %v7555_v37 = vshll.u32 %v3254_v1, 8  ;;  %v7557_v19 = vpop.eup %5403  ;;  %v2913_v21 = vmul.f32 -0.001358992, %v7462_v0  ;;  %v2921_v45 = vadd.f32 0.008332121, %v2920_v11  ;;  %v3289_v22 = vsel %vm3279_vm0, %v3286_v48, %v3288_v54 }
 0x3e8   : > { %5063 = vst [vmem:[#allocation5 + $0x50] sm:$0xff] %v5003_v24   ;;  %v3196_v9 = vsub.s32 0, %v7539_v41  ;;  %v3298_v44 = vshrl.u32 %v7552_v7, 16  ;;  %v7565_v29 = vmul.f32 0.62831855, %v7345_v51  ;;  %vm3195_vm4 = vcmp.lt.s32.totalorder %v7539_v41, 0 }
 0x3e9   : > { %5067 = vst [vmem:[#allocation5 + $0x40] sm:$0xff] %v5023_v60   ;;  %v2640_v47 = vadd.s32 1, %v4815_v10  ;;  %v3295_v50 = vand.u32 65535, %v7555_v37  ;;  %v3320_v26 = vshrl.u32 %v3289_v22, 16  ;;  %v2914_v11 = vadd.f32 0.041655596, %v2913_v21 }
 0x3ea   : > { %9042 = vst [vmem:[#allocation25_spill] sm:$0xff] %v7565_v29  ;;  %v2922_v1 = vmul.f32 %v2921_v45, %v7462_v0  ;;  %v3197_v2 = vsel %vm3195_vm4, %v3196_v9, %v7539_v41  ;;  %v2941_v25 = vand.u32 2139095040, %v7565_v29  ;;  %v2297_v51 = vmul.f32 %v7557_v19, %v7470_v62 }
 0x3eb   : > { %5071 = vst [vmem:[#allocation5 + $0x60] sm:$0xff] %v5043_v40   ;;  %v7571_v56 = vmul.u32 %v3298_v44, %v3295_v50  ;;  %v3319_v33 = vand.u32 65535, %v3289_v22  ;;  %vm2641_vm14 = vcmp.gt.s32.totalorder %v2640_v47, 0  ;;  %v2908_v14 = vsub.s32 4, %v9043_v8 }
 0x3ec   : > { %v3297_v61 = vand.u32 65535, %v7552_v7  ;;  %v7578_v55 = vmul.u32 %v3320_v26, %v3295_v50  ;;  %v2915_v49 = vmul.f32 %v2914_v11, %v7462_v0  ;;  %v2923_v48 = vadd.f32 -0.16666654, %v2922_v1 }
 0x3ed   : > { %v3198_v54 = vclz %v3197_v2  ;;  %v3296_v24 = vshrl.u32 %v7555_v37, 16  ;;  %v3303_v60 = vshll.u32 %v7571_v56, 16  ;;  %v2642_v40 = vsel %vm2641_vm14, %v2640_v47, 0 }
 0x3ee   : > { %v2942_v10 = vshrl.u32 %v2941_v25, 23  ;;  %v2298_v21 = vmul.f32 %v7557_v19, %v2297_v51  ;;  %v3299_v22 = vmul.u32 %v3297_v61, %v3295_v50  ;;  %v3321_v7 = vmul.u32 %v3319_v33, %v3295_v50 }
 0x3ef   : > { %v7584_v45 = vmul.u32 %v3319_v33, %v3296_v24  ;;  %v7586_v9 = vmul.u32 %v3297_v61, %v3296_v24  ;;  %v3325_v18 = vshll.u32 %v7578_v55, 16  ;;  %v2909_v11 = vsel %vm2786_vm15, %v2908_v14, %v9043_v8 }
 0x3f0   : > { %v2916_v1 = vadd.f32 -0.4999988, %v2915_v49  ;;  %v2924_v2 = vmul.f32 %v2923_v48, %v7462_v0  ;;  %v4825_v36 = vadd.s32 4294967294, %v3198_v54  ;;  %vm3307_vm3 = vc.u32 %v3299_v22, %v3303_v60 }
 0x3f1   : > { %v3309_v47 = vadd.s32 %v3303_v60, %v3299_v22  ;;  %vm3329_vm6 = vc.u32 %v3321_v7, %v3325_v18  ;;  %v7593_v25 = vadd.s32 %v3325_v18, %v3321_v7  ;;  %v7595_v51 = vand.u32 31, %v2642_v40 }
 0x3f2   : > { %v4821_v61 = vadd.s32 4294967169, %v2942_v10  ;;  %v8885_v50 = vshll.u32 %v7584_v45, 16  ;;  %v2911_v33 = vsel %vm7398_vm10, 0, %v2909_v11  ;;  %v2299_v5 = vmul.f32 0.5, %v2298_v21 }
 0x3f3   : > { %v3305_v8 = vshll.u32 %v7586_v9, 16  ;;  %v3330_v14 = vsel %vm3329_vm6, 1, %v9030_v20  ;;  %vm4826_vm15 = vcmp.lt.s32.totalorder %v4825_v36, 0  ;;  %v3308_v49 = vsel %vm3307_vm3, 1, %v9030_v20 }
 0x3f4   : > { %v3324_v48 = vmul.u32 %v3320_v26, %v3296_v24  ;;  %vm3333_vm1 = vc.u32 %v7593_v25, %v8885_v50  ;;  %v2917_v18 = vmul.f32 %v2916_v1, %v7462_v0  ;;  %v2925_v54 = vadd.f32 1.0, %v2924_v2 }
 0x3f5   : > { %v3302_v60 = vmul.u32 %v3298_v44, %v3296_v24  ;;  %vm3311_vm7 = vc.u32 %v3309_v47, %v3305_v8  ;;  %v7607_v31 = vshrl.u32 %v2642_v40, 5  ;;  %v7609_v21 = vsel %vm4826_vm15, 0, %v4825_v36 }
 0x3f6   : > { %v3332_v10 = vadd.s32 %v3330_v14, %v3324_v48  ;;  %v2300_v22 = vsub.f32 1.5, %v2299_v5  ;;  %v3334_v11 = vsel %vm3333_vm1, 1, %v9030_v20  ;;  %v7613_v26 = vsub.s32 32, %v7595_v51 }
 0x3f7   : > { %v3310_v7 = vadd.s32 %v3308_v49, %v3302_v60  ;;  %v7615_v57 = vadd.s32 1, %v4821_v61  ;;  %v7617_v50 = vand.u32 3, %v2911_v33  ;;  %v3312_v0 = vsel %vm3311_vm7, 1, %v9030_v20 }
 0x3f8   : > { %v7620_v44 = vadd.f32 1.0, %v2917_v18  ;;  %v7623_v24 = vmul.f32 %v2925_v54, %v7438_v34  ;;  %v3262_v5 = vshrl.u32 %v8998_v32, %v7444_v30  ;;  %v3283_v36 = vsel %vm3281_vm9, %v7504_v53, 2102212464 }
 0x3f9   : > { %v3186_v40 = vadd.s32 %v7440_v15, %v7431_v16  ;;  %v3206_v1 = vsub.s32 4294967266, %v7609_v21  ;;  %vm2302_vm10 = vweird.f32 %v7470_v62  ;;  %v3336_v2 = vadd.s32 %v3334_v11, %v3332_v10 }
 0x3fa   : > { %v2301_v47 = vmul.f32 %v7557_v19, %v2300_v22  ;;  %vm2303_vm8 = vweird.f32 %v7557_v19  ;;  %v3282_v34 = vsel %vm3278_vm13, %v3262_v5, %v7518_v13  ;;  %v3314_v30 = vadd.s32 %v3312_v0, %v3310_v7 }
 0x3fb   : > { %v3284_v53 = vsel %vm3280_vm2, %v7502_v4, %v3283_v36  ;;  %v3326_v16 = vshrl.u32 %v7578_v55, 16  ;;  %v2651_v15 = vshrl.u32 %v8993_v52, %v7613_v26  ;;  %v2654_v61 = vshrl.u32 %v8994_v17, %v7613_v26  ;;  %vm7673_vm5 = vmor %vm2302_vm10, %vm2303_vm8 }
 0x3fc   : > { %v3202_v33 = vsub.s32 32, %v7609_v21  ;;  %v3304_v8 = vshrl.u32 %v7571_v56, 16  ;;  %v8887_v14 = vand.u32 2147483647, %v7251_v6  ;;  %v2657_v13 = vshrl.u32 %v8995_v38, %v7613_v26 }
 0x3fd   : > { %v3207_v49 = vadd.s32 127, %v3206_v1  ;;  %v3337_v48 = vadd.s32 %v3336_v2, %v3326_v16  ;;  %v2650_v4 = vshll.u32 %v8992_v23, %v7595_v51  ;;  %v2653_v55 = vshll.u32 %v8993_v52, %v7595_v51 }
 0x3fe   : > { %v3315_v18 = vadd.s32 %v3314_v30, %v3304_v8  ;;  %v2656_v54 = vshll.u32 %v8994_v17, %v7595_v51  ;;  %v2659_v56 = vshll.u32 %v8995_v38, %v7595_v51  ;;  %v2660_v60 = vshrl.u32 %v8996_v39, %v7613_v26 }
 0x3ff   : > { %v3328_v10 = vshrl.u32 %v7584_v45, 16  ;;  %v2648_v22 = vshrl.u32 %v8992_v23, %v7613_v26  ;;  %v7665_v7 = vor.u32 %v2651_v15, %v2650_v4  ;;  %v7667_v11 = vor.u32 %v2654_v61, %v2653_v55 }
 0x400   : > { %v3306_v5 = vshrl.u32 %v7586_v9, 16  ;;  %v2637_v36 = vand.u32 8388607, %v8887_v14  ;;  %v2658_v1 = vor.u32 %v2657_v13, %v2656_v54  ;;  %v2661_v2 = vor.u32 %v2660_v60, %v2659_v56 }
 0x401   : > { %v2305_v30 = vsel %vm7673_vm5, %v7557_v19, %v2301_v47  ;;  %v3338_v16 = vadd.s32 %v3337_v48, %v3328_v10  ;;  %v2647_v15 = vshll.u32 %v8998_v32, %v7595_v51  ;;  %vm2665_vm9 = vcmp.lt.s32.totalorder %v7607_v31, 4 }
 0x402   : > { %v3208_v62 = vshll.u32 %v3207_v49, 23  ;;  %v7686_v61 = vadd.s32 %v3315_v18, %v3306_v5  ;;  %vm2662_vm11 = vcmp.lt.s32.totalorder %v7607_v31, 1  ;;  %v2675_v9 = vsel %vm2665_vm9, %v2661_v2, 1326507024 }
 0x403   : > { %v3204_v8 = vshrl.u32 %v3186_v40, %v3202_v33  ;;  %v7691_v13 = vor.u32 %v2648_v22, %v2647_v15  ;;  %vm2664_vm12 = vcmp.lt.s32.totalorder %v7607_v31, 3  ;;  %v2674_v19 = vsel %vm2662_vm11, %v7665_v7, %v7667_v11 }
 0x404   : > { %v9046_v51 = vshll.u32 %v7584_v45, 16  ;;  %v2638_v49 = vor.u32 8388608, %v2637_v36  ;;  %v2671_v48 = vsel %vm2665_vm9, %v2658_v1, 920167782  ;;  %v2676_v40 = vsel %vm2664_vm12, %v2658_v1, %v2675_v9 }
 0x405   : > { %v2931_v33 = vxor.u32 2147483648, %v7623_v24  ;;  %v2313_v4 = vmul.f32 %v2305_v30, %v7449_v3  ;;  %v3342_v55 = vadd.s32 1, %v3338_v16  ;;  %vm2663_vm13 = vcmp.lt.s32.totalorder %v7607_v31, 2 }
 0x406   : > { %v7701_v47 = vadd.s32 %v7593_v25, %v9046_v51  ;;  %v3203_v45 = vshll.u32 %v7539_v41, %v7609_v21  ;;  %v3209_v18 = vor.u32 4788187, %v3208_v62  ;;  %v2677_v25 = vsel %vm2663_vm13, %v2674_v19, %v2676_v40 }
 0x407   : > { %vm2949_vm4 = vcmp.gt.s32.totalorder %v7615_v57, 0  ;;  %v3285_v54 = vsel %vm3279_vm0, %v3282_v34, %v3284_v53  ;;  %v2670_v56 = vsel %vm2662_vm11, %v7691_v13, %v7665_v7  ;;  %v2672_v41 = vsel %vm2664_vm12, %v7667_v11, %v2671_v48 }
 0x408   : > { %vm3341_vm2 = vc.u32 %v7686_v61, %v7701_v47  ;;  %vm2930_vm14 = vcmp.eq.s32.totalorder %v7617_v50, 0  ;;  %v2934_v21 = vxor.u32 2147483648, %v7620_v44  ;;  %v3205_v60 = vor.u32 %v3204_v8, %v3203_v45 }
 0x409   : > { %v7728_v10 = vshll.u32 %v2638_v49, 8  ;;  %v2932_v22 = vsel %vm2930_vm14, %v7620_v44, %v2931_v33  ;;  %v7731_v59 = vmul.f32 0.62831855, %v2313_v4  ;;  %v3343_v34 = vsel %vm3341_vm2, %v3342_v55, %v3338_v16 }
 0x40a   : > { %v2682_v53 = vshrl.u32 %v2677_v25, 16  ;;  %v3210_v0 = vand.u32 2147483647, %v3209_v18  ;;  %v3339_v5 = vmul.u32 %v7555_v37, %v3285_v54  ;;  %v2673_v36 = vsel %vm2663_vm13, %v2670_v56, %v2672_v41 }
 0x40b   : > { %v2681_v1 = vand.u32 65535, %v2677_v25  ;;  %v2950_v2 = vsel %vm2949_vm4, %v7615_v57, 0  ;;  %vm2929_vm0 = vcmp.lt.s32.totalorder %v7617_v50, 2  ;;  %vm2933_vm3 = vcmp.eq.s32.totalorder %v7617_v50, 2 }
 0x40c   : > { %v2679_v44 = vand.u32 65535, %v7728_v10  ;;  %v2935_v30 = vsel %vm2933_vm3, %v2934_v21, %v7623_v24  ;;  %v3212_v16 = vcvt.s32.f32 %v3205_v60  ;;  %v7743_v15 = vadd.s32 %v3343_v34, %v3339_v5 }
 0x40d   : > { %v2680_v37 = vshrl.u32 %v7728_v10, 16  ;;  %v2936_v62 = vsel %vm2929_vm0, %v2932_v22, %v2935_v30  ;;  %v2704_v8 = vshrl.u32 %v2673_v36, 16  ;;  %v1929_v19 = vadd.s32 24, %v7140_v28 }
 0x40e   : > { %v2684_v9 = vmul.u32 %v2682_v53, %v2679_v44  ;;  %v3213_v51 = vmul.f32 %v3212_v16, %v3210_v0  ;;  %v3403_v57 = vand.u32 2139095040, %v7731_v59  ;;  %v7748_v48 = vand.u32 31, %v2950_v2 }
 0x40f   : > { %v2685_v49 = vmul.u32 %v2681_v1, %v2680_v37  ;;  %vm2927_vm6 = vweird.f32 %v6788_v12  ;;  %v2683_v50 = vmul.u32 %v2681_v1, %v2679_v44  ;;  %v3345_v33 = vadd.s32 536870912, %v7743_v15 }
 0x410   : > { %v2687_v24 = vshll.u32 %v2684_v9, 16  ;;  %v2937_v40 = vsel %vm2927_vm6, nan, %v2936_v62  ;;  %v2703_v4 = vand.u32 65535, %v2673_v36  ;;  %v2686_v55 = vmul.u32 %v2682_v53, %v2680_v37 }
 0x411   : > { %v2706_v18 = vmul.u32 %v2704_v8, %v2679_v44  ;;  %v3214_v25 = vxor.u32 2147483648, %v3213_v51  ;;  %v3404_v54 = vshrl.u32 %v3403_v57, 23  ;;  %v2689_v56 = vshll.u32 %v2685_v49, 16 }
 0x412   : > { %vm2691_vm15 = vc.u32 %v2683_v50, %v2687_v24  ;;  %v2693_v45 = vadd.s32 %v2687_v24, %v2683_v50  ;;  %v7753_v21 = vshrl.u32 %v2950_v2, 5  ;;  %v7756_v60 = vsub.s32 32, %v7748_v48  ;;  %v9048_v24 = vld [vmem:[#allocation33_spill] sm:$0xff] }
 0x413   : > { %v2692_v41 = vsel %vm2691_vm15, 1, %v9030_v20  ;;  %v7759_v12 = vadd.s32 %v7143_v46, %v1929_v19  ;;  %v3557_v34 = vadd.f32 1.0, %v2937_v40  ;;  %vm3094_vm1 = vcmp.lt.s32.totalorder %v7138_v63, 0 }
 0x414   : > { %v2694_v22 = vadd.s32 %v2692_v41, %v2686_v55  ;;  %vm2695_vm7 = vc.u32 %v2693_v45, %v2689_v56  ;;  %v2707_v53 = vmul.u32 %v2703_v4, %v2680_v37  ;;  %v7762_v0 = vshrl.u32 %v3345_v33, 30  ;;  %v2165_v33 = vpop.permute.xlu2 %2164 }
 0x415   : > { %v2696_v5 = vsel %vm2695_vm7, 1, %v9030_v20  ;;  %v2705_v36 = vmul.u32 %v2703_v4, %v2679_v44  ;;  %v2709_v1 = vshll.u32 %v2706_v18, 16  ;;  %v3215_v2 = vsel %vm3094_vm1, %v3214_v25, %v3213_v51 }
 0x416   : > { %9047 = vst [vmem:[#allocation24_spill] sm:$0xff] %v7762_v0  ;;  %v4830_v30 = vadd.s32 4294967169, %v3404_v54  ;;  %v2688_v16 = vshrl.u32 %v2684_v9, 16  ;;  %v2698_v62 = vadd.s32 %v2696_v5, %v2694_v22  ;;  %v2708_v19 = vmul.u32 %v2704_v8, %v2680_v37 }
 0x417   : > { %v2711_v57 = vshll.u32 %v2707_v53, 16  ;;  %vm2713_vm10 = vc.u32 %v2705_v36, %v2709_v1  ;;  %v2715_v50 = vadd.s32 %v2709_v1, %v2705_v36  ;;  %vm2189_vm8 = vcmp.ne.s32.totalorder %v7759_v12, %v7163_v27 }
 0x418   : > { %vm2197_vm5 = vcmp.lt.f32.partialorder %v9048_v24, 25.0  ;;  %v2646_v40 = vshrl.u32 %v8998_v32, %v7613_v26  ;;  %v2667_v44 = vsel %vm2665_vm9, %v7667_v11, 2102212464  ;;  %v2699_v51 = vadd.s32 %v2698_v62, %v2688_v16 }
 0x419   : > { %v2714_v9 = vsel %vm2713_vm10, 1, %v9030_v20  ;;  %v9049_v37 = vand.u32 2147483647, %v7138_v63  ;;  %v3347_v4 = vshll.u32 %v7762_v0, 30  ;;  %vm2717_vm4 = vc.u32 %v2715_v50, %v2711_v57 }
 0x41a   : > { %v2716_v55 = vadd.s32 %v2714_v9, %v2708_v19  ;;  %v2666_v11 = vsel %vm2662_vm11, %v2646_v40, %v7691_v13  ;;  %v2690_v45 = vshrl.u32 %v2685_v49, 16  ;;  %v2718_v25 = vsel %vm2717_vm4, 1, %v9030_v20 }
 0x41b   : > { %vm7778_vm2 = vcmp.le.f32.partialorder %v9049_v37, 0.7853982  ;;  %v2668_v54 = vsel %vm2664_vm12, %v7665_v7, %v2667_v44  ;;  %v2710_v56 = vshrl.u32 %v2706_v18, 16  ;;  %v8886_v22 = vand.u32 2147483647, %v7565_v29  ;;  %vm2205_vm12 = vmand %vm2189_vm8, %vm2197_vm5 }
 0x41c   : > { %v7786_v26 = vsel %vm7778_vm2, %v7138_v63, %v3215_v2  ;;  %v2720_v41 = vadd.s32 %v2718_v25, %v2716_v55  ;;  %vm2181_vm9 = vcmp.eq.s32.totalorder %v7355_v35, %v2165_v33  ;;  %v3565_v5 = vmul.f32 0.5, %v3557_v34 }
 0x41d   : > { %v3410_v36 = vadd.s32 1, %v4830_v30  ;;  %v7797_v1 = vadd.s32 %v2699_v51, %v2690_v45  ;;  %v7801_v13 = vmul.f32 %v7786_v26, %v7786_v26  ;;  %v7804_v49 = vsub.s32 %v7743_v15, %v3347_v4 }
 0x41e   : > { %v2712_v2 = vshrl.u32 %v2707_v53, 16  ;;  %v2721_v16 = vadd.s32 %v2720_v41, %v2710_v56  ;;  %v2669_v7 = vsel %vm2663_vm13, %v2666_v11, %v2668_v54  ;;  %v7808_v18 = vadd.s32 %v2715_v50, %v2711_v57  ;;  %vm2213_vm13 = vmand %vm2181_vm9, %vm2205_vm12 }
 0x41f   : > { %v2956_v34 = vshrl.u32 %v8992_v23, %v7756_v60  ;;  %v2959_v30 = vshrl.u32 %v8993_v52, %v7756_v60  ;;  %v2945_v19 = vand.u32 8388607, %v8886_v22  ;;  %v2955_v15 = vshll.u32 %v8998_v32, %v7748_v48 }
 0x420   : > { %v2722_v62 = vadd.s32 %v2721_v16, %v2712_v2  ;;  %v2962_v53 = vshrl.u32 %v8994_v17, %v7756_v60  ;;  %vm2725_vm11 = vc.u32 %v7797_v1, %v7808_v18  ;;  %v2958_v31 = vshll.u32 %v8992_v23, %v7748_v48 }
 0x421   : > { %v2964_v57 = vshll.u32 %v8994_v17, %v7748_v48  ;;  %v2965_v50 = vshrl.u32 %v8995_v38, %v7756_v60  ;;  %v2961_v44 = vshll.u32 %v8993_v52, %v7748_v48  ;;  %v2967_v51 = vshll.u32 %v8995_v38, %v7748_v48 }
 0x422   : > { %v2726_v40 = vadd.s32 1, %v2722_v62  ;;  %v2968_v9 = vshrl.u32 %v8996_v39, %v7756_v60  ;;  %v2723_v37 = vmul.u32 %v7728_v10, %v2669_v7  ;;  %v7835_v4 = vor.u32 %v2956_v34, %v2955_v15 }
 0x423   : > { %v7837_v55 = vor.u32 %v2959_v30, %v2958_v31  ;;  %v2966_v11 = vor.u32 %v2965_v50, %v2964_v57  ;;  %v3350_v45 = vsub.s32 0, %v7804_v49  ;;  %v7845_v48 = vor.u32 %v2962_v53, %v2961_v44  ;;  %v9052_v57 = vld [vmem:[#allocation31_spill] sm:$0xff]  ;;  %v9053_v44 = vld [vmem:[#allocation32_spill] sm:$0xff] }
 0x424   : > { %v2727_v25 = vsel %vm2725_vm11, %v2726_v40, %v2722_v62  ;;  %v2969_v54 = vor.u32 %v2968_v9, %v2967_v51  ;;  %v3216_v10 = vsub.s32 4, %v7496_v58  ;;  %vm3349_vm14 = vcmp.lt.s32.totalorder %v7804_v49, 0 }
 0x425   : > { %v2728_v56 = vadd.s32 %v2727_v25, %v2723_v37  ;;  %vm2973_vm0 = vcmp.lt.s32.totalorder %v7753_v21, 4  ;;  %v7852_v24 = vsel %vm2213_vm13, %v3565_v5, 0.0  ;;  %v2946_v12 = vor.u32 8388608, %v2945_v19 }
 0x426   : > { %vm2970_vm3 = vcmp.lt.s32.totalorder %v7753_v21, 1  ;;  %v2979_v41 = vsel %vm2973_vm0, %v2966_v11, 920167782  ;;  %vm3411_vm6 = vcmp.gt.s32.totalorder %v3410_v36, 0  ;;  %vm2972_vm15 = vcmp.lt.s32.totalorder %v7753_v21, 3 }
 0x427   : > { %v2729_v2 = vadd.s32 536870912, %v2728_v56  ;;  %v2978_v35 = vsel %vm2970_vm3, %v7835_v4, %v7837_v55  ;;  %v3228_v33 = vmul.f32 -0.00019511016, %v7801_v13  ;;  %v3351_v5 = vsel %vm3349_vm14, %v3350_v45, %v7804_v49 }
 0x428   : > { %v2980_v16 = vsel %vm2972_vm15, %v7845_v48, %v2979_v41  ;;  %v2983_v7 = vsel %vm2973_vm0, %v2969_v54, 1326507024  ;;  %v3217_v34 = vsel %vm3094_vm1, %v3216_v10, %v7496_v58  ;;  %vm2971_vm7 = vcmp.lt.s32.totalorder %v7753_v21, 2 }
 0x429   : > { %v7872_v30 = vshrl.u32 %v2729_v2, 30  ;;  %v2982_v62 = vsel %vm2970_vm3, %v7837_v55, %v7845_v48  ;;  %v3412_v19 = vsel %vm3411_vm6, %v3410_v36, 0  ;;  %v2981_v15 = vsel %vm2971_vm7, %v2978_v35, %v2980_v16  ;;  %v9054_v16 = vld [vmem:[#allocation30_spill] sm:$0xff] }
 0x42a   : > { %v2984_v53 = vsel %vm2972_vm15, %v2966_v11, %v2983_v7  ;;  %v7883_v31 = vshll.u32 %v2946_v12, 8  ;;  %v7887_v58 = vmul.f32 %v7852_v24, %v9052_v57  ;;  %v3352_v50 = vclz %v3351_v5 }
 0x42b   : > { %v2731_v40 = vshll.u32 %v7872_v30, 30  ;;  %v7892_v51 = vmul.f32 %v7852_v24, %v9053_v44  ;;  %v3221_v36 = vmul.f32 -0.001358992, %v7801_v13  ;;  %v3229_v9 = vadd.f32 0.008332121, %v3228_v33 }
 0x42c   : > { %v2985_v37 = vsel %vm2971_vm7, %v2982_v62, %v2984_v53  ;;  %v3219_v11 = vsel %vm7778_vm2, 0, %v3217_v34  ;;  %v7899_v45 = vand.u32 31, %v3412_v19  ;;  %v3012_v54 = vshrl.u32 %v2981_v15, 16 }
 0x42d   : > { %v2732_v25 = vsub.s32 %v2728_v56, %v2731_v40  ;;  %v1928_v10 = vadd.s32 16, %v7140_v28  ;;  %v2987_v12 = vand.u32 65535, %v7883_v31  ;;  %v2989_v41 = vand.u32 65535, %v2985_v37 }
 0x42e   : > { %v2990_v2 = vshrl.u32 %v2985_v37, 16  ;;  %v4828_v35 = vadd.s32 4294967294, %v3352_v50  ;;  %v2988_v33 = vshrl.u32 %v7883_v31, 16  ;;  %v7906_v7 = vmul.f32 %v7852_v24, %v9054_v16 }
 0x42f   : > { %vm2733_vm1 = vcmp.lt.s32.totalorder %v2732_v25, 0  ;;  %v2734_v5 = vsub.s32 0, %v2732_v25  ;;  %v3222_v8 = vadd.f32 0.041655596, %v3221_v36  ;;  %v3230_v34 = vmul.f32 %v3229_v9, %v7801_v13 }
 0x430   : > { %9055 = vst [vmem:[#allocation29_spill] sm:$0xff] %v7906_v7  ;;  %v2992_v56 = vmul.u32 %v2990_v2, %v2987_v12  ;;  %v7909_v62 = vand.u32 3, %v3219_v11  ;;  %v2993_v57 = vmul.u32 %v2989_v41, %v2988_v33  ;;  %v7911_v40 = vmul.u32 %v3012_v54, %v2987_v12 }
 0x431   : > { %v2735_v53 = vsel %vm2733_vm1, %v2734_v5, %v2732_v25  ;;  %v7913_v44 = vshrl.u32 %v3412_v19, 5  ;;  %v7916_v50 = vsub.s32 32, %v7899_v45  ;;  %v3011_v22 = vand.u32 65535, %v2981_v15 }
 0x432   : > { %9056 = vst [vmem:[#allocation23_spill] sm:$0xff] %v7909_v62  ;;  %v2736_v37 = vclz %v2735_v53  ;;  %vm4829_vm10 = vcmp.lt.s32.totalorder %v4828_v35, 0  ;;  %v7919_v16 = vadd.s32 %v7143_v46, %v1928_v10  ;;  %v2991_v36 = vmul.u32 %v2989_v41, %v2987_v12 }
 0x433   : > { %v2995_v9 = vshll.u32 %v2992_v56, 16  ;;  %v3223_v11 = vmul.f32 %v3222_v8, %v7801_v13  ;;  %v3231_v14 = vadd.f32 -0.16666654, %v3230_v34  ;;  %v2994_v3 = vmul.u32 %v2990_v2, %v2988_v33 }
 0x434   : > { %v4816_v5 = vadd.s32 4294967294, %v2736_v37  ;;  %v2997_v0 = vshll.u32 %v2993_v57, 16  ;;  %v3017_v63 = vshll.u32 %v7911_v40, 16  ;;  %v7923_v42 = vsel %vm4829_vm10, 0, %v4828_v35 }
 0x435   : > { %vm2999_vm8 = vc.u32 %v2991_v36, %v2995_v9  ;;  %v3001_v19 = vadd.s32 %v2995_v9, %v2991_v36  ;;  %v3013_v53 = vmul.u32 %v3011_v22, %v2987_v12  ;;  %v3015_v41 = vmul.u32 %v3011_v22, %v2988_v33 }
 0x436   : > { %vm4817_vm5 = vcmp.lt.s32.totalorder %v4816_v5, 0  ;;  %v3000_v15 = vsel %vm2999_vm8, 1, %v9030_v20  ;;  %v2724_v8 = vadd.s32 %v7808_v18, %v7797_v1  ;;  %v2996_v37 = vshrl.u32 %v2992_v56, 16 }
 0x437   : > { %v2739_v10 = vsel %vm4817_vm5, 0, %v4816_v5  ;;  %v3002_v46 = vadd.s32 %v3000_v15, %v2994_v3  ;;  %vm3003_vm2 = vc.u32 %v3001_v19, %v2997_v0  ;;  %v3016_v9 = vmul.u32 %v3012_v54, %v2988_v33 }
 0x438   : > { %v2740_v34 = vsub.s32 32, %v2739_v10  ;;  %v2744_v2 = vsub.s32 4294967266, %v2739_v10  ;;  %v3004_v36 = vsel %vm3003_vm2, 1, %v9030_v20  ;;  %vm3021_vm4 = vc.u32 %v3013_v53, %v3017_v63 }
 0x439   : > { %v3023_v35 = vadd.s32 %v3017_v63, %v3013_v53  ;;  %v2741_v28 = vshll.u32 %v2732_v25, %v2739_v10  ;;  %v3006_v7 = vadd.s32 %v3004_v36, %v3002_v46  ;;  %v3224_v12 = vadd.f32 -0.4999988, %v3223_v11 }
 0x43a   : > { %v2742_v62 = vshrl.u32 %v2724_v8, %v2740_v34  ;;  %v2745_v29 = vadd.s32 127, %v2744_v2  ;;  %vm2632_vm9 = vcmp.lt.s32.totalorder %v7251_v6, 0  ;;  %v3019_v3 = vshll.u32 %v3015_v41, 16 }
 0x43b   : > { %v3022_v0 = vsel %vm3021_vm4, 1, %v9030_v20  ;;  %v3007_v18 = vadd.s32 %v3006_v7, %v2996_v37  ;;  %v3360_v56 = vsub.s32 4294967266, %v7923_v42  ;;  %v2954_v54 = vshrl.u32 %v8998_v32, %v7756_v60 }
 0x43c   : > { %v2743_v22 = vor.u32 %v2742_v62, %v2741_v28  ;;  %v2746_v1 = vshll.u32 %v2745_v29, 23  ;;  %v3024_v5 = vadd.s32 %v3022_v0, %v3016_v9  ;;  %v2975_v63 = vsel %vm2973_vm0, %v7845_v48, 2102212464 }
 0x43d   : > { %vm3025_vm11 = vc.u32 %v3023_v35, %v3019_v3  ;;  %v3232_v46 = vmul.f32 %v3231_v14, %v7801_v13  ;;  %v2998_v33 = vshrl.u32 %v2993_v57, 16  ;;  %v2754_v28 = vsub.s32 4, %v7872_v30 }
 0x43e   : > { %v2747_v25 = vor.u32 4788187, %v2746_v1  ;;  %v3026_v11 = vsel %vm3025_vm11, 1, %v9030_v20  ;;  %v2974_v29 = vsel %vm2970_vm3, %v2954_v54, %v7835_v4  ;;  %v3018_v7 = vshrl.u32 %v7911_v40, 16 }
 0x43f   : > { %v3028_v60 = vadd.s32 %v3026_v11, %v3024_v5  ;;  %v2750_v19 = vcvt.s32.f32 %v2743_v22  ;;  %v2976_v48 = vsel %vm2972_vm15, %v7837_v55, %v2975_v63  ;;  %v7947_v14 = vadd.s32 %v3007_v18, %v2998_v33 }
 0x440   : > { %v2748_v62 = vand.u32 2147483647, %v2747_v25  ;;  %v3356_v57 = vsub.s32 32, %v7923_v42  ;;  %v3361_v15 = vadd.s32 127, %v3360_v56  ;;  %v3020_v53 = vshrl.u32 %v3015_v41, 16 }
 0x441   : > { %v3029_v10 = vadd.s32 %v3028_v60, %v3018_v7  ;;  %v3340_v8 = vadd.s32 %v7701_v47, %v7686_v61  ;;  %v7952_v34 = vadd.s32 %v3023_v35, %v3019_v3  ;;  %v3400_v40 = vand.u32 2147483647, %v7731_v59 }
 0x442   : > { %v2751_v4 = vmul.f32 %v2750_v19, %v2748_v62  ;;  %v9057_v2 = vand.u32 2147483647, %v7251_v6  ;;  %v2755_v55 = vsel %vm2632_vm9, %v2754_v28, %v7872_v30  ;;  %v2977_v41 = vsel %vm2971_vm7, %v2974_v29, %v2976_v48 }
 0x443   : > { %v3030_v36 = vadd.s32 %v3029_v10, %v3020_v53  ;;  %v7967_v61 = vmul.f32 %v3224_v12, %v7801_v13  ;;  %v7969_v47 = vadd.f32 1.0, %v3232_v46  ;;  %vm3033_vm13 = vc.u32 %v7947_v14, %v7952_v34 }
 0x444   : > { %vm7957_vm12 = vcmp.le.f32.partialorder %v9057_v2, 0.7853982  ;;  %v2752_v9 = vxor.u32 2147483648, %v2751_v4  ;;  %v3357_v35 = vshll.u32 %v7804_v49, %v7923_v42  ;;  %v7975_v3 = vshrl.u32 %v3340_v8, %v3356_v57  ;;  %v4962_v57 = vld [vmem:[#allocation3 + $0x38] sm:$0xff] }
 0x445   : > { %v3362_v0 = vshll.u32 %v3361_v15, 23  ;;  %v3034_v30 = vadd.s32 1, %v3030_v36  ;;  %v2757_v13 = vsel %vm7957_vm12, 0, %v2755_v55  ;;  %v3031_v12 = vmul.u32 %v7883_v31, %v2977_v41  ;;  %3890 = vmatpush.bf16.msra.mxu0 %v4962_v57  ;;  %5084 = vmatpush.bf16.msra.mxu1 %v4962_v57 }
 0x446   : > { %v2753_v21 = vsel %vm2632_vm9, %v2752_v9, %v2751_v4  ;;  %v7984_v22 = vand.u32 8388607, %v3400_v40  ;;  %v3420_v5 = vshll.u32 %v8992_v23, %v7899_v45  ;;  %v3426_v56 = vshll.u32 %v8994_v17, %v7899_v45  ;;  %5085 = vmatpush.bf16.msra.mxu2 %v4962_v57  ;;  %5086 = vmatpush.bf16.msra.mxu3 %v4962_v57 }
 0x447   : > { %v7989_v1 = vsel %vm7957_vm12, %v7251_v6, %v2753_v21  ;;  %v3035_v18 = vsel %vm3033_vm13, %v3034_v30, %v3030_v36  ;;  %v3421_v63 = vshrl.u32 %v8993_v52, %v7916_v50  ;;  %v3424_v46 = vshrl.u32 %v8994_v17, %v7916_v50  ;;  %v4961_v36 = vld [vmem:[#allocation3 + $0x30] sm:$0xff] }
 0x448   : > { %v2758_v54 = vmul.f32 %v7989_v1, %v7989_v1  ;;  %v3036_v31 = vadd.s32 %v3035_v18, %v3031_v12  ;;  %v3418_v25 = vshrl.u32 %v8992_v23, %v7916_v50  ;;  %v3427_v33 = vshrl.u32 %v8995_v38, %v7916_v50  ;;  %v8050_v18 = vpop.permute.xlu1 %2161 }
 0x449   : > { %v3429_v11 = vshll.u32 %v8995_v38, %v7899_v45  ;;  %v3430_v28 = vshrl.u32 %v8996_v39, %v7916_v50  ;;  %v3423_v62 = vshll.u32 %v8993_v52, %v7899_v45  ;;  %v3417_v17 = vshll.u32 %v8998_v32, %v7899_v45  ;;  %3891 = vmatpush.bf16.msra.mxu0 %v4961_v36 }
 0x44a   : > { %v2759_v29 = vmul.f32 -0.001358992, %v2758_v54  ;;  %v2766_v7 = vmul.f32 -0.00019511016, %v2758_v54  ;;  %v3037_v60 = vadd.s32 536870912, %v3036_v31  ;;  %v8013_v19 = vor.u32 %v3421_v63, %v3420_v5  ;;  %5087 = vmatpush.bf16.msra.mxu1 %v4961_v36  ;;  %5088 = vmatpush.bf16.msra.mxu2 %v4961_v36 }
 0x44b   : > { %v3428_v23 = vor.u32 %v3427_v33, %v3426_v56  ;;  %v3431_v48 = vor.u32 %v3430_v28, %v3429_v11  ;;  %v8017_v10 = vor.u32 %v3424_v46, %v3423_v62  ;;  %v8019_v39 = vor.u32 4788187, %v3362_v0  ;;  %5089 = vmatpush.bf16.msra.mxu3 %v4961_v36 }
 0x44c   : > { %v2760_v15 = vadd.f32 0.041655596, %v2759_v29  ;;  %v2767_v53 = vadd.f32 0.008332121, %v2766_v7  ;;  %v8015_v38 = vshrl.u32 %v3037_v60, 30  ;;  %v8021_v8 = vand.u32 3, %v2757_v13 }
 0x44d   : > { %v8023_v4 = vor.u32 %v3418_v25, %v3417_v17  ;;  %vm3435_vm14 = vcmp.lt.s32.totalorder %v7913_v44, 4  ;;  %v3408_v55 = vor.u32 8388608, %v7984_v22  ;;  %vm3432_vm0 = vcmp.lt.s32.totalorder %v7913_v44, 1  ;;  %v8080_v29 = vld [vmem:[%s9022_s18] ss:$0 sm:$0xff] }
 0x44e   : > { %v2761_v52 = vmul.f32 %v2760_v15, %v2758_v54  ;;  %v2768_v45 = vmul.f32 %v2767_v53, %v2758_v54  ;;  %v3039_v2 = vshll.u32 %v8015_v38, 30  ;;  %v3441_v37 = vsel %vm3435_vm14, %v3428_v23, 920167782 }
 0x44f   : > { %vm3434_vm3 = vcmp.lt.s32.totalorder %v7913_v44, 3  ;;  %v3445_v41 = vsel %vm3435_vm14, %v3431_v48, 1326507024  ;;  %v3444_v21 = vsel %vm3432_vm0, %v8013_v19, %v8017_v10  ;;  %vm3433_vm6 = vcmp.lt.s32.totalorder %v7913_v44, 2  ;;  %v9069_v44 = vld [vmem:[#allocation48_spill] sm:$0xff] }
 0x450   : > { %v2762_v9 = vadd.f32 -0.4999988, %v2761_v52  ;;  %v2769_v0 = vadd.f32 -0.16666654, %v2768_v45  ;;  %v8034_v30 = vsub.s32 %v3036_v31, %v3039_v2  ;;  %v3440_v13 = vsel %vm3432_vm0, %v8023_v4, %v8013_v19 }
 0x451   : > { %v3442_v12 = vsel %vm3434_vm3, %v8017_v10, %v3441_v37  ;;  %v3446_v22 = vsel %vm3434_vm3, %v3428_v23, %v3445_v41  ;;  %v8055_v63 = vadd.f32 1.0, %v7967_v61  ;;  %v8059_v46 = vmul.f32 %v7969_v47, %v7786_v26  ;;  %v4959_v23 = vld [vmem:[#allocation3 + $0x20] sm:$0xff] }
 0x452   : > { %v2763_v5 = vmul.f32 %v2762_v9, %v2758_v54  ;;  %v2770_v56 = vmul.f32 %v2769_v0, %v2758_v54  ;;  %vm3041_vm15 = vcmp.lt.s32.totalorder %v8034_v30, 0  ;;  %v3042_v31 = vsub.s32 0, %v8034_v30  ;;  %v4960_v54 = vld [vmem:[#allocation3 + $0x28] sm:$0xff] }
 0x453   : > { %vm2773_vm7 = vweird.f32 %v7251_v6  ;;  %v3447_v25 = vsel %vm3433_vm6, %v3444_v21, %v3446_v22  ;;  %v8064_v33 = vshll.u32 %v3408_v55, 8  ;;  %v8070_v11 = vor.u32 %v7975_v3, %v3357_v35  ;;  %3892 = vmatpush.bf16.msra.mxu0 %v4960_v54  ;;  %5090 = vmatpush.bf16.msra.mxu1 %v4960_v54 }
 0x454   : > { %vm2188_vm1 = vcmp.ne.s32.totalorder %v7919_v16, %v7163_v27  ;;  %vm2196_vm10 = vcmp.lt.f32.partialorder %v6872_v43, 25.0  ;;  %v2764_v26 = vadd.f32 1.0, %v2763_v5  ;;  %v2771_v61 = vadd.f32 1.0, %v2770_v56  ;;  %5091 = vmatpush.bf16.msra.mxu2 %v4960_v54  ;;  %5092 = vmatpush.bf16.msra.mxu3 %v4960_v54 }
 0x455   : > { %v3043_v47 = vsel %vm3041_vm15, %v3042_v31, %v8034_v30  ;;  %v3364_v28 = vand.u32 2147483647, %v8019_v39  ;;  %vm2180_vm8 = vcmp.eq.s32.totalorder %v8080_v29, %v8050_v18  ;;  %vm2775_vm5 = vcmp.lt.s32.totalorder %v8021_v8, 2  ;;  %vm2204_vm12 = vmand %vm2188_vm1, %vm2196_vm10 }
 0x456   : > { %v3044_v42 = vclz %v3043_v47  ;;  %v8087_v49 = vsel %vm3433_vm6, %v3440_v13, %v3442_v12  ;;  %v2772_v35 = vmul.f32 %v2771_v61, %v7989_v1  ;;  %vm2776_vm2 = vcmp.eq.s32.totalorder %v8021_v8, 0  ;;  %vm2212_vm13 = vmand %vm2180_vm8, %vm2204_vm12 }
 0x457   : > { %v2780_v3 = vxor.u32 2147483648, %v2764_v26  ;;  %v3451_v7 = vand.u32 65535, %v3447_v25  ;;  %vm2779_vm4 = vcmp.eq.s32.totalorder %v8021_v8, 2  ;;  %v3449_v62 = vand.u32 65535, %v8064_v33  ;;  %3893 = vmatpush.bf16.msra.mxu0 %v4959_v23  ;;  %5093 = vmatpush.bf16.msra.mxu1 %v4959_v23 }
 0x458   : > { %v4822_v60 = vadd.s32 4294967294, %v3044_v42  ;;  %v3452_v17 = vshrl.u32 %v3447_v25, 16  ;;  %v2777_v48 = vxor.u32 2147483648, %v2772_v35  ;;  %v3450_v57 = vshrl.u32 %v8064_v33, 16  ;;  %5094 = vmatpush.bf16.msra.mxu2 %v4959_v23  ;;  %5095 = vmatpush.bf16.msra.mxu3 %v4959_v23  ;;  %v4957_v42 = vld [vmem:[#allocation3 + $0x10] sm:$0xff] }
 0x459   : > { %v3473_v15 = vand.u32 65535, %v8087_v49  ;;  %v3474_v1 = vshrl.u32 %v8087_v49, 16  ;;  %v2781_v53 = vsel %vm2779_vm4, %v2780_v3, %v2772_v35  ;;  %v3032_v52 = vadd.s32 %v7952_v34, %v7947_v14  ;;  %v4958_v34 = vld [vmem:[#allocation3 + $0x18] sm:$0xff] }
 0x45a   : > { %vm4823_vm9 = vcmp.lt.s32.totalorder %v4822_v60, 0  ;;  %v8098_v45 = vmul.u32 %v3452_v17, %v3449_v62  ;;  %v2778_v2 = vsel %vm2776_vm2, %v2764_v26, %v2777_v48  ;;  %v3453_v55 = vmul.u32 %v3451_v7, %v3449_v62  ;;  %v9061_v48 = vld [vmem:[#allocation37_spill] sm:$0xff] }
 0x45b   : > { %v3047_v37 = vsel %vm4823_vm9, 0, %v4822_v60  ;;  %v8102_v41 = vmul.u32 %v3451_v7, %v3450_v57  ;;  %v2782_v36 = vsel %vm2775_vm5, %v2778_v2, %v2781_v53  ;;  %v3456_v14 = vmul.u32 %v3452_v17, %v3450_v57  ;;  %3894 = vmatpush.bf16.msra.mxu0 %v4958_v34  ;;  %5096 = vmatpush.bf16.msra.mxu1 %v4958_v34  ;;  %v9060_v17 = vld [vmem:[#allocation39_spill] sm:$0xff]  ;;  %v9062_v53 = vld [vmem:[#allocation40_spill] sm:$0xff] }
 0x45c   : > { %v3048_v9 = vsub.s32 32, %v3047_v37  ;;  %v3052_v0 = vsub.s32 4294967266, %v3047_v37  ;;  %v2783_v21 = vsel %vm2773_vm7, nan, %v2782_v36  ;;  %v3457_v13 = vshll.u32 %v8098_v45, 16  ;;  %5097 = vmatpush.bf16.msra.mxu2 %v4958_v34  ;;  %5098 = vmatpush.bf16.msra.mxu3 %v4958_v34 }
 0x45d   : > { %v3475_v12 = vmul.u32 %v3473_v15, %v3449_v62  ;;  %v8109_v22 = vmul.u32 %v3474_v1, %v3449_v62  ;;  %v3556_v5 = vadd.f32 1.0, %v2783_v21  ;;  %v3049_v56 = vshll.u32 %v8034_v30, %v3047_v37  ;;  %v4956_v37 = vld [vmem:[#allocation3 + $0x8] sm:$0xff] }
 0x45e   : > { %v3050_v31 = vshrl.u32 %v3032_v52, %v3048_v9  ;;  %v3053_v25 = vadd.s32 127, %v3052_v0  ;;  %v3459_v8 = vshll.u32 %v8102_v41, 16  ;;  %vm3461_vm11 = vc.u32 %v3453_v55, %v3457_v13 }
 0x45f   : > { %v3463_v54 = vadd.s32 %v3457_v13, %v3453_v55  ;;  %v3479_v26 = vshll.u32 %v8109_v22, 16  ;;  %v3564_v6 = vmul.f32 0.5, %v3556_v5  ;;  %v3462_v47 = vsel %vm3461_vm11, 1, %v9030_v20  ;;  %3895 = vmatpush.bf16.msra.mxu0 %v4957_v42  ;;  %5099 = vmatpush.bf16.msra.mxu1 %v4957_v42  ;;  %v9063_v55 = vld [vmem:[#allocation29_spill] sm:$0xff] }
 0x460   : > { %v3051_v30 = vor.u32 %v3050_v31, %v3049_v56  ;;  %v3054_v61 = vshll.u32 %v3053_v25, 23  ;;  %v3458_v49 = vshrl.u32 %v8098_v45, 16  ;;  %v3464_v35 = vadd.s32 %v3462_v47, %v3456_v14  ;;  %5100 = vmatpush.bf16.msra.mxu2 %v4957_v42  ;;  %5101 = vmatpush.bf16.msra.mxu3 %v4957_v42  ;;  %v9064_v5 = vld [vmem:[#allocation25_spill] sm:$0xff]  ;;  %v4955_v31 = vld [vmem:[#allocation3] sm:$0xff] }
 0x461   : > { %vm3465_vm15 = vc.u32 %v3463_v54, %v3459_v8  ;;  %v8124_v3 = vmul.u32 %v3473_v15, %v3450_v57  ;;  %v3572_v43 = vsel %vm2212_vm13, %v3564_v6, 0.0  ;;  %v3478_v60 = vmul.u32 %v3474_v1, %v3450_v57  ;;  %v9076_v8 = vld [vmem:[#allocation41_spill] sm:$0xff] }
 0x462   : > { %v3055_v7 = vor.u32 4788187, %v3054_v61  ;;  %v3466_v16 = vsel %vm3465_vm15, 1, %v9030_v20  ;;  %v4988_v62 = vpack.c.bf16 %v7852_v24, %v3572_v43  ;;  %v3596_v23 = vmul.f32 %v3572_v43, %v9060_v17 }
 0x463   : > { %v3620_v18 = vmul.f32 %v3572_v43, %v9061_v48  ;;  %v3644_v52 = vmul.f32 %v3572_v43, %v9062_v53  ;;  %v3058_v2 = vcvt.s32.f32 %v3051_v30  ;;  %v3468_v15 = vadd.s32 %v3466_v16, %v3464_v35  ;;  %3896 = vmatpush.bf16.msra.mxu0 %v4956_v37  ;;  %5102 = vmatpush.bf16.msra.mxu1 %v4956_v37  ;;  %v4971_v43 = vld [vmem:[#allocation5 + $0x40] sm:$0xff] }
 0x464   : > { %v3056_v45 = vand.u32 2147483647, %v3055_v7  ;;  %vm3483_vm7 = vc.u32 %v3475_v12, %v3479_v26  ;;  %5060 = vst [vmem:[#allocation5] sm:$0xff] %v4988_v62   ;;  %v5008_v57 = vpack.c.bf16 %v7887_v58, %v3596_v23  ;;  %v3481_v0 = vshll.u32 %v8124_v3, 16  ;;  %5103 = vmatpush.bf16.msra.mxu2 %v4956_v37  ;;  %5104 = vmatpush.bf16.msra.mxu3 %v4956_v37  ;;  %v4975_v7 = vld [vmem:[#allocation5 + $0x60] sm:$0xff] }
 0x465   : > { %v5028_v1 = vpack.c.bf16 %v7892_v51, %v3620_v18  ;;  %v5048_v24 = vpack.c.bf16 %v9063_v55, %v3644_v52  ;;  %v3484_v36 = vsel %vm3483_vm7, 1, %v9030_v20  ;;  %v3485_v14 = vadd.s32 %v3479_v26, %v3475_v12  ;;  %v9068_v26 = vld [vmem:[#allocation23_spill] sm:$0xff] }
 0x466   : > { %v3059_v9 = vmul.f32 %v3058_v2, %v3056_v45  ;;  %v3486_v34 = vadd.s32 %v3484_v36, %v3478_v60  ;;  %v3239_v21 = vxor.u32 2147483648, %v8059_v46  ;;  %v3366_v13 = vcvt.s32.f32 %v8070_v11  ;;  %5064 = vst [vmem:[#allocation5 + $0x68] sm:$0xff] %v5008_v57   ;;  %v9070_v45 = vld [vmem:[#allocation57_spill] sm:$0xff] }
 0x467   : > { %vm2940_vm1 = vcmp.lt.s32.totalorder %v9064_v5, 0  ;;  %v3469_v58 = vadd.s32 %v3468_v15, %v3458_v49  ;;  %5068 = vst [vmem:[#allocation5 + $0x20] sm:$0xff] %v5028_v1   ;;  %v3416_v56 = vshrl.u32 %v8998_v32, %v7916_v50  ;;  %v3437_v12 = vsel %vm3435_vm14, %v8017_v10, 2102212464  ;;  %3897 = vmatpush.bf16.msra.mxu0 %v4955_v31  ;;  %5105 = vmatpush.bf16.msra.mxu1 %v4955_v31 }
 0x468   : > { %v3060_v51 = vxor.u32 2147483648, %v3059_v9  ;;  %vm3487_vm10 = vc.u32 %v3485_v14, %v3481_v0  ;;  %v3367_v11 = vmul.f32 %v3366_v13, %v3364_v28  ;;  %5072 = vst [vmem:[#allocation5 + $0x70] sm:$0xff] %v5048_v24   ;;  %v9065_v25 = vand.u32 2147483647, %v9064_v5  ;;  %5106 = vmatpush.bf16.msra.mxu2 %v4955_v31  ;;  %5107 = vmatpush.bf16.msra.mxu3 %v4955_v31  ;;  %v9071_v24 = vld [vmem:[#allocation47_spill] sm:$0xff]  ;;  %v9075_v13 = vld [vmem:[#allocation49_spill] sm:$0xff] }
 0x469   : > { %v3460_v54 = vshrl.u32 %v8102_v41, 16  ;;  %v3488_v32 = vsel %vm3487_vm10, 1, %v9030_v20  ;;  %v3436_v10 = vsel %vm3432_vm0, %v3416_v56, %v8023_v4  ;;  %v3480_v39 = vshrl.u32 %v8109_v22, 16  ;;  %v4963_v4 = vld [vmem:[#allocation5 + $0x30] sm:$0xff] }
 0x46a   : > { %vm8148_vm8 = vcmp.le.f32.partialorder %v9065_v25, 0.7853982  ;;  %v3061_v50 = vsel %vm2940_vm1, %v3060_v51, %v3059_v9  ;;  %v3490_v28 = vadd.s32 %v3488_v32, %v3486_v34  ;;  %vm3238_vm14 = vcmp.eq.s32.totalorder %v9068_v26, 0  ;;  %3898 = vmatmul.bf16.vlgmr.msra.gmra.mxu0 %v4963_v4 }
 0x46b   : > { %v8164_v6 = vsel %vm8148_vm8, %v9064_v5, %v3061_v50  ;;  %v3438_v20 = vsel %vm3434_vm3, %v8013_v19, %v3437_v12  ;;  %v8169_v41 = vadd.s32 %v3469_v58, %v3460_v54  ;;  %v3242_v22 = vxor.u32 2147483648, %v8055_v63  ;;  %v4967_v19 = vld [vmem:[#allocation5 + $0x50] sm:$0xff]  ;;  %3938 = vmatmul.bf16.vlgmr.msra.gmra.mxu2 %v4971_v43  ;;  %3958 = vmatmul.bf16.vlgmr.msra.gmra.mxu3 %v4975_v7  ;;  %v2171_v50 = vpop.permute.xlu2 %2170 }
 0x46c   : > { %v3066_v30 = vmul.f32 %v8164_v6, %v8164_v6  ;;  %v3482_v61 = vshrl.u32 %v8124_v3, 16  ;;  %v3491_v47 = vadd.s32 %v3490_v28, %v3480_v39  ;;  %v3240_v42 = vsel %vm3238_vm14, %v8055_v63, %v3239_v21  ;;  %3918 = vmatmul.bf16.vlgmr.msra.gmra.mxu1 %v4967_v19 }
 0x46d   : > { %v3368_v49 = vxor.u32 2147483648, %v3367_v11  ;;  %v8176_v35 = vadd.s32 %v3485_v14, %v3481_v0  ;;  %v3439_v62 = vsel %vm3433_vm6, %v3436_v10, %v3438_v20  ;;  %vm3237_vm0 = vcmp.lt.s32.totalorder %v9068_v26, 2  ;;  %v4968_v7 = vld [vmem:[#allocation5 + $0x68] sm:$0xff] }
 0x46e   : > { %v3067_v16 = vmul.f32 -0.001358992, %v3066_v30  ;;  %v3074_v60 = vmul.f32 -0.00019511016, %v3066_v30  ;;  %v3492_v17 = vadd.s32 %v3491_v47, %v3482_v61  ;;  %vm3241_vm3 = vcmp.eq.s32.totalorder %v9068_v26, 2  ;;  %v4964_v47 = vld [vmem:[#allocation5] sm:$0xff] }
 0x46f   : > { %v3062_v3 = vsub.s32 4, %v8015_v38  ;;  %vm3495_vm5 = vc.u32 %v8169_v41, %v8176_v35  ;;  %v3243_v63 = vsel %vm3241_vm3, %v3242_v22, %v8059_v46  ;;  %v1931_v53 = vadd.s32 40, %v9069_v44 }
 0x470   : > { %v3068_v23 = vadd.f32 0.041655596, %v3067_v16  ;;  %v3075_v48 = vadd.f32 0.008332121, %v3074_v60  ;;  %v3496_v18 = vadd.s32 1, %v3492_v17  ;;  %v3244_v52 = vsel %vm3237_vm0, %v3240_v42, %v3243_v63  ;;  %v4972_v16 = vld [vmem:[#allocation5 + $0x20] sm:$0xff] }
 0x471   : > { %vm3248_vm6 = vcmp.lt.s32.totalorder %v9070_v45, 0  ;;  %v3493_v2 = vmul.u32 %v8064_v33, %v3439_v62  ;;  %v3063_v46 = vsel %vm2940_vm1, %v3062_v3, %v8015_v38  ;;  %vm3235_vm2 = vweird.f32 %v9071_v24  ;;  %v4976_v60 = vld [vmem:[#allocation5 + $0x70] sm:$0xff] }
 0x472   : > { %v3369_v15 = vsel %vm3248_vm6, %v3368_v49, %v3367_v11  ;;  %v3069_v37 = vmul.f32 %v3068_v23, %v3066_v30  ;;  %v3076_v57 = vmul.f32 %v3075_v48, %v3066_v30  ;;  %v3497_v1 = vsel %vm3495_vm5, %v3496_v18, %v3492_v17  ;;  %v9077_v49 = vld [vmem:[#allocation45_spill] sm:$0xff] }
 0x473   : > { %v3498_v55 = vadd.s32 %v3497_v1, %v3493_v2  ;;  %v9072_v36 = vand.u32 2147483647, %v9070_v45  ;;  %v3245_v14 = vsel %vm3235_vm2, nan, %v3244_v52  ;;  %v1940_v38 = vadd.s32 %v9075_v13, %v1931_v53  ;;  %v9078_v2 = vld [vmem:[#allocation35_spill] sm:$0xff]  ;;  %v9080_v1 = vld [vmem:[#allocation36_spill] sm:$0xff] }
 0x474   : > { %v3070_v33 = vadd.f32 -0.4999988, %v3069_v37  ;;  %v3077_v0 = vadd.f32 -0.16666654, %v3076_v57  ;;  %v3065_v58 = vsel %vm8148_vm8, 0, %v3063_v46  ;;  %v1930_v12 = vadd.s32 32, %v9069_v44 }
 0x475   : > { %vm8197_vm4 = vcmp.le.f32.partialorder %v9072_v36, 0.7853982  ;;  %v3499_v21 = vadd.s32 536870912, %v3498_v55  ;;  %v3559_v11 = vadd.f32 1.0, %v3245_v14  ;;  %v3082_v10 = vand.u32 3, %v3065_v58  ;;  %v9079_v37 = vld [vmem:[#allocation34_spill] sm:$0xff] }
 0x476   : > { %v8204_v34 = vsel %vm8197_vm4, %v9070_v45, %v3369_v15  ;;  %v3071_v51 = vmul.f32 %v3070_v33, %v3066_v30  ;;  %v3078_v56 = vmul.f32 %v3077_v0, %v3066_v30  ;;  %vm2191_vm9 = vcmp.ne.s32.totalorder %v1940_v38, %v7163_v27  ;;  %v9081_v14 = vld [vmem:[#allocation44_spill] sm:$0xff]  ;;  %v9082_v38 = vld [vmem:[#allocation43_spill] sm:$0xff] }
 0x477   : > { %v8210_v31 = vshrl.u32 %v3499_v21, 30  ;;  %v8214_v25 = vmul.f32 %v8204_v34, %v8204_v34  ;;  %vm2199_vm11 = vcmp.lt.f32.partialorder %v9076_v8, 25.0  ;;  %v1939_v20 = vadd.s32 %v9075_v13, %v1930_v12 }
 0x478   : > { %v3072_v54 = vadd.f32 1.0, %v3071_v51  ;;  %v3079_v32 = vadd.f32 1.0, %v3078_v56  ;;  %vm2183_vm12 = vcmp.eq.s32.totalorder %v8080_v29, %v2171_v50  ;;  %v3567_v22 = vmul.f32 0.5, %v3559_v11  ;;  %vm2207_vm13 = vmand %vm2191_vm9, %vm2199_vm11  ;;  %v9083_v51 = vld [vmem:[#allocation42_spill] sm:$0xff] }
 0x479   : > { %v3501_v39 = vshll.u32 %v8210_v31, 30  ;;  %v3382_v30 = vmul.f32 -0.00019511016, %v8214_v25  ;;  %vm3084_vm15 = vcmp.eq.s32.totalorder %v3082_v10, 0  ;;  %vm3087_vm7 = vcmp.eq.s32.totalorder %v3082_v10, 2  ;;  %vm2215_vm14 = vmand %vm2183_vm12, %vm2207_vm13 }
 0x47a   : > { %v3080_v28 = vmul.f32 %v3079_v32, %v8164_v6  ;;  %v3088_v26 = vxor.u32 2147483648, %v3072_v54  ;;  %v2168_v6 = vpop.permute.xlu1 %2167  ;;  %vm2198_vm10 = vcmp.lt.f32.partialorder %v9077_v49, 25.0  ;;  %vm3083_vm8 = vcmp.lt.s32.totalorder %v3082_v10, 2  ;;  %3903 = vmatmul.bf16.gmra.mxu0 %v4964_v47 }
 0x47b   : > { %v8221_v4 = vsub.s32 %v3498_v55, %v3501_v39  ;;  %vm2190_vm0 = vcmp.ne.s32.totalorder %v1939_v20, %v7163_v27  ;;  %vm3081_vm3 = vweird.f32 %v9064_v5  ;;  %v3575_v3 = vsel %vm2215_vm14, %v3567_v22, 0.0  ;;  %3943 = vmatmul.bf16.gmra.mxu2 %v4972_v16  ;;  %3963 = vmatmul.bf16.gmra.mxu3 %v4976_v60 }
 0x47c   : > { %v3085_v61 = vxor.u32 2147483648, %v3080_v28  ;;  %v3089_v43 = vsel %vm3087_vm7, %v3088_v26, %v3080_v28  ;;  %v3383_v63 = vadd.f32 0.008332121, %v3382_v30  ;;  %3923 = vmatmul.bf16.gmra.mxu1 %v4968_v7  ;;  %v3375_v18 = vmul.f32 -0.001358992, %v8214_v25  ;;  %vm2206_vm2 = vmand %vm2190_vm0, %vm2198_vm10 }
 0x47d   : > { %vm3503_vm1 = vcmp.lt.s32.totalorder %v8221_v4, 0  ;;  %v3504_v42 = vsub.s32 0, %v8221_v4  ;;  %vm2182_vm5 = vcmp.eq.s32.totalorder %v8080_v29, %v2168_v6  ;;  %v3599_v15 = vmul.f32 %v3575_v3, %v9078_v2 }
 0x47e   : > { %v3086_v19 = vsel %vm3084_vm15, %v3072_v54, %v3085_v61  ;;  %v3623_v57 = vmul.f32 %v3575_v3, %v9079_v37  ;;  %v3647_v46 = vmul.f32 %v3575_v3, %v9080_v1  ;;  %v3384_v55 = vmul.f32 %v3383_v63, %v8214_v25  ;;  %vm2214_vm9 = vmand %vm2182_vm5, %vm2206_vm2 }
 0x47f   : > { %v3090_v62 = vsel %vm3083_vm8, %v3086_v19, %v3089_v43  ;;  %v3505_v17 = vsel %vm3503_vm1, %v3504_v42, %v8221_v4  ;;  %v3376_v24 = vadd.f32 0.041655596, %v3375_v18  ;;  %v3494_v12 = vadd.s32 %v8176_v35, %v8169_v41  ;;  %v9084_v41 = vld [vmem:[#allocation24_spill] sm:$0xff] }
 0x480   : > { %v3091_v23 = vsel %vm3081_vm3, nan, %v3090_v62  ;;  %v3506_v48 = vclz %v3505_v17  ;;  %v3385_v32 = vadd.f32 -0.16666654, %v3384_v55  ;;  %v3370_v35 = vsub.s32 4, %v9084_v41 }
 0x481   : > { %v3558_v53 = vadd.f32 1.0, %v3091_v23  ;;  %v3377_v20 = vmul.f32 %v3376_v24, %v8214_v25  ;;  %vm3402_vm12 = vcmp.lt.s32.totalorder %v7731_v59, 0  ;;  %v1932_v24 = vadd.s32 48, %v9069_v44 }
 0x482   : > { %v4831_v52 = vadd.s32 4294967294, %v3506_v48  ;;  %v3386_v61 = vmul.f32 %v3385_v32, %v8214_v25  ;;  %vm1943_vm7 = vcmask 523264   ;;  %vm3389_vm1 = vweird.f32 %v9070_v45 }
 0x483   : > { %v3566_v5 = vmul.f32 0.5, %v3558_v53  ;;  %v3378_v42 = vadd.f32 -0.4999988, %v3377_v20 }
 0x484   : > { %vm4832_vm11 = vcmp.lt.s32.totalorder %v4831_v52, 0  ;;  %v3387_v43 = vadd.f32 1.0, %v3386_v61  ;;  %v2177_v61 = vpop.permute.xlu1 %2176 }
 0x485   : > { %v3574_v36 = vsel %vm2214_vm9, %v3566_v5, 0.0  ;;  %v3509_v33 = vsel %vm4832_vm11, 0, %v4831_v52  ;;  %v3379_v60 = vmul.f32 %v3378_v42, %v8214_v25  ;;  %vm3543_vm9 = vweird.f32 %v7731_v59  ;;  %v9089_v42 = vld [vmem:[#allocation52_spill] sm:$0xff] }
 0x486   : > { %v4993_v0 = vpack.c.bf16 %v3575_v3, %v3574_v36  ;;  %v3598_v21 = vmul.f32 %v3574_v36, %v9081_v14  ;;  %v3622_v58 = vmul.f32 %v3574_v36, %v9082_v38  ;;  %v3646_v56 = vmul.f32 %v3574_v36, %v9083_v51 }
 0x487   : > { %v3510_v11 = vsub.s32 32, %v3509_v33  ;;  %v3514_v54 = vsub.s32 4294967266, %v3509_v33  ;;  %v3511_v8 = vshll.u32 %v8221_v4, %v3509_v33  ;;  %v3371_v4 = vsel %vm3248_vm6, %v3370_v35, %v9084_v41  ;;  %v9088_v41 = vld [vmem:[#allocation50_spill] sm:$0xff] }
 0x488   : > { %5061 = vst [vmem:[#allocation5 + $0x58] sm:$0xff] %v4993_v0   ;;  %v5013_v50 = vpack.c.bf16 %v3599_v15, %v3598_v21  ;;  %v5033_v10 = vpack.c.bf16 %v3623_v57, %v3622_v58  ;;  %v5053_v39 = vpack.c.bf16 %v3647_v46, %v3646_v56  ;;  %v3373_v63 = vsel %vm8197_vm4, 0, %v3371_v4 }
 0x489   : > { %v3512_v28 = vshrl.u32 %v3494_v12, %v3510_v11  ;;  %v3515_v26 = vadd.s32 127, %v3514_v54  ;;  %v3388_v23 = vmul.f32 %v3387_v43, %v8204_v34  ;;  %vm8262_vm6 = vcmp.le.f32.partialorder %v3400_v40, 0.7853982 }
 0x48a   : > { %5065 = vst [vmem:[#allocation5 + $0x8] sm:$0xff] %v5013_v50   ;;  %v3380_v18 = vadd.f32 1.0, %v3379_v60  ;;  %v3390_v53 = vand.u32 3, %v3373_v63  ;;  %v3524_v40 = vsub.s32 4, %v8210_v31  ;;  %v5562_v56 = vmov 0.0  }
 0x48b   : > { %5069 = vst [vmem:[#allocation5 + $0x10] sm:$0xff] %v5033_v10   ;;  %v3513_v22 = vor.u32 %v3512_v28, %v3511_v8  ;;  %v3516_v30 = vshll.u32 %v3515_v26, 23  ;;  %v3393_v52 = vxor.u32 2147483648, %v3388_v23  ;;  %v1941_v12 = vadd.s32 %v9075_v13, %v1932_v24  ;;  %v2174_v10 = vpop.permute.xlu0 %2173  ;;  %v9087_v28 = vld [vmem:[#allocation54_spill] sm:$0xff] }
 0x48c   : > { %5073 = vst [vmem:[#allocation5 + $0x78] sm:$0xff] %v5053_v39   ;;  %v3396_v5 = vxor.u32 2147483648, %v3380_v18  ;;  %vm3392_vm4 = vcmp.eq.s32.totalorder %v3390_v53, 0  ;;  %vm3395_vm13 = vcmp.eq.s32.totalorder %v3390_v53, 2  ;;  %vm3391_vm15 = vcmp.lt.s32.totalorder %v3390_v53, 2 }
 0x48d   : > { %v3517_v47 = vor.u32 4788187, %v3516_v30  ;;  %v3520_v49 = vcvt.s32.f32 %v3513_v22  ;;  %v3394_v1 = vsel %vm3392_vm4, %v3380_v18, %v3393_v52  ;;  %v3525_v33 = vsel %vm3402_vm12, %v3524_v40, %v8210_v31  ;;  %1944 = vst.msk [vmem:[#allocation6] sm:$0xff] %vm1943_vm7, %v5562_v56 }
 0x48e   : > { %v3397_v36 = vsel %vm3395_vm13, %v3396_v5, %v3388_v23  ;;  %v3527_v38 = vsel %vm8262_vm6, 0, %v3525_v33  ;;  %1945 = vst.msk [vmem:[#allocation6 + $0x8] sm:$0xff] %vm1943_vm7, %v5562_v56  ;;  %v1933_v31 = vadd.s32 56, %v9069_v44  ;;  %vm2192_vm10 = vcmp.ne.s32.totalorder %v1941_v12, %v7163_v27 }
 0x48f   : > { %v3518_v6 = vand.u32 2147483647, %v3517_v47  ;;  %v4965_v19 = vld [vmem:[#allocation5 + $0x58] sm:$0xff]  ;;  %v3398_v0 = vsel %vm3391_vm15, %v3394_v1, %v3397_v36  ;;  %1946 = vst.msk [vmem:[#allocation6 + $0x10] sm:$0xff] %vm1943_vm7, %v5562_v56  ;;  %v3544_v45 = vand.u32 3, %v3527_v38  ;;  %vm2200_vm8 = vcmp.lt.f32.partialorder %v9087_v28, 25.0 }
 0x490   : > { %3908 = vmatmul.bf16.gmra.mxu0 %v4965_v19  ;;  %v3399_v11 = vsel %vm3389_vm1, nan, %v3398_v0  ;;  %1947 = vst.msk [vmem:[#allocation6 + $0x18] sm:$0xff] %vm1943_vm7, %v5562_v56  ;;  %v1942_v44 = vadd.s32 %v9075_v13, %v1933_v31  ;;  %vm2184_vm14 = vcmp.eq.s32.totalorder %v8080_v29, %v2174_v10  ;;  %vm2208_vm5 = vmand %vm2192_vm10, %vm2200_vm8  ;;  %vm2185_vm4 = vcmp.eq.s32.totalorder %v8080_v29, %v2177_v61  ;;  %v9091_v19 = vld [vmem:[#allocation51_spill] sm:$0xff]  ;;  %v8372_v0 = vld [vmem:[%s650_s20] ss:$0 sm:$0xff]  ;;  %s5564_s20 = smov 32  }
 0x491   : > { %v3521_v7 = vmul.f32 %v3520_v49, %v3518_v6  ;;  %v4969_v16 = vld [vmem:[#allocation5 + $0x8] sm:$0xff]  ;;  %v3560_v50 = vadd.f32 1.0, %v3399_v11  ;;  %1948 = vst.msk [vmem:[#allocation6 + $0x20] sm:$0xff] %vm1943_vm7, %v5562_v56  ;;  %vm3546_vm0 = vcmp.eq.s32.totalorder %v3544_v45, 0  ;;  %vm3549_vm3 = vcmp.eq.s32.totalorder %v3544_v45, 2  ;;  %v9090_v49 = vld [vmem:[#allocation53_spill] sm:$0xff] }
 0x492   : > { %v4973_v62 = vld [vmem:[#allocation5 + $0x10] sm:$0xff]  ;;  %3928 = vmatmul.bf16.gmra.mxu1 %v4969_v16  ;;  %1949 = vst.msk [vmem:[#allocation6 + $0x28] sm:$0xff] %vm1943_vm7, %v5562_v56  ;;  %vm3545_vm2 = vcmp.lt.s32.totalorder %v3544_v45, 2  ;;  %vm2193_vm11 = vcmp.ne.s32.totalorder %v1942_v44, %v7163_v27  ;;  %v9092_v16 = vld [vmem:[#allocation55_spill] sm:$0xff]  ;;  %vm4104_vm1 = vcmask 261120   ;;  %vm4210_vm10 = vcmask 785408  }
 0x493   : > { %v3522_v17 = vxor.u32 2147483648, %v3521_v7  ;;  %v4977_v3 = vld [vmem:[#allocation5 + $0x78] sm:$0xff]  ;;  %3948 = vmatmul.bf16.gmra.mxu2 %v4973_v62  ;;  %1950 = vst.msk [vmem:[#allocation6 + $0x30] sm:$0xff] %vm1943_vm7, %v5562_v56  ;;  %v3568_v20 = vmul.f32 0.5, %v3560_v50  ;;  %v9093_v62 = vld [vmem:[#allocation56_spill] sm:$0xff]  ;;  %v4077_v10 = vld [vmem:[%s8364_s0 + $0x8] sm:$0xff] }
 0x494   : > { %3968 = vmatmul.bf16.gmra.mxu3 %v4977_v3  ;;  %1951 = vst.msk [vmem:[#allocation6 + $0x38] sm:$0xff] %vm1943_vm7, %v5562_v56  ;;  %v9094_v3 = vld [vmem:[#allocation38_spill] sm:$0xff] }
 0x495   : > { %v3523_v25 = vsel %vm3402_vm12, %v3522_v17, %v3521_v7  ;;  %1952 = vst.msk [vmem:[#allocation6 + $0x40] sm:$0xff] %vm1943_vm7, %v5562_v56  ;;  %vm2201_vm12 = vcmp.lt.f32.partialorder %v9088_v41, 25.0  ;;  %v3682_v52 = vld [vmem:[#allocation6] sm:$0xff] }
 0x496   : > { %v3526_v9 = vsel %vm8262_vm6, %v7731_v59, %v3523_v25  ;;  %1953 = vst.msk [vmem:[#allocation6 + $0x48] sm:$0xff] %vm1943_vm7, %v5562_v56  ;;  %vm2216_vm6 = vmand %vm2184_vm14, %vm2208_vm5  ;;  %v3684_v50 = vld [vmem:[#allocation6 + $0x10] sm:$0xff] }
 0x497   : > { %v3528_v34 = vmul.f32 %v3526_v9, %v3526_v9  ;;  %1954 = vst.msk [vmem:[#allocation6 + $0x50] sm:$0xff] %vm1943_vm7, %v5562_v56  ;;  %v3576_v59 = vsel %vm2216_vm6, %v3568_v20, 0.0  ;;  %vm2209_vm13 = vmand %vm2193_vm11, %vm2201_vm12 }
 0x498   : > { %1955 = vst.msk [vmem:[#allocation6 + $0x58] sm:$0xff] %vm1943_vm7, %v5562_v56  ;;  %vm2217_vm15 = vmand %vm2185_vm4, %vm2209_vm13  ;;  %v3600_v6 = vmul.f32 %v3576_v59, %v9089_v42  ;;  %v3624_v29 = vmul.f32 %v3576_v59, %v9090_v49  ;;  %v3648_v43 = vmul.f32 %v3576_v59, %v9091_v19 }
 0x499   : > { %v3529_v2 = vmul.f32 -0.001358992, %v3528_v34  ;;  %v3536_v15 = vmul.f32 -0.00019511016, %v3528_v34  ;;  %1956 = vst.msk [vmem:[#allocation6 + $0x60] sm:$0xff] %vm1943_vm7, %v5562_v56 }
 0x49a   : > { %1957 = vst.msk [vmem:[#allocation6 + $0x68] sm:$0xff] %vm1943_vm7, %v5562_v56 }
 0x49b   : > { %v3530_v37 = vadd.f32 0.041655596, %v3529_v2  ;;  %v3537_v57 = vadd.f32 0.008332121, %v3536_v15  ;;  %1958 = vst.msk [vmem:[#allocation6 + $0x70] sm:$0xff] %vm1943_vm7, %v5562_v56 }
 0x49c   : > { %1959 = vst.msk [vmem:[#allocation6 + $0x78] sm:$0xff] %vm1943_vm7, %v5562_v56  ;;  %v3690_v15 = vld [vmem:[#allocation6 + $0x40] sm:$0xff] }
 0x49d   : > { %v3531_v46 = vmul.f32 %v3530_v37, %v3528_v34  ;;  %v3538_v55 = vmul.f32 %v3537_v57, %v3528_v34  ;;  %1960 = vst.msk [vmem:[#allocation6 + $0x80] sm:$0xff] %vm1943_vm7, %v5562_v56  ;;  %v3683_v57 = vld [vmem:[#allocation6 + $0x8] sm:$0xff] }
 0x49e   : > { %1961 = vst.msk [vmem:[#allocation6 + $0x88] sm:$0xff] %vm1943_vm7, %v5562_v56  ;;  %v3691_v33 = vld [vmem:[#allocation6 + $0x48] sm:$0xff] }
 0x49f   : > { %v3532_v14 = vadd.f32 -0.4999988, %v3531_v46  ;;  %v3539_v21 = vadd.f32 -0.16666654, %v3538_v55  ;;  %1962 = vst.msk [vmem:[#allocation6 + $0x90] sm:$0xff] %vm1943_vm7, %v5562_v56  ;;  %v4076_v55 = vld [vmem:[%s8364_s0] sm:$0xff] }
 0x4a0   : > { %1963 = vst.msk [vmem:[#allocation6 + $0x98] sm:$0xff] %vm1943_vm7, %v5562_v56  ;;  %v3693_v19 = vld [vmem:[#allocation6 + $0x58] sm:$0xff] }
 0x4a1   : > { %v3533_v58 = vmul.f32 %v3532_v14, %v3528_v34  ;;  %v3540_v51 = vmul.f32 %v3539_v21, %v3528_v34  ;;  %1964 = vst.msk [vmem:[#allocation6 + $0xa0] sm:$0xff] %vm1943_vm7, %v5562_v56 }
 0x4a2   : > { %1965 = vst.msk [vmem:[#allocation6 + $0xa8] sm:$0xff] %vm1943_vm7, %v5562_v56 }
 0x4a3   : > { %v3534_v54 = vadd.f32 1.0, %v3533_v58  ;;  %v3541_v32 = vadd.f32 1.0, %v3540_v51  ;;  %1966 = vst.msk [vmem:[#allocation6 + $0xb0] sm:$0xff] %vm1943_vm7, %v5562_v56 }
 0x4a4   : > { %1967 = vst.msk [vmem:[#allocation6 + $0xb8] sm:$0xff] %vm1943_vm7, %v5562_v56  ;;  %v3698_v1 = vld [vmem:[#allocation6 + $0x80] sm:$0xff] }
 0x4a5   : > { %v3542_v39 = vmul.f32 %v3541_v32, %v3526_v9  ;;  %v3550_v8 = vxor.u32 2147483648, %v3534_v54  ;;  %1968 = vst.msk [vmem:[#allocation6 + $0xc0] sm:$0xff] %vm1943_vm7, %v5562_v56  ;;  %v3699_v32 = vld [vmem:[#allocation6 + $0x88] sm:$0xff] }
 0x4a6   : > { %1969 = vst.msk [vmem:[#allocation6 + $0xc8] sm:$0xff] %vm1943_vm7, %v5562_v56  ;;  %v3700_v42 = vld [vmem:[#allocation6 + $0x90] sm:$0xff] }
 0x4a7   : > { %v3547_v26 = vxor.u32 2147483648, %v3542_v39  ;;  %v3551_v30 = vsel %vm3549_vm3, %v3550_v8, %v3542_v39  ;;  %1970 = vst.msk [vmem:[#allocation6 + $0xd0] sm:$0xff] %vm1943_vm7, %v5562_v56 }
 0x4a8   : > { %1971 = vst.msk [vmem:[#allocation6 + $0xd8] sm:$0xff] %vm1943_vm7, %v5562_v56 }
 0x4a9   : > { %v3548_v22 = vsel %vm3546_vm0, %v3534_v54, %v3547_v26  ;;  %1972 = vst.msk [vmem:[#allocation6 + $0xe0] sm:$0xff] %vm1943_vm7, %v5562_v56  ;;  %v3692_v26 = vld [vmem:[#allocation6 + $0x50] sm:$0xff] }
 0x4aa   : > { %v3552_v13 = vsel %vm3545_vm2, %v3548_v22, %v3551_v30  ;;  %1973 = vst.msk [vmem:[#allocation6 + $0xe8] sm:$0xff] %vm1943_vm7, %v5562_v56 }
 0x4ab   : > { %v3553_v35 = vsel %vm3543_vm9, nan, %v3552_v13  ;;  %1974 = vst.msk [vmem:[#allocation6 + $0xf0] sm:$0xff] %vm1943_vm7, %v5562_v56 }
 0x4ac   : > { %v3561_v47 = vadd.f32 1.0, %v3553_v35  ;;  %1975 = vst.msk [vmem:[#allocation6 + $0xf8] sm:$0xff] %vm1943_vm7, %v5562_v56  ;;  %v3706_v46 = vld [vmem:[#allocation6 + $0xc0] sm:$0xff] }
 0x4ad   : > { %v3707_v45 = vld [vmem:[#allocation6 + $0xc8] sm:$0xff] }
 0x4ae   : > { %v3569_v27 = vmul.f32 0.5, %v3561_v47 }
 0x4b0   : > { %v3577_v4 = vsel %vm2217_vm15, %v3569_v27, 0.0  ;;  %v3685_v27 = vld [vmem:[#allocation6 + $0x18] sm:$0xff] }
 0x4b1   : > { %v4998_v7 = vpack.c.bf16 %v3577_v4, %v3576_v59  ;;  %v3601_v60 = vmul.f32 %v3577_v4, %v9092_v16  ;;  %v3625_v17 = vmul.f32 %v3577_v4, %v9093_v62  ;;  %v3649_v63 = vmul.f32 %v3577_v4, %v9094_v3 }
 0x4b3   : > { %5062 = vst [vmem:[#allocation5 + $0x18] sm:$0xff] %v4998_v7   ;;  %v5018_v23 = vpack.c.bf16 %v3601_v60, %v3600_v6  ;;  %v5038_v48 = vpack.c.bf16 %v3625_v17, %v3624_v29  ;;  %v5058_v25 = vpack.c.bf16 %v3649_v63, %v3648_v43  ;;  %v3708_v6 = vld [vmem:[#allocation6 + $0xd0] sm:$0xff] }
 0x4b4   : > { %v4078_v43 = vld [vmem:[%s8364_s0 + $0x10] sm:$0xff] }
 0x4b5   : > { %5066 = vst [vmem:[#allocation5 + $0x48] sm:$0xff] %v5018_v23  }
 0x4b6   : > { %5070 = vst [vmem:[#allocation5 + $0x38] sm:$0xff] %v5038_v48  }
 0x4b7   : > { %5074 = vst [vmem:[#allocation5 + $0x28] sm:$0xff] %v5058_v25  }
 0x4ba   : > { %v4966_v18 = vld [vmem:[#allocation5 + $0x18] sm:$0xff] }
 0x4bb   : > { %3913 = vmatmul.bf16.gmra.mxu0 %v4966_v18  ;;  %v3701_v18 = vld [vmem:[#allocation6 + $0x98] sm:$0xff] }
 0x4bc   : > { %v4970_v9 = vld [vmem:[#allocation5 + $0x48] sm:$0xff] }
 0x4bd   : > { %v4974_v53 = vld [vmem:[#allocation5 + $0x38] sm:$0xff]  ;;  %3933 = vmatmul.bf16.gmra.mxu1 %v4970_v9 }
 0x4be   : > { %v4978_v34 = vld [vmem:[#allocation5 + $0x28] sm:$0xff]  ;;  %3953 = vmatmul.bf16.gmra.mxu2 %v4974_v53  ;;  %v3709_v9 = vld [vmem:[#allocation6 + $0xd8] sm:$0xff] }
 0x4bf   : > { %3973 = vmatmul.bf16.gmra.mxu3 %v4978_v34  ;;  %v4079_v53 = vld [vmem:[%s8364_s0 + $0x18] sm:$0xff] }
 0x4e7   : > { %v3899_v2 = vpop.f32.mrf.mxu0 }
 0x4e8   : > { %v3979_v5 = vadd.f32 %v3899_v2, %v3682_v52 }
 0x4e9   : > { %v3919_v40 = vpop.f32.mrf.mxu1 }
 0x4ea   : > { %4011 = vst.msk [vmem:[#allocation6] sm:$0xff] %vm1943_vm7, %v3979_v5  ;;  %v3987_v37 = vadd.f32 %v3919_v40, %v3690_v15  ;;  %v3686_v15 = vld [vmem:[#allocation6 + $0x20] sm:$0xff] }
 0x4ec   : > { %4019 = vst.msk [vmem:[#allocation6 + $0x40] sm:$0xff] %vm1943_vm7, %v3987_v37 }
 0x4ee   : > { %v3939_v36 = vpop.f32.mrf.mxu2  ;;  %v3959_v38 = vpop.f32.mrf.mxu3 }
 0x4ef   : > { %v3901_v24 = vpop.f32.mrf.mxu0  ;;  %v3995_v21 = vadd.f32 %v3939_v36, %v3698_v1  ;;  %v4003_v51 = vadd.f32 %v3959_v38, %v3706_v46  ;;  %v3694_v1 = vld [vmem:[#allocation6 + $0x60] sm:$0xff] }
 0x4f0   : > { %v3980_v14 = vadd.f32 %v3901_v24, %v3683_v57  ;;  %v4080_v38 = vld [vmem:[%s8364_s0 + $0x20] sm:$0xff] }
 0x4f1   : > { %v4043_v58 = vld [vmem:[#allocation6] sm:$0xff]  ;;  %v3921_v56 = vpop.f32.mrf.mxu1  ;;  %4027 = vst.msk [vmem:[#allocation6 + $0x80] sm:$0xff] %vm1943_vm7, %v3995_v21  ;;  %v3687_v21 = vld [vmem:[#allocation6 + $0x28] sm:$0xff] }
 0x4f2   : > { %v4084_v12 = vadd.f32 %v4076_v55, %v4043_v58  ;;  %4012 = vst.msk [vmem:[#allocation6 + $0x8] sm:$0xff] %vm1943_vm7, %v3980_v14  ;;  %v3988_v11 = vadd.f32 %v3921_v56, %v3691_v33  ;;  %v3702_v58 = vld [vmem:[#allocation6 + $0xa0] sm:$0xff] }
 0x4f3   : > { %v4051_v31 = vld [vmem:[#allocation6 + $0x40] sm:$0xff]  ;;  %4035 = vst.msk [vmem:[#allocation6 + $0xc0] sm:$0xff] %vm1943_vm7, %v4003_v51 }
 0x4f4   : > { %v8377_v54 = vadd.f32 %v8372_v0, %v4084_v12  ;;  %4121 = vrot.lane.b32.xlu2 %v4051_v31, %s5563_s22  ;;  %4020 = vst.msk [vmem:[#allocation6 + $0x48] sm:$0xff] %vm1943_vm7, %v3988_v11  ;;  %v3710_v51 = vld [vmem:[#allocation6 + $0xe0] sm:$0xff]  ;;  %v3695_v11 = vld [vmem:[#allocation6 + $0x68] sm:$0xff] }
 0x4f6   : > { %4105 = vst.msk [vmem:[%s8364_s0] sm:$0xff] %vm4104_vm1, %v8377_v54  ;;  %v3941_v39 = vpop.f32.mrf.mxu2  ;;  %v3961_v28 = vpop.f32.mrf.mxu3 }
 0x4f7   : > { %v3996_v8 = vadd.f32 %v3941_v39, %v3699_v32  ;;  %v3904_v44 = vpop.f32.mrf.mxu0  ;;  %v4004_v22 = vadd.f32 %v3961_v28, %v3707_v45 }
 0x4f8   : > { %v3981_v30 = vadd.f32 %v3904_v44, %v3684_v50 }
 0x4f9   : > { %v4044_v20 = vld [vmem:[#allocation6 + $0x8] sm:$0xff]  ;;  %4028 = vst.msk [vmem:[#allocation6 + $0x88] sm:$0xff] %vm1943_vm7, %v3996_v8  ;;  %v3924_v13 = vpop.f32.mrf.mxu1 }
 0x4fa   : > { %v4085_v61 = vadd.f32 %v4077_v10, %v4044_v20  ;;  %4036 = vst.msk [vmem:[#allocation6 + $0xc8] sm:$0xff] %vm1943_vm7, %v4004_v22  ;;  %v4067_v41 = vld [vmem:[#allocation6 + $0xc0] sm:$0xff]  ;;  %v3989_v35 = vadd.f32 %v3924_v13, %v3692_v26  ;;  %v3703_v22 = vld [vmem:[#allocation6 + $0xa8] sm:$0xff] }
 0x4fb   : > { %4013 = vst.msk [vmem:[#allocation6 + $0x10] sm:$0xff] %vm1943_vm7, %v3981_v30  ;;  %4153 = vrot.lane.b32.xlu1 %v4067_v41, %s5564_s20  ;;  %v4052_v59 = vld [vmem:[#allocation6 + $0x48] sm:$0xff] }
 0x4fc   : > { %v8389_v47 = vadd.f32 %v8372_v0, %v4085_v61  ;;  %4021 = vst.msk [vmem:[#allocation6 + $0x50] sm:$0xff] %vm1943_vm7, %v3989_v35  ;;  %4123 = vrot.lane.b32.xlu0 %v4052_v59, %s5563_s22  ;;  %v4081_v30 = vld [vmem:[%s8364_s0 + $0x28] sm:$0xff] }
 0x4fd   : > { %v3711_v61 = vld [vmem:[#allocation6 + $0xe8] sm:$0xff] }
 0x4fe   : > { %4106 = vst.msk [vmem:[%s8364_s0 + $0x8] sm:$0xff] %vm4104_vm1, %v8389_v47  ;;  %v3944_v29 = vpop.f32.mrf.mxu2  ;;  %v3964_v16 = vpop.f32.mrf.mxu3 }
 0x4ff   : > { %v3906_v49 = vpop.f32.mrf.mxu0  ;;  %v3997_v7 = vadd.f32 %v3944_v29, %v3700_v42  ;;  %v4005_v60 = vadd.f32 %v3964_v16, %v3708_v6 }
 0x500   : > { %v3982_v4 = vadd.f32 %v3906_v49, %v3685_v27 }
 0x501   : > { %v4068_v62 = vld [vmem:[#allocation6 + $0xc8] sm:$0xff]  ;;  %v3926_v17 = vpop.f32.mrf.mxu1  ;;  %4029 = vst.msk [vmem:[#allocation6 + $0x90] sm:$0xff] %vm1943_vm7, %v3997_v7 }
 0x502   : > { %v4045_v3 = vld [vmem:[#allocation6 + $0x10] sm:$0xff]  ;;  %4014 = vst.msk [vmem:[#allocation6 + $0x18] sm:$0xff] %vm1943_vm7, %v3982_v4  ;;  %4155 = vrot.lane.b32.xlu2 %v4068_v62, %s5564_s20  ;;  %v3990_v63 = vadd.f32 %v3926_v17, %v3693_v19  ;;  %v3689_v62 = vld [vmem:[#allocation6 + $0x38] sm:$0xff] }
 0x503   : > { %v4086_v23 = vadd.f32 %v4078_v43, %v4045_v3  ;;  %v4053_v48 = vld [vmem:[#allocation6 + $0x50] sm:$0xff]  ;;  %4037 = vst.msk [vmem:[#allocation6 + $0xd0] sm:$0xff] %vm1943_vm7, %v4005_v60 }
 0x504   : > { %4125 = vrot.lane.b32.xlu1 %v4053_v48, %s5563_s22  ;;  %4022 = vst.msk [vmem:[#allocation6 + $0x58] sm:$0xff] %vm1943_vm7, %v3990_v63  ;;  %v3688_v19 = vld [vmem:[#allocation6 + $0x30] sm:$0xff]  ;;  %v3697_v48 = vld [vmem:[#allocation6 + $0x78] sm:$0xff] }
 0x505   : > { %v8405_v25 = vadd.f32 %v8372_v0, %v4086_v23  ;;  %v3696_v4 = vld [vmem:[#allocation6 + $0x70] sm:$0xff] }
 0x506   : > { %v3946_v34 = vpop.f32.mrf.mxu2  ;;  %v3966_v2 = vpop.f32.mrf.mxu3  ;;  %v3704_v17 = vld [vmem:[#allocation6 + $0xb0] sm:$0xff] }
 0x507   : > { %4107 = vst.msk [vmem:[%s8364_s0 + $0x10] sm:$0xff] %vm4104_vm1, %v8405_v25  ;;  %v3998_v52 = vadd.f32 %v3946_v34, %v3701_v18  ;;  %v4006_v40 = vadd.f32 %v3966_v2, %v3709_v9  ;;  %v4082_v3 = vld [vmem:[%s8364_s0 + $0x30] sm:$0xff] }
 0x508   : > { %v3712_v23 = vld [vmem:[#allocation6 + $0xf0] sm:$0xff] }
 0x509   : > { %v4046_v5 = vld [vmem:[#allocation6 + $0x18] sm:$0xff]  ;;  %4030 = vst.msk [vmem:[#allocation6 + $0x98] sm:$0xff] %vm1943_vm7, %v3998_v52 }
 0x50a   : > { %v4087_v37 = vadd.f32 %v4079_v53, %v4046_v5  ;;  %4038 = vst.msk [vmem:[#allocation6 + $0xd8] sm:$0xff] %vm1943_vm7, %v4006_v40  ;;  %v4069_v46 = vld [vmem:[#allocation6 + $0xd0] sm:$0xff] }
 0x50b   : > { %4157 = vrot.lane.b32.xlu0 %v4069_v46, %s5564_s20  ;;  %v4054_v36 = vld [vmem:[#allocation6 + $0x58] sm:$0xff] }
 0x50c   : > { %v8415_v24 = vadd.f32 %v8372_v0, %v4087_v37  ;;  %4127 = vrot.lane.b32.xlu2 %v4054_v36, %s5563_s22  ;;  %v4083_v46 = vld [vmem:[%s8364_s0 + $0x38] sm:$0xff] }
 0x50d   : > { %v3909_v57 = vpop.f32.mrf.mxu0 }
 0x50e   : > { %v3983_v55 = vadd.f32 %v3909_v57, %v3686_v15  ;;  %4108 = vst.msk [vmem:[%s8364_s0 + $0x18] sm:$0xff] %vm4104_vm1, %v8415_v24 }
 0x50f   : > { %v3929_v33 = vpop.f32.mrf.mxu1 }
 0x510   : > { %4015 = vst.msk [vmem:[#allocation6 + $0x20] sm:$0xff] %vm1943_vm7, %v3983_v55  ;;  %v3991_v14 = vadd.f32 %v3929_v33, %v3694_v1  ;;  %v3705_v1 = vld [vmem:[#allocation6 + $0xb8] sm:$0xff] }
 0x511   : > { %v4070_v56 = vld [vmem:[#allocation6 + $0xd8] sm:$0xff] }
 0x512   : > { %4023 = vst.msk [vmem:[#allocation6 + $0x60] sm:$0xff] %vm1943_vm7, %v3991_v14  ;;  %4159 = vrot.lane.b32.xlu1 %v4070_v56, %s5564_s20  ;;  %v3713_v55 = vld [vmem:[#allocation6 + $0xf8] sm:$0xff] }
 0x515   : > { %v3911_v12 = vpop.f32.mrf.mxu0 }
 0x516   : > { %v3949_v31 = vpop.f32.mrf.mxu2  ;;  %v3984_v32 = vadd.f32 %v3911_v12, %v3687_v21 }
 0x517   : > { %v4047_v45 = vld [vmem:[#allocation6 + $0x20] sm:$0xff]  ;;  %v3999_v50 = vadd.f32 %v3949_v31, %v3702_v58  ;;  %v3969_v10 = vpop.f32.mrf.mxu3  ;;  %v3931_v39 = vpop.f32.mrf.mxu1 }
 0x518   : > { %v4088_v8 = vadd.f32 %v4080_v38, %v4047_v45  ;;  %v4007_v28 = vadd.f32 %v3969_v10, %v3710_v51  ;;  %4016 = vst.msk [vmem:[#allocation6 + $0x28] sm:$0xff] %vm1943_vm7, %v3984_v32  ;;  %v3992_v44 = vadd.f32 %v3931_v39, %v3695_v11  ;;  %v4059_v45 = vld [vmem:[#allocation6 + $0x80] sm:$0xff] }
 0x519   : > { %4031 = vst.msk [vmem:[#allocation6 + $0xa0] sm:$0xff] %vm1943_vm7, %v3999_v50  ;;  %v4055_v26 = vld [vmem:[#allocation6 + $0x60] sm:$0xff] }
 0x51a   : > { %v8429_v20 = vadd.f32 %v8372_v0, %v4088_v8  ;;  %4039 = vst.msk [vmem:[#allocation6 + $0xe0] sm:$0xff] %vm1943_vm7, %v4007_v28  ;;  %4129 = vrot.lane.b32.xlu0 %v4055_v26, %s5563_s22  ;;  %v4060_v8 = vld [vmem:[#allocation6 + $0x88] sm:$0xff] }
 0x51b   : > { %4024 = vst.msk [vmem:[#allocation6 + $0x68] sm:$0xff] %vm1943_vm7, %v3992_v44  ;;  %v4195_v28 = vld [vmem:[%s8476_s13 + $0x8] sm:$0xff] }
 0x51c   : > { %4109 = vst.msk [vmem:[%s8364_s0 + $0x20] sm:$0xff] %vm4104_vm1, %v8429_v20 }
 0x51e   : > { %v3951_v13 = vpop.f32.mrf.mxu2 }
 0x51f   : > { %v4048_v41 = vld [vmem:[#allocation6 + $0x28] sm:$0xff]  ;;  %v4000_v35 = vadd.f32 %v3951_v13, %v3703_v22  ;;  %v3971_v59 = vpop.f32.mrf.mxu3 }
 0x520   : > { %v4089_v27 = vadd.f32 %v4081_v30, %v4048_v41  ;;  %v4008_v42 = vadd.f32 %v3971_v59, %v3711_v61  ;;  %v4196_v59 = vld [vmem:[%s8476_s13 + $0x10] sm:$0xff] }
 0x521   : > { %4032 = vst.msk [vmem:[#allocation6 + $0xa8] sm:$0xff] %vm1943_vm7, %v4000_v35  ;;  %v4071_v6 = vld [vmem:[#allocation6 + $0xe0] sm:$0xff]  ;;  %v4061_v35 = vld [vmem:[#allocation6 + $0x90] sm:$0xff] }
 0x522   : > { %v8440_v49 = vadd.f32 %v8372_v0, %v4089_v27  ;;  %4040 = vst.msk [vmem:[#allocation6 + $0xe8] sm:$0xff] %vm1943_vm7, %v4008_v42  ;;  %4161 = vrot.lane.b32.xlu2 %v4071_v6, %s5564_s20  ;;  %v4056_v29 = vld [vmem:[#allocation6 + $0x68] sm:$0xff] }
 0x523   : > { %4131 = vrot.lane.b32.xlu1 %v4056_v29, %s5563_s22 }
 0x524   : > { %4110 = vst.msk [vmem:[%s8364_s0 + $0x28] sm:$0xff] %vm4104_vm1, %v8440_v49 }
 0x529   : > { %v4072_v31 = vld [vmem:[#allocation6 + $0xe8] sm:$0xff] }
 0x538   : > { %v3914_v43 = vpop.f32.mrf.mxu0 }
 0x539   : > { %v3985_v7 = vadd.f32 %v3914_v43, %v3688_v19  ;;  %v4062_v43 = vld [vmem:[#allocation6 + $0x98] sm:$0xff] }
 0x53a   : > { %v3934_v16 = vpop.f32.mrf.mxu1 }
 0x53b   : > { %4017 = vst.msk [vmem:[#allocation6 + $0x30] sm:$0xff] %vm1943_vm7, %v3985_v7  ;;  %v3993_v60 = vadd.f32 %v3934_v16, %v3696_v4  ;;  %v4197_v4 = vld [vmem:[%s8476_s13 + $0x18] sm:$0xff] }
 0x53d   : > { %4025 = vst.msk [vmem:[#allocation6 + $0x70] sm:$0xff] %vm1943_vm7, %v3993_v60 }
 0x540   : > { %v3916_v63 = vpop.f32.mrf.mxu0 }
 0x541   : > { %v3986_v18 = vadd.f32 %v3916_v63, %v3689_v62  ;;  %v3954_v9 = vpop.f32.mrf.mxu2 }
 0x542   : > { %v4049_v53 = vld [vmem:[#allocation6 + $0x30] sm:$0xff]  ;;  %v4001_v34 = vadd.f32 %v3954_v9, %v3704_v17  ;;  %v3974_v52 = vpop.f32.mrf.mxu3  ;;  %v3936_v2 = vpop.f32.mrf.mxu1  ;;  %v4063_v17 = vld [vmem:[#allocation6 + $0xa0] sm:$0xff] }
 0x543   : > { %v4090_v15 = vadd.f32 %v4082_v3, %v4049_v53  ;;  %4018 = vst.msk [vmem:[#allocation6 + $0x38] sm:$0xff] %vm1943_vm7, %v3986_v18  ;;  %v4009_v5 = vadd.f32 %v3974_v52, %v3712_v23  ;;  %v3994_v40 = vadd.f32 %v3936_v2, %v3697_v48  ;;  %v4198_v3 = vld [vmem:[%s8476_s13 + $0x20] sm:$0xff]  ;;  %v4200_v2 = vld [vmem:[%s8476_s13 + $0x30] sm:$0xff] }
 0x544   : > { %4033 = vst.msk [vmem:[#allocation6 + $0xb0] sm:$0xff] %vm1943_vm7, %v4001_v34  ;;  %v4057_v37 = vld [vmem:[#allocation6 + $0x70] sm:$0xff] }
 0x545   : > { %v8454_v57 = vadd.f32 %v8372_v0, %v4090_v15  ;;  %4041 = vst.msk [vmem:[#allocation6 + $0xf0] sm:$0xff] %vm1943_vm7, %v4009_v5  ;;  %4133 = vrot.lane.b32.xlu2 %v4057_v37, %s5563_s22 }
 0x546   : > { %4026 = vst.msk [vmem:[#allocation6 + $0x78] sm:$0xff] %vm1943_vm7, %v3994_v40 }
 0x547   : > { %4111 = vst.msk [vmem:[%s8364_s0 + $0x30] sm:$0xff] %vm4104_vm1, %v8454_v57 }
 0x549   : > { %v3956_v36 = vpop.f32.mrf.mxu2 }
 0x54a   : > { %v4050_v33 = vld [vmem:[#allocation6 + $0x38] sm:$0xff]  ;;  %v4002_v14 = vadd.f32 %v3956_v36, %v3705_v1  ;;  %v3976_v21 = vpop.f32.mrf.mxu3 }
 0x54b   : > { %v4091_v38 = vadd.f32 %v4083_v46, %v4050_v33  ;;  %v4010_v58 = vadd.f32 %v3976_v21, %v3713_v55  ;;  %v4065_v52 = vld [vmem:[#allocation6 + $0xb0] sm:$0xff]  ;;  %v4201_v1 = vld [vmem:[%s8476_s13 + $0x38] sm:$0xff] }
 0x54c   : > { %4034 = vst.msk [vmem:[#allocation6 + $0xb8] sm:$0xff] %vm1943_vm7, %v4002_v14  ;;  %v4073_v51 = vld [vmem:[#allocation6 + $0xf0] sm:$0xff] }
 0x54d   : > { %v8465_v56 = vadd.f32 %v8372_v0, %v4091_v38  ;;  %4042 = vst.msk [vmem:[#allocation6 + $0xf8] sm:$0xff] %vm1943_vm7, %v4010_v58  ;;  %4165 = vrot.lane.b32.xlu1 %v4073_v51, %s5564_s20  ;;  %v4058_v12 = vld [vmem:[#allocation6 + $0x78] sm:$0xff]  ;;  %v4194_v0 = vld [vmem:[%s8476_s13] sm:$0xff]  ;;  %v4064_v38 = vld [vmem:[#allocation6 + $0xa8] sm:$0xff] }
 0x54e   : > { %4135 = vrot.lane.b32.xlu0 %v4058_v12, %s5563_s22  ;;  %v4122_v32 = vpop.permute.xlu2 %4121  ;;  %v4199_v58 = vld [vmem:[%s8476_s13 + $0x28] sm:$0xff]  ;;  %s9110_s22 = sld [smem:[#allocation64_spill]] (!%p4929_p5) }
 0x54f   : > { %4112 = vst.msk [vmem:[%s8364_s0 + $0x38] sm:$0xff] %vm4104_vm1, %v8465_v56  ;;  %v4177_v50 = vsel %vm4104_vm1, %v4122_v32, %v4059_v45  ;;  %s9097_s0 = sld [smem:[#allocation63_spill]] (!%p4929_p5) }
 0x553   : > { %v4066_v37 = vld [vmem:[#allocation6 + $0xb8] sm:$0xff] }
 0x554   : > { %v4074_v11 = vld [vmem:[#allocation6 + $0xf8] sm:$0xff] }
 0x555   : > { %4167 = vrot.lane.b32.xlu2 %v4074_v11, %s5564_s20  ;;  %s9098_s16 = smov (!%p4929_p5), %s9097_s0 }
 0x556   : > { %4163 = vrot.lane.b32.xlu0 %v4072_v31, %s5564_s20 }
 0x55c   : > { %v4156_v26 = vpop.permute.xlu2 %4155 }
 0x566   : > { %v4128_v19 = vpop.permute.xlu2 %4127 }
 0x567   : > { %v4180_v7 = vsel %vm4104_vm1, %v4128_v19, %v4062_v43 }
 0x56d   : > { %v4154_v10 = vpop.permute.xlu1 %4153 }
 0x56e   : > { %v4185_v39 = vsel %vm1943_vm7, %v4177_v50, %v4154_v10  ;;  %v4124_v44 = vpop.permute.xlu0 %4123 }
 0x56f   : > { %v8482_v22 = vadd.f32 %v4194_v0, %v4185_v39  ;;  %v4178_v30 = vsel %vm4104_vm1, %v4124_v44, %v4060_v8 }
 0x570   : > { %v4186_v61 = vsel %vm1943_vm7, %v4178_v30, %v4156_v26 }
 0x571   : > { %4211 = vst.msk [vmem:[%s8476_s13] sm:$0xff] %vm4210_vm10, %v8482_v22  ;;  %v8489_v13 = vadd.f32 %v4195_v28, %v4186_v61 }
 0x573   : > { %4212 = vst.msk [vmem:[%s8476_s13 + $0x8] sm:$0xff] %vm4210_vm10, %v8489_v13 }
 0x576   : > { %v4126_v41 = vpop.permute.xlu1 %4125 }
 0x577   : > { %v4179_v27 = vsel %vm4104_vm1, %v4126_v41, %v4061_v35 }
 0x57c   : > { %v4162_v23 = vpop.permute.xlu2 %4161 }
 0x57d   : > { %v4158_v42 = vpop.permute.xlu0 %4157 }
 0x57e   : > { %v4187_v6 = vsel %vm1943_vm7, %v4179_v27, %v4158_v42 }
 0x57f   : > { %v4204_v29 = vadd.f32 %v4196_v59, %v4187_v6 }
 0x581   : > { %4213 = vst.msk [vmem:[%s8476_s13 + $0x10] sm:$0xff] %vm4210_vm10, %v4204_v29 }
 0x584   : > { %v4160_v16 = vpop.permute.xlu1 %4159 }
 0x585   : > { %v4188_v60 = vsel %vm1943_vm7, %v4180_v7, %v4160_v16 }
 0x586   : > { %v4205_v62 = vadd.f32 %v4197_v4, %v4188_v60 }
 0x588   : > { %4214 = vst.msk [vmem:[%s8476_s13 + $0x18] sm:$0xff] %vm4210_vm10, %v4205_v62 }
 0x58c   : > { %v4130_v63 = vpop.permute.xlu0 %4129 }
 0x58d   : > { %v4181_v48 = vsel %vm4104_vm1, %v4130_v63, %v4063_v17 }
 0x58e   : > { %v4189_v18 = vsel %vm1943_vm7, %v4181_v48, %v4162_v23 }
 0x58f   : > { %v4206_v9 = vadd.f32 %v4198_v3, %v4189_v18 }
 0x591   : > { %4215 = vst.msk [vmem:[%s8476_s13 + $0x20] sm:$0xff] %vm4210_vm10, %v4206_v9 }
 0x595   : > { %v4132_v53 = vpop.permute.xlu1 %4131 }
 0x596   : > { %v4182_v51 = vsel %vm4104_vm1, %v4132_v53, %v4064_v38 }
 0x59f   : > { %v4134_v34 = vpop.permute.xlu2 %4133 }
 0x5a0   : > { %v4183_v15 = vsel %vm4104_vm1, %v4134_v34, %v4065_v52 }
 0x5af   : > { %v4168_v55 = vpop.permute.xlu2 %4167 }
 0x5bf   : > { %v4166_v5 = vpop.permute.xlu1 %4165 }
 0x5c0   : > { %v4191_v40 = vsel %vm1943_vm7, %v4183_v15, %v4166_v5  ;;  %v4136_v46 = vpop.permute.xlu0 %4135 }
 0x5c1   : > { %v4208_v36 = vadd.f32 %v4200_v2, %v4191_v40  ;;  %v4184_v33 = vsel %vm4104_vm1, %v4136_v46, %v4066_v37 }
 0x5c2   : > { %v4192_v14 = vsel %vm1943_vm7, %v4184_v33, %v4168_v55 }
 0x5c3   : > { %4217 = vst.msk [vmem:[%s8476_s13 + $0x30] sm:$0xff] %vm4210_vm10, %v4208_v36  ;;  %v4209_v21 = vadd.f32 %v4201_v1, %v4192_v14 }
 0x5c5   : > { %4218 = vst.msk [vmem:[%s8476_s13 + $0x38] sm:$0xff] %vm4210_vm10, %v4209_v21 }
 0x5c8   : > { %v4164_v12 = vpop.permute.xlu0 %4163  ;;  %4222 = sbr.rel (%p4929_p5) target bundleno = 1827 (0x723), region = 100 }
 0x5c9   : > { %v4190_v11 = vsel %vm1943_vm7, %v4182_v51, %v4164_v12 }
 0x5ca   : > { %v4207_v31 = vadd.f32 %v4199_v58, %v4190_v11 }
 0x5cc   : > { %4216 = vst.msk [vmem:[%s8476_s13 + $0x28] sm:$0xff] %vm4210_vm10, %v4207_v31 }
 0x5cd   : > { %v4226_v32 = vld [vmem:[%s9095_s27 + $0x18] sm:$0xff]  ;;  %v4225_v45 = vld [vmem:[%s9096_s19 + $0x10] sm:$0xff]  ;;  %v4224_v0 = vld [vmem:[%s9096_s19 + $0x8] sm:$0xff]  ;;  %4468 = vrot.lane.b32.xlu2 %v4204_v29, %s5565_s30  ;;  %v5406_v10 = vpack.i.bf16 %v8482_v22, %v4205_v62  ;;  %v5411_v39 = vpack.i.bf16 %v4208_v36, %v4206_v9  ;;  %v5416_v8 = vpack.i.bf16 %v4207_v31, %v8489_v13 }
 0x5ce   : > { %4267 = vmatpush.msra.mxu0 %v4226_v32  ;;  %5108 = vmatpush.msra.mxu3 %v4226_v32  ;;  %v4223_v50 = vld [vmem:[%s9096_s19] sm:$0xff]  ;;  %v4503_v28 = vld [vmem:[%s9098_s16 + $0x38] sm:$0xff]  ;;  %v4502_v44 = vld [vmem:[%s9098_s16 + $0x30] sm:$0xff] }
 0x5cf   : > { %5407 = vrot.lane.b32.xlu0 %v5406_v10, %s5565_s30  ;;  %5417 = vrot.lane.b32.xlu1 %v5416_v8, %s5565_s30  ;;  %v4501_v26 = vld [vmem:[%s9098_s16 + $0x28] sm:$0xff]  ;;  %v4500_v22 = vld [vmem:[%s9098_s16 + $0x20] sm:$0xff] }
 0x5d0   : > { %4268 = vmatpush.msra.mxu0 %v4225_v45  ;;  %5109 = vmatpush.msra.mxu3 %v4225_v45  ;;  %v4499_v30 = vld [vmem:[%s9098_s16 + $0x18] sm:$0xff]  ;;  %v8597_v61 = vld [vmem:[%s9099_s17] ss:$0 sm:$0xff]  ;;  %v4498_v13 = vld [vmem:[%s9098_s16 + $0x10] sm:$0xff] }
 0x5d1   : > { %v4497_v41 = vld [vmem:[%s9098_s16 + $0x8] sm:$0xff]  ;;  %v4496_v27 = vld [vmem:[%s9098_s16] sm:$0xff] }
 0x5d2   : > { %4269 = vmatpush.msra.mxu0 %v4224_v0  ;;  %5110 = vmatpush.msra.mxu3 %v4224_v0 }
 0x5d4   : > { %4270 = vmatpush.msra.mxu0 %v4223_v50  ;;  %5111 = vmatpush.msra.mxu3 %v4223_v50 }
 0x5d5   : > { %4930 = vmatmul.msk.f32.vlgmr.msra.gmra.mxu0 %vm4104_vm1, %v8377_v54  ;;  %4936 = vmatmul.msk.f32.vlgmr.msra.gmra.mxu3 %vm4104_vm1, %v8454_v57  ;;  %v4511_v54 = vld [vmem:[%s9097_s0 + $0x78] sm:$0xff]  ;;  %v4505_v57 = vld [vmem:[%s9098_s16 + $0x48] sm:$0xff] }
 0x5d6   : > { %4516 = vmatpush.msra.mxu1 %v4511_v54  ;;  %5113 = vmatpush.msrb.mxu3 %v4511_v54 }
 0x5d7   : > { %5412 = vrot.lane.b32.xlu0 %v5411_v39, %s5565_s30  ;;  %4478 = vrot.lane.b32.xlu1 %v4209_v21, %s5565_s30 }
 0x5d8   : > { %5112 = vmatpush.msra.mxu2 %v4511_v54 }
 0x5dd   : > { %4931 = vmatmul.msk.f32.gmra.mxu0 %vm4104_vm1, %v8389_v47  ;;  %4937 = vmatmul.msk.f32.gmra.mxu3 %vm4104_vm1, %v8465_v56  ;;  %v4510_v47 = vld [vmem:[%s9098_s16 + $0x70] sm:$0xff]  ;;  %v4504_v56 = vld [vmem:[%s9098_s16 + $0x40] sm:$0xff] }
 0x5de   : > { %4517 = vmatpush.msra.mxu1 %v4510_v47  ;;  %5115 = vmatpush.msrb.mxu3 %v4510_v47 }
 0x5df   : > { %5114 = vmatpush.msra.mxu2 %v4510_v47 }
 0x5e5   : > { %4932 = vmatmul.msk.f32.gmra.mxu0 %vm4104_vm1, %v8405_v25  ;;  %v4509_v25 = vld [vmem:[%s9098_s16 + $0x68] sm:$0xff] }
 0x5e6   : > { %4518 = vmatpush.msra.mxu1 %v4509_v25  ;;  %5117 = vmatpush.msrb.mxu3 %v4509_v25 }
 0x5e7   : > { %5116 = vmatpush.msra.mxu2 %v4509_v25 }
 0x5ed   : > { %4933 = vmatmul.msk.f32.gmra.mxu0 %vm4104_vm1, %v8415_v24  ;;  %v4508_v24 = vld [vmem:[%s9098_s16 + $0x60] sm:$0xff] }
 0x5ee   : > { %4519 = vmatpush.msra.mxu1 %v4508_v24  ;;  %5119 = vmatpush.msrb.mxu3 %v4508_v24 }
 0x5ef   : > { %5118 = vmatpush.msra.mxu2 %v4508_v24 }
 0x5f5   : > { %4934 = vmatmul.msk.f32.gmra.mxu0 %vm4104_vm1, %v8429_v20  ;;  %v4507_v20 = vld [vmem:[%s9098_s16 + $0x58] sm:$0xff] }
 0x5f6   : > { %4520 = vmatpush.msra.mxu1 %v4507_v20  ;;  %5121 = vmatpush.msrb.mxu3 %v4507_v20 }
 0x5f7   : > { %5120 = vmatpush.msra.mxu2 %v4507_v20 }
 0x5fd   : > { %4935 = vmatmul.msk.f32.gmra.mxu0 %vm4104_vm1, %v8440_v49  ;;  %v4506_v49 = vld [vmem:[%s9098_s16 + $0x50] sm:$0xff] }
 0x5fe   : > { %4521 = vmatpush.msra.mxu1 %v4506_v49  ;;  %5123 = vmatpush.msrb.mxu3 %v4506_v49 }
 0x5ff   : > { %5122 = vmatpush.msra.mxu2 %v4506_v49 }
 0x600   : > { %4522 = vmatpush.msra.mxu1 %v4505_v57  ;;  %5125 = vmatpush.msrb.mxu3 %v4505_v57 }
 0x601   : > { %5124 = vmatpush.msra.mxu2 %v4505_v57 }
 0x602   : > { %4523 = vmatpush.msra.mxu1 %v4504_v56  ;;  %5127 = vmatpush.msrb.mxu3 %v4504_v56 }
 0x603   : > { %5126 = vmatpush.msra.mxu2 %v4504_v56 }
 0x604   : > { %4524 = vmatpush.msra.mxu1 %v4503_v28  ;;  %5129 = vmatpush.msrb.mxu3 %v4503_v28 }
 0x605   : > { %5128 = vmatpush.msra.mxu2 %v4503_v28 }
 0x606   : > { %4525 = vmatpush.msra.mxu1 %v4502_v44  ;;  %5131 = vmatpush.msrb.mxu3 %v4502_v44 }
 0x607   : > { %5130 = vmatpush.msra.mxu2 %v4502_v44 }
 0x608   : > { %4526 = vmatpush.msra.mxu1 %v4501_v26  ;;  %5133 = vmatpush.msrb.mxu3 %v4501_v26 }
 0x609   : > { %5132 = vmatpush.msra.mxu2 %v4501_v26 }
 0x60a   : > { %4527 = vmatpush.msra.mxu1 %v4500_v22  ;;  %5135 = vmatpush.msrb.mxu3 %v4500_v22 }
 0x60b   : > { %5134 = vmatpush.msra.mxu2 %v4500_v22 }
 0x60c   : > { %4528 = vmatpush.msra.mxu1 %v4499_v30  ;;  %5137 = vmatpush.msrb.mxu3 %v4499_v30 }
 0x60d   : > { %5136 = vmatpush.msra.mxu2 %v4499_v30 }
 0x60e   : > { %4529 = vmatpush.msra.mxu1 %v4498_v13  ;;  %5139 = vmatpush.msrb.mxu3 %v4498_v13 }
 0x60f   : > { %5138 = vmatpush.msra.mxu2 %v4498_v13 }
 0x610   : > { %4530 = vmatpush.msra.mxu1 %v4497_v41  ;;  %5141 = vmatpush.msrb.mxu3 %v4497_v41 }
 0x611   : > { %5140 = vmatpush.msra.mxu2 %v4497_v41 }
 0x612   : > { %4531 = vmatpush.msra.mxu1 %v4496_v27  ;;  %5143 = vmatpush.msrb.mxu3 %v4496_v27 }
 0x613   : > { %5142 = vmatpush.msra.mxu2 %v4496_v27 }
 0x641   : > { %v8627_v18 = vpop.permute.xlu0 %5407  ;;  %v8651_v10 = vpop.permute.xlu1 %5417 }
 0x642   : > { %v5410_v46 = vunpack.i.h.bf16 %v8627_v18  ;;  %v5419_v28 = vunpack.i.l.bf16 %v8651_v10 }
 0x649   : > { %v8644_v45 = vpop.permute.xlu0 %5412 }
 0x64a   : > { %v5415_v24 = vunpack.i.h.bf16 %v8644_v45 }
 0x652   : > { %v4272_v35 = vpop.f32.mrf.mxu0 }
 0x653   : > { %v8606_v59 = vadd.f32 %v8597_v61, %v4272_v35 }
 0x655   : > { %v4938_v42 = vmul.f32 -1.442695, %v8606_v59 }
 0x657   : > { %5423 = vpow2.f32 %v4938_v42 }
 0x658   : > { %v4290_v6 = vpop.f32.mrf.mxu3 }
 0x659   : > { %v8613_v29 = vadd.f32 %v8597_v61, %v4290_v6 }
 0x65a   : > { %v4275_v19 = vpop.f32.mrf.mxu0 }
 0x65b   : > { %v4944_v43 = vmul.f32 -1.442695, %v8613_v29  ;;  %v8617_v4 = vadd.f32 %v8597_v61, %v4275_v19 }
 0x65d   : > { %v5424_v7 = vpop.eup %5423  ;;  %5425 = vpow2.f32 %v4944_v43  ;;  %v4939_v16 = vmul.f32 -1.442695, %v8617_v4 }
 0x65e   : > { %v4320_v60 = vadd.f32 1.0, %v5424_v7 }
 0x65f   : > { %5427 = vpow2.f32 %v4939_v16 }
 0x660   : > { %5429 = vrcp.f32 %v4320_v60  ;;  %v4293_v62 = vpop.f32.mrf.mxu3  ;;  %v4337_v5 = vand.u32 2147483647, %v4320_v60  ;;  %v4339_v40 = vand.u32 2147483648, %v4320_v60  ;;  %vm4333_vm7 = vweird.f32 %v4320_v60 }
 0x661   : > { %v8621_v17 = vadd.f32 %v8597_v61, %v4293_v62 }
 0x662   : > { %v4278_v3 = vpop.f32.mrf.mxu0  ;;  %vm8639_vm0 = vcmp.eq.f32.partialorder %v4337_v5, 8.507059e+37  ;;  %v4340_v58 = vor.u32 1.1754944e-38, %v4339_v40 }
 0x663   : > { %v5426_v63 = vpop.eup %5425  ;;  %v4945_v23 = vmul.f32 -1.442695, %v8621_v17  ;;  %v8625_v48 = vadd.f32 %v8597_v61, %v4278_v3 }
 0x664   : > { %v4326_v9 = vadd.f32 1.0, %v5426_v63 }
 0x665   : > { %v5428_v53 = vpop.eup %5427  ;;  %5431 = vpow2.f32 %v4945_v23  ;;  %v4940_v34 = vmul.f32 -1.442695, %v8625_v48 }
 0x666   : > { %v5430_v52 = vpop.eup %5429  ;;  %5433 = vrcp.f32 %v4326_v9  ;;  %v8630_v2 = vadd.f32 1.0, %v5428_v53  ;;  %vm4423_vm14 = vweird.f32 %v4326_v9  ;;  %v4427_v11 = vand.u32 2147483647, %v4326_v9 }
 0x667   : > { %5435 = vpow2.f32 %v4940_v34  ;;  %v4329_v15 = vmul.f32 %v5430_v52, %v4320_v60  ;;  %vm4334_vm8 = vweird.f32 %v5430_v52  ;;  %v4429_v0 = vand.u32 2147483648, %v4326_v9 }
 0x668   : > { %5437 = vrcp.f32 %v8630_v2  ;;  %vm4335_vm3 = vmor %vm4333_vm7, %vm4334_vm8  ;;  %v4354_v39 = vand.u32 2147483648, %v8630_v2  ;;  %vm8659_vm2 = vcmp.eq.f32.partialorder %v4427_v11, 8.507059e+37  ;;  %vm4348_vm11 = vweird.f32 %v8630_v2 }
 0x669   : > { %v4330_v37 = vsub.f32 1.0, %v4329_v15  ;;  %v4430_v26 = vor.u32 1.1754944e-38, %v4429_v0  ;;  %v4352_v13 = vand.u32 2147483647, %v8630_v2 }
 0x66a   : > { %v4281_v1 = vpop.f32.mrf.mxu0  ;;  %v4355_v27 = vor.u32 1.1754944e-38, %v4354_v39 }
 0x66b   : > { %v5432_v55 = vpop.eup %5431  ;;  %v8635_v36 = vadd.f32 %v8597_v61, %v4281_v1  ;;  %v4331_v33 = vmul.f32 %v5430_v52, %v4330_v37  ;;  %vm4353_vm15 = vcmp.eq.f32.partialorder %v4352_v13, 8.507059e+37 }
 0x66c   : > { %v5434_v14 = vpop.eup %5433  ;;  %v8637_v21 = vadd.f32 1.0, %v5432_v55 }
 0x66d   : > { %v5436_v51 = vpop.eup %5435  ;;  %v4419_v12 = vmul.f32 %v5434_v14, %v4326_v9  ;;  %v4941_v31 = vmul.f32 -1.442695, %v8635_v36  ;;  %v4332_v32 = vadd.f32 %v5430_v52, %v4331_v33  ;;  %vm4424_vm5 = vweird.f32 %v5434_v14 }
 0x66e   : > { %5439 = vrcp.f32 %v8637_v21  ;;  %v8647_v50 = vadd.f32 1.0, %v5436_v51  ;;  %v5438_v8 = vpop.eup %5437  ;;  %vm8666_vm9 = vmor %vm4423_vm14, %vm4424_vm5  ;;  %vm4438_vm6 = vweird.f32 %v8637_v21  ;;  %v4442_v19 = vand.u32 2147483647, %v8637_v21 }
 0x66f   : > { %v4420_v54 = vsub.f32 1.0, %v4419_v12  ;;  %5441 = vpow2.f32 %v4941_v31  ;;  %v4336_v47 = vsel %vm4335_vm3, %v5430_v52, %v4332_v32  ;;  %v4344_v20 = vmul.f32 %v5438_v8, %v8630_v2 }
 0x670   : > { %5443 = vrcp.f32 %v8647_v50  ;;  %v4341_v25 = vsel %vm8639_vm0, %v4340_v58, %v4336_v47  ;;  %vm4349_vm12 = vweird.f32 %v5438_v8  ;;  %v4444_v62 = vand.u32 2147483648, %v8637_v21 }
 0x671   : > { %v4421_v49 = vmul.f32 %v5434_v14, %v4420_v54  ;;  %v4448_v56 = vmul.f32 %v4341_v25, %v8606_v59  ;;  %v4345_v30 = vsub.f32 1.0, %v4344_v20  ;;  %vm4350_vm13 = vmor %vm4348_vm11, %vm4349_vm12  ;;  %vm8693_vm10 = vcmp.eq.f32.partialorder %v4442_v19, 8.507059e+37  ;;  %v4469_v20 = vpop.permute.xlu2 %4468 }
 0x672   : > { %v4284_v22 = vpop.f32.mrf.mxu0  ;;  %v4445_v33 = vor.u32 1.1754944e-38, %v4444_v62  ;;  %v4369_v38 = vand.u32 2147483648, %v8647_v50  ;;  %vm4363_vm14 = vweird.f32 %v8647_v50 }
 0x673   : > { %v4422_v41 = vadd.f32 %v5434_v14, %v4421_v49  ;;  %v8673_v35 = vadd.f32 %v8597_v61, %v4284_v22  ;;  %v4488_v59 = vsel %vm4104_vm1, %v4448_v56, %v5410_v46  ;;  %v4346_v6 = vmul.f32 %v5438_v8, %v4345_v30 }
 0x674   : > { %v5440_v42 = vpop.eup %5439  ;;  %4532 = vmatmul.f32.vlgmr.msra.gmra.mxu1 %v4488_v59  ;;  %v4370_v54 = vor.u32 1.1754944e-38, %v4369_v38 }
 0x675   : > { %v5442_v43 = vpop.eup %5441  ;;  %v4426_v7 = vsel %vm8666_vm9, %v5434_v14, %v4422_v41  ;;  %v4942_v16 = vmul.f32 -1.442695, %v8673_v35  ;;  %v4434_v60 = vmul.f32 %v5440_v42, %v8637_v21  ;;  %v4347_v9 = vadd.f32 %v5438_v8, %v4346_v6 }
 0x676   : > { %v5444_v3 = vpop.eup %5443  ;;  %v4431_v63 = vsel %vm8659_vm2, %v4430_v26, %v4426_v7  ;;  %v8685_v23 = vadd.f32 1.0, %v5442_v43  ;;  %vm4439_vm4 = vweird.f32 %v5440_v42  ;;  %v4367_v14 = vand.u32 2147483647, %v8647_v50 }
 0x677   : > { %v4454_v53 = vmul.f32 %v4431_v63, %v8613_v29  ;;  %5445 = vpow2.f32 %v4942_v16  ;;  %v4435_v34 = vsub.f32 1.0, %v4434_v60  ;;  %v4359_v52 = vmul.f32 %v5444_v3, %v8647_v50  ;;  %vm8702_vm7 = vmor %vm4438_vm6, %vm4439_vm4 }
 0x678   : > { %5447 = vrcp.f32 %v8685_v23  ;;  %v4351_v15 = vsel %vm4350_vm13, %v5438_v8, %v4347_v9  ;;  %vm4364_vm8 = vweird.f32 %v5444_v3  ;;  %v4479_v8 = vpop.permute.xlu1 %4478  ;;  %vm4368_vm3 = vcmp.eq.f32.partialorder %v4367_v14, 8.507059e+37 }
 0x679   : > { %v4494_v40 = vsel %vm4104_vm1, %v4454_v53, %v5415_v24  ;;  %v4356_v37 = vsel %vm4353_vm15, %v4355_v27, %v4351_v15  ;;  %v4436_v29 = vmul.f32 %v5440_v42, %v4435_v34  ;;  %v4360_v1 = vsub.f32 1.0, %v4359_v52  ;;  %vm4365_vm0 = vmor %vm4363_vm14, %vm4364_vm8 }
 0x67a   : > { %v4287_v46 = vpop.f32.mrf.mxu0  ;;  %4550 = vmatmul.f32.vlgmr.msrb.gmra.mxu3 %v4494_v40  ;;  %v4449_v2 = vmul.f32 %v4356_v37, %v8617_v4  ;;  %vm4378_vm2 = vweird.f32 %v8685_v23 }
 0x67b   : > { %v8709_v58 = vadd.f32 %v8597_v61, %v4287_v46  ;;  %v4437_v51 = vadd.f32 %v5440_v42, %v4436_v29  ;;  %v4361_v12 = vmul.f32 %v5444_v3, %v4360_v1 }
 0x67c   : > { %v4489_v4 = vsel %vm4104_vm1, %v4449_v2, %v5419_v28  ;;  %v4384_v28 = vand.u32 2147483648, %v8685_v23 }
 0x67d   : > { %v5446_v11 = vpop.eup %5445  ;;  %v4943_v21 = vmul.f32 -1.442695, %v8709_v58  ;;  %4535 = vmatmul.f32.gmra.mxu1 %v4489_v4  ;;  %v4441_v31 = vsel %vm8702_vm7, %v5440_v42, %v4437_v51  ;;  %v4362_v32 = vadd.f32 %v5444_v3, %v4361_v12 }
 0x67e   : > { %v5448_v0 = vpop.eup %5447  ;;  %v4324_v39 = vadd.f32 1.0, %v5446_v11  ;;  %v4446_v61 = vsel %vm8693_vm10, %v4445_v33, %v4441_v31  ;;  %v4385_v59 = vor.u32 1.1754944e-38, %v4384_v28  ;;  %v5422_v33 = vld [vmem:[%s9110_s22] ss:$0 sm:$0xff] }
 0x67f   : > { %5449 = vpow2.f32 %v4943_v21  ;;  %v4455_v47 = vmul.f32 %v4446_v61, %v8621_v17  ;;  %v4366_v25 = vsel %vm4365_vm0, %v5444_v3, %v4362_v32  ;;  %v4374_v24 = vmul.f32 %v5448_v0, %v8685_v23 }
 0x680   : > { %5451 = vrcp.f32 %v4324_v39  ;;  %v4371_v49 = vsel %vm4368_vm3, %v4370_v54, %v4366_v25  ;;  %vm4379_vm5 = vweird.f32 %v5448_v0  ;;  %v4382_v17 = vand.u32 2147483647, %v8685_v23 }
 0x681   : > { %v4495_v50 = vsel %vm4104_vm1, %v4455_v47, %v4479_v8  ;;  %v4450_v57 = vmul.f32 %v4371_v49, %v8625_v48  ;;  %v4375_v56 = vsub.f32 1.0, %v4374_v24  ;;  %vm4380_vm9 = vmor %vm4378_vm2, %vm4379_vm5  ;;  %v5409_v48 = vunpack.i.l.bf16 %v8627_v18 }
 0x682   : > { %4553 = vmatmul.f32.gmra.mxu3 %v4495_v50  ;;  %vm4383_vm11 = vcmp.eq.f32.partialorder %v4382_v17, 8.507059e+37  ;;  %v4399_v7 = vand.u32 2147483648, %v4324_v39  ;;  %v4397_v62 = vand.u32 2147483647, %v4324_v39  ;;  %vm4393_vm6 = vweird.f32 %v4324_v39 }
 0x683   : > { %v4490_v44 = vsel %vm4104_vm1, %v4450_v57, %v4469_v20  ;;  %v4376_v26 = vmul.f32 %v5448_v0, %v4375_v56  ;;  %v5414_v23 = vunpack.i.l.bf16 %v8644_v45 }
 0x684   : > { %v4400_v18 = vor.u32 1.1754944e-38, %v4399_v7  ;;  %vm4398_vm13 = vcmp.eq.f32.partialorder %v4397_v62, 8.507059e+37 }
 0x685   : > { %v5450_v22 = vpop.eup %5449  ;;  %4538 = vmatmul.f32.gmra.mxu1 %v4490_v44  ;;  %v4377_v30 = vadd.f32 %v5448_v0, %v4376_v26 }
 0x686   : > { %v5452_v13 = vpop.eup %5451  ;;  %v4325_v41 = vadd.f32 1.0, %v5450_v22 }
 0x687   : > { %v4381_v27 = vsel %vm4380_vm9, %v5448_v0, %v4377_v30  ;;  %v4389_v42 = vmul.f32 %v5452_v13, %v4324_v39  ;;  %vm4394_vm12 = vweird.f32 %v5452_v13 }
 0x688   : > { %5453 = vrcp.f32 %v4325_v41  ;;  %v4386_v6 = vsel %vm4383_vm11, %v4385_v59, %v4381_v27  ;;  %vm4395_vm4 = vmor %vm4393_vm6, %vm4394_vm12  ;;  %v4414_v15 = vand.u32 2147483648, %v4325_v41  ;;  %v4412_v37 = vand.u32 2147483647, %v4325_v41 }
 0x689   : > { %v4451_v19 = vmul.f32 %v4386_v6, %v8635_v36  ;;  %v4390_v43 = vsub.f32 1.0, %v4389_v42  ;;  %vm4408_vm10 = vweird.f32 %v4325_v41 }
 0x68a   : > { %v4415_v45 = vor.u32 1.1754944e-38, %v4414_v15  ;;  %vm4413_vm8 = vcmp.eq.f32.partialorder %v4412_v37, 8.507059e+37 }
 0x68b   : > { %v4491_v16 = vsel %vm4104_vm1, %v4451_v19, %v5409_v48  ;;  %v4391_v60 = vmul.f32 %v5452_v13, %v4390_v43 }
 0x68c   : > { %4541 = vmatmul.f32.vlgmr.msra.gmra.mxu2 %v4491_v16 }
 0x68d   : > { %v4392_v3 = vadd.f32 %v5452_v13, %v4391_v60 }
 0x68e   : > { %v5454_v63 = vpop.eup %5453 }
 0x68f   : > { %v4396_v9 = vsel %vm4395_vm4, %v5452_v13, %v4392_v3  ;;  %v4404_v53 = vmul.f32 %v5454_v63, %v4325_v41  ;;  %vm4409_vm15 = vweird.f32 %v5454_v63 }
 0x690   : > { %v4401_v34 = vsel %vm4398_vm13, %v4400_v18, %v4396_v9  ;;  %vm4410_vm7 = vmor %vm4408_vm10, %vm4409_vm15 }
 0x691   : > { %v4452_v36 = vmul.f32 %v4401_v34, %v8673_v35  ;;  %v4405_v52 = vsub.f32 1.0, %v4404_v53  ;;  %v5420_v35 = vunpack.i.h.bf16 %v8651_v10 }
 0x693   : > { %v4492_v5 = vsel %vm4104_vm1, %v4452_v36, %v5414_v23  ;;  %v4406_v40 = vmul.f32 %v5454_v63, %v4405_v52 }
 0x694   : > { %4544 = vmatmul.f32.gmra.mxu2 %v4492_v5 }
 0x695   : > { %v4407_v29 = vadd.f32 %v5454_v63, %v4406_v40 }
 0x697   : > { %v4411_v1 = vsel %vm4410_vm7, %v5454_v63, %v4407_v29 }
 0x698   : > { %v4416_v46 = vsel %vm4413_vm8, %v4415_v45, %v4411_v1 }
 0x699   : > { %v4453_v2 = vmul.f32 %v4416_v46, %v8709_v58 }
 0x69b   : > { %v4493_v55 = vsel %vm4104_vm1, %v4453_v2, %v5420_v35 }
 0x69c   : > { %4547 = vmatmul.f32.gmra.mxu2 %v4493_v55 }
 0x6f1   : > { %v4533_v14 = vpop.f32.mrf.mxu1 }
 0x6f2   : > { %v4534_v38 = vadd.f32 %v5422_v33, %v4533_v14 }
 0x6f4   : > { %4557 = vst [vmem:[%s5770_s25] sm:$0xff] %v4534_v38 }
 0x6fa   : > { %v4536_v51 = vpop.f32.mrf.mxu1 }
 0x6fb   : > { %v4537_v12 = vadd.f32 %v5422_v33, %v4536_v51 }
 0x6fd   : > { %4558 = vst [vmem:[%s5770_s25 + $0x8] sm:$0xff] %v4537_v12  ;;  %v4551_v10 = vpop.f32.mrf.mxu3 }
 0x6fe   : > { %v4552_v4 = vadd.f32 %v5422_v33, %v4551_v10 }
 0x700   : > { %4563 = vst [vmem:[%s5770_s25 + $0x30] sm:$0xff] %v4552_v4 }
 0x702   : > { %v4539_v58 = vpop.f32.mrf.mxu1 }
 0x703   : > { %v4540_v11 = vadd.f32 %v5422_v33, %v4539_v58 }
 0x705   : > { %4559 = vst [vmem:[%s5770_s25 + $0x10] sm:$0xff] %v4540_v11  ;;  %v4554_v21 = vpop.f32.mrf.mxu3 }
 0x706   : > { %v4555_v31 = vadd.f32 %v5422_v33, %v4554_v21 }
 0x708   : > { %4564 = vst [vmem:[%s5770_s25 + $0x38] sm:$0xff] %v4555_v31 }
 0x70f   : > { %v4542_v32 = vpop.f32.mrf.mxu2 }
 0x710   : > { %v4543_v0 = vadd.f32 %v5422_v33, %v4542_v32 }
 0x712   : > { %4560 = vst [vmem:[%s5770_s25 + $0x18] sm:$0xff] %v4543_v0 }
 0x717   : > { %v4545_v39 = vpop.f32.mrf.mxu2 }
 0x718   : > { %v4546_v8 = vadd.f32 %v5422_v33, %v4545_v39 }
 0x71a   : > { %4561 = vst [vmem:[%s5770_s25 + $0x20] sm:$0xff] %v4546_v8 }
 0x71f   : > { %v4548_v61 = vpop.f32.mrf.mxu2 }
 0x720   : > { %v4549_v54 = vadd.f32 %v5422_v33, %v4548_v61 }
 0x722   : > { %4562 = vst [vmem:[%s5770_s25 + $0x28] sm:$0xff] %v4549_v54 }
 0x723 PF: > { %s9111_s20 = sld [smem:[#allocation21_spill]]  ;;  %s4578_s17 = sshll.u32 %s5770_s25, 4  ;;  %s4579_s17 = int_to_ptr.vmem [resolvable:$true] %s4578_s17 }
 0x724   : > { %s9112_s15 = sld [smem:[#allocation65_spill]] }
 0x725   : > { %s9113_s27 = sld [smem:[#allocation11_spill]] }
 0x72a   : > { %s4577_s26 = scalar_lea.hbm %s9112_s15, %s9111_s20  ;;  %s5475_s23 = scalar_lea.hbm %s9112_s15, 128 }
 0x72b   : > { %s4580_s24 = sshll.u32 %s4577_s26, 4  ;;  %s9115_s30 = sand.u32 1, %s9113_s27   ;;  %s4581_s24 = int_to_ptr.hbm [resolvable:$true] %s4580_s24 }
 0x72c   : > { %s4566_s28 = scalar_lea.sflag [#allocation8], %s9115_s30  ;;  %s5469_s1 = sshra.s32 %s4581_s24, 4  ;;  %s5470_s1 = int_to_ptr.hbm [resolvable:$true] %s5469_s1 }
 0x72d   : > { %s5471_s21 = scalar_lea.hbm %s5470_s1, 64  ;;  %p5476_p10 = scmp.lt.s32.totalorder %s5470_s1, %s9112_s15 }
 0x72e   : > { %p5472_p6 = scmp.ne.s32.totalorder %s5470_s1, %s5471_s21  ;;  %p5477_p11 = scmp.lt.s32.totalorder %s5475_s23, %s5471_s21 }
 0x730   : > { %p5473_p7 = pnand %p5472_p6, %p5710_p3  ;;  %p5478_p12 = por %p5477_p11, %p5476_p10 }
 0x732   : > { %p5474_p9 = pneg %p5473_p7 }
 0x734   : > { %p5479_p13 = pnand %p5478_p12, %p5474_p9 }
 0x736   : > { %5482 = shalt.err (!%p5479_p13)
}
 0x737   : > { %s5566_s25 = smov 128   ;;  %s5567_s20 = smov 8  }
 0x738   : > { %5144 = dma.vmem_to_hbm [thread:$0]  (%p5710_p3), %s4579_s17, 1024, %s4581_s24, %s4566_s28, %s5566_s25, %s5566_s25, %s5567_s20  }
 0x739 PF: > { %s9116_s3 = sld [smem:[#allocation15_spill]] }
 0x73a   : > { %s9117_s27 = sld [smem:[#allocation10_spill]] }
 0x73f   : > { %p5150_p0 = scmp.ge.s32.totalorder %s9116_s3, 2 }
 0x740   : > { %s4595_s30 = sand.u32 1, %s9117_s27  }
 0x741   : > { %p5147_p1 = pnand %p5150_p0, %p5721_p8  ;;  %s4596_s29 = scalar_lea.sflag [#allocation8], %s4595_s30 }
 0x743   : > { %p5148_p2 = pneg %p5147_p1 }
 0x745   : > { %5516 = dma.done.wait (%p5148_p2), %s4596_s29, 1024  }
 0x746   : > { %5518 = vsyncadd (%p5148_p2), %s4596_s29, 4294966272  ;;  %s30_s30 = sadd.s32 1, %s9116_s3   ;;  %s9119_s24 = sld [smem:[#allocation11_spill]] }
 0x747   : > { %p27_p4 = scmp.ge.s32.totalorder %s30_s30, 6   ;;  %s9120_s25 = sld [smem:[#allocation12_spill]] }
 0x748   : > { %s9121_s26 = sld [smem:[#allocation19_spill]] }
 0x749   : > { %s9122_s27 = sld [smem:[#allocation13_spill]]  ;;  %29 = sbr.rel (!%p27_p4) target bundleno = 14 (0xe), region = 152 }
 0x74a   : > { %s9123_s28 = sld [smem:[#allocation14_spill]] }
 0x74b   : > { %s9124_s29 = sld [smem:[#allocation16_spill]] }
 0x74c   : > { %s9125_s0 = sld [smem:[#allocation18_spill]] }
 0x74e   :  { %4602 = vsyncpa [#allocation8], 1 }
 0x74f   :  { %4604 = vsyncpa [#allocation8 + $0x1], 1 }

</bundles_post_ra>
